<compile_context>
chip_gen: v6e
topology: v6e:2x2x1
jax: 0.10.0
libtpu: 0.0.40
codegen_flags: <defaults>
</compile_context>

<pallas_src>
import jax
import jax.numpy as jnp
from jax.experimental import pallas as pl
from jax.experimental.pallas import tpu as pltpu


def rnn_head_kernel(emb_ref, mask_ref, wih_ref, bih_ref, whh_ref, bhh_ref,
                    whead_ref, bhead_ref, o_ref, xp_ref):
    """Fused RNN backbone + flattened linear head for one batch tile.

    emb_ref  : (S, TB, E) bf16   time-major embedded tokens
    mask_ref : (S, TB, 1) f32    1.0 where t < seq_length else 0.0
    wih_ref  : (E, H) bf16       bih_ref: (1, H) f32
    whh_ref  : (H, H) bf16       bhh_ref: (1, H) f32
    whead_ref: (S, H, Cpad) bf16 (flattened-head weight, lane-padded)
    bhead_ref: (1, Cpad) f32
    o_ref    : (TB, Cpad) f32    lane-padded logits
    xp_ref   : (S, TB, H) f32    VMEM scratch (precomputed input projection)
    """
    S, TB, E = emb_ref.shape
    H = wih_ref.shape[1]

    # Input projection for every (t, b) at once: M = S*TB rows through the MXU.
    emb2d = emb_ref[...].reshape(S * TB, E)
    xp = jnp.dot(emb2d, wih_ref[...], preferred_element_type=jnp.float32)
    xp_ref[...] = (xp + bih_ref[...]).reshape(S, TB, H)

    whh = whh_ref[...]
    bhh = bhh_ref[...]

    def step(t, carry):
        h, acc = carry                                          # f32 carries
        hh = jnp.dot(h.astype(jnp.bfloat16), whh,
                     preferred_element_type=jnp.float32)
        h_new = jnp.tanh(xp_ref[t] + hh + bhh)
        out_t = h_new * mask_ref[t]          # pad_packed: zero t >= seq_length
        acc = acc + jnp.dot(out_t.astype(jnp.bfloat16), whead_ref[t],
                            preferred_element_type=jnp.float32)
        return h_new, acc

    h0 = jnp.zeros((TB, H), jnp.float32)
    acc0 = jnp.zeros_like(o_ref)
    _, acc = jax.lax.fori_loop(0, S, step, (h0, acc0), unroll=True)
    o_ref[...] = acc + bhead_ref[...]


def rnn_classifier_forward(tokens, seq_lengths, params, *, n_classes, max_seq_len):
    out_ftrs = 1 if n_classes <= 2 else n_classes
    tok_emb = params["tok_emb"]                  # (V, E)
    B, S_in = tokens.shape
    E = tok_emb.shape[1]
    H = params["w_hh"].shape[0]
    S = max_seq_len
    if S_in < S:                                 # total_length=max_seq_len
        tokens = jnp.pad(tokens, ((0, 0), (0, S - S_in)))

    # Embedding (+ emb dropout identity in eval); time-major, bf16 for the MXU.
    emb = jnp.transpose(tok_emb[tokens], (1, 0, 2)).astype(jnp.bfloat16)  # (S,B,E)

    # pack/pad_packed semantics: RNN outputs at t >= seq_length are zeroed.
    mask = (jnp.arange(S)[:, None] < seq_lengths[None, :])
    mask = mask.astype(jnp.float32)[:, :, None]                          # (S,B,1)

    # Lane-dense head: pad out_ftrs up to 128 lanes and reshape the flattened
    # head weight to (S, H, Cpad) so it is consumed one timestep chunk at a time.
    c_pad = max(128, ((out_ftrs + 127) // 128) * 128)
    w_head = params["w_head"].reshape(S, H, out_ftrs)
    w_head = jnp.pad(w_head, ((0, 0), (0, 0), (0, c_pad - out_ftrs)))
    w_head = w_head.astype(jnp.bfloat16)
    b_head = jnp.pad(params["b_head"].reshape(1, out_ftrs),
                     ((0, 0), (0, c_pad - out_ftrs))).astype(jnp.float32)

    w_ih = params["w_ih"].astype(jnp.bfloat16)
    w_hh = params["w_hh"].astype(jnp.bfloat16)
    b_ih = params["b_ih"].astype(jnp.float32)
    b_hh = params["b_hh"].astype(jnp.float32)

    # Batch tile: multiple of 16 keeps bf16 sublane packing aligned; B>=32
    # gives the "parallel" grid axis >=2 steps (v7x dual TensorCore).
    tb = 16 if B % 16 == 0 else B
    grid = (B // tb,)

    def full(arr):
        return pl.BlockSpec(arr.shape, lambda i, n=arr.ndim: (0,) * n)

    logits = pl.pallas_call(
        rnn_head_kernel,
        out_shape=jax.ShapeDtypeStruct((B, c_pad), jnp.float32),
        grid_spec=pltpu.PrefetchScalarGridSpec(
            num_scalar_prefetch=0, grid=grid,
            in_specs=[
                pl.BlockSpec((S, tb, E), lambda i: (0, i, 0)),
                pl.BlockSpec((S, tb, 1), lambda i: (0, i, 0)),
                full(w_ih), full(b_ih), full(w_hh), full(b_hh),
                full(w_head), full(b_head),
            ],
            out_specs=pl.BlockSpec((tb, c_pad), lambda i: (i, 0)),
            scratch_shapes=[pltpu.VMEM((S, tb, H), jnp.float32)]),
        compiler_params=pltpu.CompilerParams(
            dimension_semantics=("parallel",),
            vmem_limit_bytes=32 * 1024 * 1024),
    )(emb, mask, w_ih, b_ih, w_hh, b_hh, w_head, b_head)
    return logits[:, :out_ftrs]


# ------------------------- deterministic parameter init -------------------------
def init_params(key, vocab, max_seq_len, emb_ftrs, hidden_ftrs, n_classes):
    out_ftrs = 1 if n_classes <= 2 else n_classes
    k = jax.random.split(key, 6)

    def uni(kk, shape, fan_in):
        lim = 1.0 / (fan_in ** 0.5)
        return jax.random.uniform(kk, shape, jnp.float32, -lim, lim)

    return {
        "tok_emb": 0.1 * jax.random.normal(k[0], (vocab, emb_ftrs), jnp.float32),
        # nn.RNN params, stored pre-transposed: x @ w_ih, h @ w_hh
        "w_ih": uni(k[1], (emb_ftrs, hidden_ftrs), hidden_ftrs),
        "b_ih": uni(k[2], (1, hidden_ftrs), hidden_ftrs),
        "w_hh": uni(k[3], (hidden_ftrs, hidden_ftrs), hidden_ftrs),
        "b_hh": uni(k[4], (1, hidden_ftrs), hidden_ftrs),
        # head Linear(max_seq_len*hidden, out_ftrs), stored transposed
        "w_head": uni(k[5], (max_seq_len * hidden_ftrs, out_ftrs),
                      max_seq_len * hidden_ftrs),
        "b_head": jnp.zeros((out_ftrs,), jnp.float32),
    }


# ------------------------------ pure-JAX reference ------------------------------
def ref_forward(tokens, seq_lengths, params, *, n_classes, max_seq_len):
    B, S_in = tokens.shape
    S = max_seq_len
    if S_in < S:
        tokens = jnp.pad(tokens, ((0, 0), (0, S - S_in)))

    def r(a):  # mimic the kernel's bf16 MXU inputs (f32 accumulation)
        return a.astype(jnp.bfloat16).astype(jnp.float32)

    emb = r(params["tok_emb"][tokens])                        # (B,S,E)
    w_ih, w_hh, w_head = r(params["w_ih"]), r(params["w_hh"]), r(params["w_head"])
    H = params["w_hh"].shape[0]

    xs = jnp.transpose(emb, (1, 0, 2))                        # (S,B,E)
    xp = xs @ w_ih + params["b_ih"]                           # (S,B,H)

    def step(h, xp_t):
        h = jnp.tanh(xp_t + r(h) @ w_hh + params["b_hh"])
        return h, h

    _, hs = jax.lax.scan(step, jnp.zeros((B, H), jnp.float32), xp)   # (S,B,H)
    valid = (jnp.arange(S)[:, None] < seq_lengths[None, :])[:, :, None]
    hs = jnp.where(valid, hs, 0.0)                            # pad_packed zeros
    flat = r(jnp.transpose(hs, (1, 0, 2)).reshape(B, S * H))  # flatten (B, S*H)
    return flat @ w_head + params["b_head"]


if __name__ == "__main__":
    B, max_seq_len, E, H = 32, 16, 128, 128
    vocab, n_classes = 100, 4

    key = jax.random.PRNGKey(0)
    kp, kt, kl = jax.random.split(key, 3)
    params = init_params(kp, vocab, max_seq_len, E, H, n_classes)
    tokens = jax.random.randint(kt, (B, max_seq_len), 0, vocab, dtype=jnp.int32)
    seq_lengths = jax.random.randint(kl, (B,), 1, max_seq_len + 1, dtype=jnp.int32)
    seq_lengths = seq_lengths.at[0].set(max_seq_len)

    logits = rnn_classifier_forward(tokens, seq_lengths, params,
                                    n_classes=n_classes, max_seq_len=max_seq_len)
    logits = jax.block_until_ready(logits)

    ref = ref_forward(tokens, seq_lengths, params,
                      n_classes=n_classes, max_seq_len=max_seq_len)
    assert logits.shape == (B, n_classes), logits.shape
    err = float(jnp.max(jnp.abs(logits - ref)))
    assert jnp.allclose(logits, ref, atol=1e-2, rtol=1e-2), err
    print("KERNEL_OK")
</pallas_src>

<mosaic_0001>
module attributes {stable_mosaic.version = 11 : i64} {
  func.func @rnn_head_kernel(%arg0: i32, %arg1: memref<16x16x128xbf16, #tpu.memory_space<vmem>>, %arg2: memref<16x16x1xf32, #tpu.memory_space<vmem>>, %arg3: memref<128x128xbf16, #tpu.memory_space<vmem>>, %arg4: memref<1x128xf32, #tpu.memory_space<vmem>>, %arg5: memref<128x128xbf16, #tpu.memory_space<vmem>>, %arg6: memref<1x128xf32, #tpu.memory_space<vmem>>, %arg7: memref<16x128x128xbf16, #tpu.memory_space<vmem>>, %arg8: memref<1x128xf32, #tpu.memory_space<vmem>>, %arg9: memref<16x128xf32, #tpu.memory_space<vmem>>, %arg10: memref<16x16x128xf32, #tpu.memory_space<vmem>>) attributes {dimension_semantics = [#tpu.dimension_semantics<parallel>], iteration_bounds = array<i64: 2>, scalar_prefetch = 0 : i64, scratch_operands = 1 : i64, tpu.core_type = #tpu.core_type<tc>, window_params = [{transform_indices = @transform_0, window_bounds = array<i64: 16, 16, 128>}, {transform_indices = @transform_1, window_bounds = array<i64: 16, 16, 1>}, {pipeline_mode = #tpu.pipeline_mode<synchronous>, transform_indices = @transform_2, window_bounds = array<i64: 128, 128>}, {pipeline_mode = #tpu.pipeline_mode<synchronous>, transform_indices = @transform_3, window_bounds = array<i64: 1, 128>}, {pipeline_mode = #tpu.pipeline_mode<synchronous>, transform_indices = @transform_4, window_bounds = array<i64: 128, 128>}, {pipeline_mode = #tpu.pipeline_mode<synchronous>, transform_indices = @transform_5, window_bounds = array<i64: 1, 128>}, {pipeline_mode = #tpu.pipeline_mode<synchronous>, transform_indices = @transform_6, window_bounds = array<i64: 16, 128, 128>}, {pipeline_mode = #tpu.pipeline_mode<synchronous>, transform_indices = @transform_7, window_bounds = array<i64: 1, 128>}, {transform_indices = @transform_8, window_bounds = array<i64: 16, 128>}]} {
    %c0 = arith.constant 0 : index
    %c0_0 = arith.constant 0 : index
    %c0_1 = arith.constant 0 : index
    %0 = vector.load %arg1[%c0, %c0_0, %c0_1] : memref<16x16x128xbf16, #tpu.memory_space<vmem>>, vector<16x16x128xbf16>
    %1 = vector.shape_cast %0 : vector<16x16x128xbf16> to vector<256x128xbf16>
    %c0_2 = arith.constant 0 : index
    %c0_3 = arith.constant 0 : index
    %2 = vector.load %arg3[%c0_2, %c0_3] : memref<128x128xbf16, #tpu.memory_space<vmem>>, vector<128x128xbf16>
    %cst = arith.constant dense<0.000000e+00> : vector<256x128xf32>
    %3 = tpu.matmul %1, %2, %cst {dimension_numbers = #tpu.dot_dimension_numbers<[1], [0], [0], [1], [0, 0, 1, 1], [], []>} : vector<256x128xbf16>, vector<128x128xbf16>, vector<256x128xf32> -> vector<256x128xf32>
    %c0_4 = arith.constant 0 : index
    %c0_5 = arith.constant 0 : index
    %4 = vector.load %arg4[%c0_4, %c0_5] : memref<1x128xf32, #tpu.memory_space<vmem>>, vector<1x128xf32>
    %5 = vector.broadcast %4 : vector<1x128xf32> to vector<256x128xf32>
    %6 = arith.addf %3, %5 : vector<256x128xf32>
    %7 = vector.shape_cast %6 : vector<256x128xf32> to vector<16x16x128xf32>
    %c0_6 = arith.constant 0 : index
    %c0_7 = arith.constant 0 : index
    %c0_8 = arith.constant 0 : index
    %8 = vector.load %arg10[%c0_6, %c0_7, %c0_8] : memref<16x16x128xf32, #tpu.memory_space<vmem>>, vector<16x16x128xf32>
    tpu.vector_store %arg10[%c0_6, %c0_7, %c0_8], %7 {strides = array<i32>} : memref<16x16x128xf32, #tpu.memory_space<vmem>>, vector<16x16x128xf32>,
    %c0_9 = arith.constant 0 : index
    %c0_10 = arith.constant 0 : index
    %9 = vector.load %arg5[%c0_9, %c0_10] : memref<128x128xbf16, #tpu.memory_space<vmem>>, vector<128x128xbf16>
    %c0_11 = arith.constant 0 : index
    %c0_12 = arith.constant 0 : index
    %10 = vector.load %arg6[%c0_11, %c0_12] : memref<1x128xf32, #tpu.memory_space<vmem>>, vector<1x128xf32>
    %cst_13 = arith.constant 0.000000e+00 : f32
    %11 = vector.broadcast %cst_13 : f32 to vector<16x128xf32>
    %cst_14 = arith.constant 0.000000e+00 : f32
    %12 = vector.broadcast %cst_14 : f32 to vector<16x128xf32>
    %c0_i32 = arith.constant 0 : i32
    %13 = arith.truncf %11 : vector<16x128xf32> to vector<16x128xbf16>
    %cst_15 = arith.constant dense<0.000000e+00> : vector<16x128xf32>
    %14 = tpu.matmul %13, %9, %cst_15 {dimension_numbers = #tpu.dot_dimension_numbers<[1], [0], [0], [1], [0, 0, 1, 1], [], []>} : vector<16x128xbf16>, vector<128x128xbf16>, vector<16x128xf32> -> vector<16x128xf32>
    %15 = arith.index_cast %c0_i32 : i32 to index
    %c0_16 = arith.constant 0 : index
    %c0_17 = arith.constant 0 : index
    %16 = vector.load %arg10[%15, %c0_16, %c0_17] : memref<16x16x128xf32, #tpu.memory_space<vmem>>, vector<1x16x128xf32>
    %17 = vector.shape_cast %16 : vector<1x16x128xf32> to vector<16x128xf32>
    %18 = arith.addf %17, %14 : vector<16x128xf32>
    %19 = vector.broadcast %10 : vector<1x128xf32> to vector<16x128xf32>
    %20 = arith.addf %18, %19 : vector<16x128xf32>
    %21 = math.tanh %20 : vector<16x128xf32>
    %22 = arith.index_cast %c0_i32 : i32 to index
    %c0_18 = arith.constant 0 : index
    %c0_19 = arith.constant 0 : index
    %23 = vector.load %arg2[%22, %c0_18, %c0_19] : memref<16x16x1xf32, #tpu.memory_space<vmem>>, vector<1x16x1xf32>
    %24 = vector.shape_cast %23 : vector<1x16x1xf32> to vector<16x1xf32>
    %25 = vector.broadcast %24 : vector<16x1xf32> to vector<16x128xf32>
    %26 = arith.mulf %21, %25 : vector<16x128xf32>
    %27 = arith.truncf %26 : vector<16x128xf32> to vector<16x128xbf16>
    %28 = arith.index_cast %c0_i32 : i32 to index
    %c0_20 = arith.constant 0 : index
    %c0_21 = arith.constant 0 : index
    %29 = vector.load %arg7[%28, %c0_20, %c0_21] : memref<16x128x128xbf16, #tpu.memory_space<vmem>>, vector<1x128x128xbf16>
    %30 = vector.shape_cast %29 : vector<1x128x128xbf16> to vector<128x128xbf16>
    %cst_22 = arith.constant dense<0.000000e+00> : vector<16x128xf32>
    %31 = tpu.matmul %27, %30, %cst_22 {dimension_numbers = #tpu.dot_dimension_numbers<[1], [0], [0], [1], [0, 0, 1, 1], [], []>} : vector<16x128xbf16>, vector<128x128xbf16>, vector<16x128xf32> -> vector<16x128xf32>
    %32 = arith.addf %12, %31 : vector<16x128xf32>
    %c1_i32 = arith.constant 1 : i32
    %33 = arith.truncf %21 : vector<16x128xf32> to vector<16x128xbf16>
    %cst_23 = arith.constant dense<0.000000e+00> : vector<16x128xf32>
    %34 = tpu.matmul %33, %9, %cst_23 {dimension_numbers = #tpu.dot_dimension_numbers<[1], [0], [0], [1], [0, 0, 1, 1], [], []>} : vector<16x128xbf16>, vector<128x128xbf16>, vector<16x128xf32> -> vector<16x128xf32>
    %35 = arith.index_cast %c1_i32 : i32 to index
    %c0_24 = arith.constant 0 : index
    %c0_25 = arith.constant 0 : index
    %36 = vector.load %arg10[%35, %c0_24, %c0_25] : memref<16x16x128xf32, #tpu.memory_space<vmem>>, vector<1x16x128xf32>
    %37 = vector.shape_cast %36 : vector<1x16x128xf32> to vector<16x128xf32>
    %38 = arith.addf %37, %34 : vector<16x128xf32>
    %39 = vector.broadcast %10 : vector<1x128xf32> to vector<16x128xf32>
    %40 = arith.addf %38, %39 : vector<16x128xf32>
    %41 = math.tanh %40 : vector<16x128xf32>
    %42 = arith.index_cast %c1_i32 : i32 to index
    %c0_26 = arith.constant 0 : index
    %c0_27 = arith.constant 0 : index
    %43 = vector.load %arg2[%42, %c0_26, %c0_27] : memref<16x16x1xf32, #tpu.memory_space<vmem>>, vector<1x16x1xf32>
    %44 = vector.shape_cast %43 : vector<1x16x1xf32> to vector<16x1xf32>
    %45 = vector.broadcast %44 : vector<16x1xf32> to vector<16x128xf32>
    %46 = arith.mulf %41, %45 : vector<16x128xf32>
    %47 = arith.truncf %46 : vector<16x128xf32> to vector<16x128xbf16>
    %48 = arith.index_cast %c1_i32 : i32 to index
    %c0_28 = arith.constant 0 : index
    %c0_29 = arith.constant 0 : index
    %49 = vector.load %arg7[%48, %c0_28, %c0_29] : memref<16x128x128xbf16, #tpu.memory_space<vmem>>, vector<1x128x128xbf16>
    %50 = vector.shape_cast %49 : vector<1x128x128xbf16> to vector<128x128xbf16>
    %cst_30 = arith.constant dense<0.000000e+00> : vector<16x128xf32>
    %51 = tpu.matmul %47, %50, %cst_30 {dimension_numbers = #tpu.dot_dimension_numbers<[1], [0], [0], [1], [0, 0, 1, 1], [], []>} : vector<16x128xbf16>, vector<128x128xbf16>, vector<16x128xf32> -> vector<16x128xf32>
    %52 = arith.addf %32, %51 : vector<16x128xf32>
    %c2_i32 = arith.constant 2 : i32
    %53 = arith.truncf %41 : vector<16x128xf32> to vector<16x128xbf16>
    %cst_31 = arith.constant dense<0.000000e+00> : vector<16x128xf32>
    %54 = tpu.matmul %53, %9, %cst_31 {dimension_numbers = #tpu.dot_dimension_numbers<[1], [0], [0], [1], [0, 0, 1, 1], [], []>} : vector<16x128xbf16>, vector<128x128xbf16>, vector<16x128xf32> -> vector<16x128xf32>
    %55 = arith.index_cast %c2_i32 : i32 to index
    %c0_32 = arith.constant 0 : index
    %c0_33 = arith.constant 0 : index
    %56 = vector.load %arg10[%55, %c0_32, %c0_33] : memref<16x16x128xf32, #tpu.memory_space<vmem>>, vector<1x16x128xf32>
    %57 = vector.shape_cast %56 : vector<1x16x128xf32> to vector<16x128xf32>
    %58 = arith.addf %57, %54 : vector<16x128xf32>
    %59 = vector.broadcast %10 : vector<1x128xf32> to vector<16x128xf32>
    %60 = arith.addf %58, %59 : vector<16x128xf32>
    %61 = math.tanh %60 : vector<16x128xf32>
    %62 = arith.index_cast %c2_i32 : i32 to index
    %c0_34 = arith.constant 0 : index
    %c0_35 = arith.constant 0 : index
    %63 = vector.load %arg2[%62, %c0_34, %c0_35] : memref<16x16x1xf32, #tpu.memory_space<vmem>>, vector<1x16x1xf32>
    %64 = vector.shape_cast %63 : vector<1x16x1xf32> to vector<16x1xf32>
    %65 = vector.broadcast %64 : vector<16x1xf32> to vector<16x128xf32>
    %66 = arith.mulf %61, %65 : vector<16x128xf32>
    %67 = arith.truncf %66 : vector<16x128xf32> to vector<16x128xbf16>
    %68 = arith.index_cast %c2_i32 : i32 to index
    %c0_36 = arith.constant 0 : index
    %c0_37 = arith.constant 0 : index
    %69 = vector.load %arg7[%68, %c0_36, %c0_37] : memref<16x128x128xbf16, #tpu.memory_space<vmem>>, vector<1x128x128xbf16>
    %70 = vector.shape_cast %69 : vector<1x128x128xbf16> to vector<128x128xbf16>
    %cst_38 = arith.constant dense<0.000000e+00> : vector<16x128xf32>
    %71 = tpu.matmul %67, %70, %cst_38 {dimension_numbers = #tpu.dot_dimension_numbers<[1], [0], [0], [1], [0, 0, 1, 1], [], []>} : vector<16x128xbf16>, vector<128x128xbf16>, vector<16x128xf32> -> vector<16x128xf32>
    %72 = arith.addf %52, %71 : vector<16x128xf32>
    %c3_i32 = arith.constant 3 : i32
    %73 = arith.truncf %61 : vector<16x128xf32> to vector<16x128xbf16>
    %cst_39 = arith.constant dense<0.000000e+00> : vector<16x128xf32>
    %74 = tpu.matmul %73, %9, %cst_39 {dimension_numbers = #tpu.dot_dimension_numbers<[1], [0], [0], [1], [0, 0, 1, 1], [], []>} : vector<16x128xbf16>, vector<128x128xbf16>, vector<16x128xf32> -> vector<16x128xf32>
    %75 = arith.index_cast %c3_i32 : i32 to index
    %c0_40 = arith.constant 0 : index
    %c0_41 = arith.constant 0 : index
    %76 = vector.load %arg10[%75, %c0_40, %c0_41] : memref<16x16x128xf32, #tpu.memory_space<vmem>>, vector<1x16x128xf32>
    %77 = vector.shape_cast %76 : vector<1x16x128xf32> to vector<16x128xf32>
    %78 = arith.addf %77, %74 : vector<16x128xf32>
    %79 = vector.broadcast %10 : vector<1x128xf32> to vector<16x128xf32>
    %80 = arith.addf %78, %79 : vector<16x128xf32>
    %81 = math.tanh %80 : vector<16x128xf32>
    %82 = arith.index_cast %c3_i32 : i32 to index
    %c0_42 = arith.constant 0 : index
    %c0_43 = arith.constant 0 : index
    %83 = vector.load %arg2[%82, %c0_42, %c0_43] : memref<16x16x1xf32, #tpu.memory_space<vmem>>, vector<1x16x1xf32>
    %84 = vector.shape_cast %83 : vector<1x16x1xf32> to vector<16x1xf32>
    %85 = vector.broadcast %84 : vector<16x1xf32> to vector<16x128xf32>
    %86 = arith.mulf %81, %85 : vector<16x128xf32>
    %87 = arith.truncf %86 : vector<16x128xf32> to vector<16x128xbf16>
    %88 = arith.index_cast %c3_i32 : i32 to index
    %c0_44 = arith.constant 0 : index
    %c0_45 = arith.constant 0 : index
    %89 = vector.load %arg7[%88, %c0_44, %c0_45] : memref<16x128x128xbf16, #tpu.memory_space<vmem>>, vector<1x128x128xbf16>
    %90 = vector.shape_cast %89 : vector<1x128x128xbf16> to vector<128x128xbf16>
    %cst_46 = arith.constant dense<0.000000e+00> : vector<16x128xf32>
    %91 = tpu.matmul %87, %90, %cst_46 {dimension_numbers = #tpu.dot_dimension_numbers<[1], [0], [0], [1], [0, 0, 1, 1], [], []>} : vector<16x128xbf16>, vector<128x128xbf16>, vector<16x128xf32> -> vector<16x128xf32>
    %92 = arith.addf %72, %91 : vector<16x128xf32>
    %c4_i32 = arith.constant 4 : i32
    %93 = arith.truncf %81 : vector<16x128xf32> to vector<16x128xbf16>
    %cst_47 = arith.constant dense<0.000000e+00> : vector<16x128xf32>
    %94 = tpu.matmul %93, %9, %cst_47 {dimension_numbers = #tpu.dot_dimension_numbers<[1], [0], [0], [1], [0, 0, 1, 1], [], []>} : vector<16x128xbf16>, vector<128x128xbf16>, vector<16x128xf32> -> vector<16x128xf32>
    %95 = arith.index_cast %c4_i32 : i32 to index
    %c0_48 = arith.constant 0 : index
    %c0_49 = arith.constant 0 : index
    %96 = vector.load %arg10[%95, %c0_48, %c0_49] : memref<16x16x128xf32, #tpu.memory_space<vmem>>, vector<1x16x128xf32>
    %97 = vector.shape_cast %96 : vector<1x16x128xf32> to vector<16x128xf32>
    %98 = arith.addf %97, %94 : vector<16x128xf32>
    %99 = vector.broadcast %10 : vector<1x128xf32> to vector<16x128xf32>
    %100 = arith.addf %98, %99 : vector<16x128xf32>
    %101 = math.tanh %100 : vector<16x128xf32>
    %102 = arith.index_cast %c4_i32 : i32 to index
    %c0_50 = arith.constant 0 : index
    %c0_51 = arith.constant 0 : index
    %103 = vector.load %arg2[%102, %c0_50, %c0_51] : memref<16x16x1xf32, #tpu.memory_space<vmem>>, vector<1x16x1xf32>
    %104 = vector.shape_cast %103 : vector<1x16x1xf32> to vector<16x1xf32>
    %105 = vector.broadcast %104 : vector<16x1xf32> to vector<16x128xf32>
    %106 = arith.mulf %101, %105 : vector<16x128xf32>
    %107 = arith.truncf %106 : vector<16x128xf32> to vector<16x128xbf16>
    %108 = arith.index_cast %c4_i32 : i32 to index
    %c0_52 = arith.constant 0 : index
    %c0_53 = arith.constant 0 : index
    %109 = vector.load %arg7[%108, %c0_52, %c0_53] : memref<16x128x128xbf16, #tpu.memory_space<vmem>>, vector<1x128x128xbf16>
    %110 = vector.shape_cast %109 : vector<1x128x128xbf16> to vector<128x128xbf16>
    %cst_54 = arith.constant dense<0.000000e+00> : vector<16x128xf32>
    %111 = tpu.matmul %107, %110, %cst_54 {dimension_numbers = #tpu.dot_dimension_numbers<[1], [0], [0], [1], [0, 0, 1, 1], [], []>} : vector<16x128xbf16>, vector<128x128xbf16>, vector<16x128xf32> -> vector<16x128xf32>
    %112 = arith.addf %92, %111 : vector<16x128xf32>
    %c5_i32 = arith.constant 5 : i32
    %113 = arith.truncf %101 : vector<16x128xf32> to vector<16x128xbf16>
    %cst_55 = arith.constant dense<0.000000e+00> : vector<16x128xf32>
    %114 = tpu.matmul %113, %9, %cst_55 {dimension_numbers = #tpu.dot_dimension_numbers<[1], [0], [0], [1], [0, 0, 1, 1], [], []>} : vector<16x128xbf16>, vector<128x128xbf16>, vector<16x128xf32> -> vector<16x128xf32>
    %115 = arith.index_cast %c5_i32 : i32 to index
    %c0_56 = arith.constant 0 : index
    %c0_57 = arith.constant 0 : index
    %116 = vector.load %arg10[%115, %c0_56, %c0_57] : memref<16x16x128xf32, #tpu.memory_space<vmem>>, vector<1x16x128xf32>
    %117 = vector.shape_cast %116 : vector<1x16x128xf32> to vector<16x128xf32>
    %118 = arith.addf %117, %114 : vector<16x128xf32>
    %119 = vector.broadcast %10 : vector<1x128xf32> to vector<16x128xf32>
    %120 = arith.addf %118, %119 : vector<16x128xf32>
    %121 = math.tanh %120 : vector<16x128xf32>
    %122 = arith.index_cast %c5_i32 : i32 to index
    %c0_58 = arith.constant 0 : index
    %c0_59 = arith.constant 0 : index
    %123 = vector.load %arg2[%122, %c0_58, %c0_59] : memref<16x16x1xf32, #tpu.memory_space<vmem>>, vector<1x16x1xf32>
    %124 = vector.shape_cast %123 : vector<1x16x1xf32> to vector<16x1xf32>
    %125 = vector.broadcast %124 : vector<16x1xf32> to vector<16x128xf32>
    %126 = arith.mulf %121, %125 : vector<16x128xf32>
    %127 = arith.truncf %126 : vector<16x128xf32> to vector<16x128xbf16>
    %128 = arith.index_cast %c5_i32 : i32 to index
    %c0_60 = arith.constant 0 : index
    %c0_61 = arith.constant 0 : index
    %129 = vector.load %arg7[%128, %c0_60, %c0_61] : memref<16x128x128xbf16, #tpu.memory_space<vmem>>, vector<1x128x128xbf16>
    %130 = vector.shape_cast %129 : vector<1x128x128xbf16> to vector<128x128xbf16>
    %cst_62 = arith.constant dense<0.000000e+00> : vector<16x128xf32>
    %131 = tpu.matmul %127, %130, %cst_62 {dimension_numbers = #tpu.dot_dimension_numbers<[1], [0], [0], [1], [0, 0, 1, 1], [], []>} : vector<16x128xbf16>, vector<128x128xbf16>, vector<16x128xf32> -> vector<16x128xf32>
    %132 = arith.addf %112, %131 : vector<16x128xf32>
    %c6_i32 = arith.constant 6 : i32
    %133 = arith.truncf %121 : vector<16x128xf32> to vector<16x128xbf16>
    %cst_63 = arith.constant dense<0.000000e+00> : vector<16x128xf32>
    %134 = tpu.matmul %133, %9, %cst_63 {dimension_numbers = #tpu.dot_dimension_numbers<[1], [0], [0], [1], [0, 0, 1, 1], [], []>} : vector<16x128xbf16>, vector<128x128xbf16>, vector<16x128xf32> -> vector<16x128xf32>
    %135 = arith.index_cast %c6_i32 : i32 to index
    %c0_64 = arith.constant 0 : index
    %c0_65 = arith.constant 0 : index
    %136 = vector.load %arg10[%135, %c0_64, %c0_65] : memref<16x16x128xf32, #tpu.memory_space<vmem>>, vector<1x16x128xf32>
    %137 = vector.shape_cast %136 : vector<1x16x128xf32> to vector<16x128xf32>
    %138 = arith.addf %137, %134 : vector<16x128xf32>
    %139 = vector.broadcast %10 : vector<1x128xf32> to vector<16x128xf32>
    %140 = arith.addf %138, %139 : vector<16x128xf32>
    %141 = math.tanh %140 : vector<16x128xf32>
    %142 = arith.index_cast %c6_i32 : i32 to index
    %c0_66 = arith.constant 0 : index
    %c0_67 = arith.constant 0 : index
    %143 = vector.load %arg2[%142, %c0_66, %c0_67] : memref<16x16x1xf32, #tpu.memory_space<vmem>>, vector<1x16x1xf32>
    %144 = vector.shape_cast %143 : vector<1x16x1xf32> to vector<16x1xf32>
    %145 = vector.broadcast %144 : vector<16x1xf32> to vector<16x128xf32>
    %146 = arith.mulf %141, %145 : vector<16x128xf32>
    %147 = arith.truncf %146 : vector<16x128xf32> to vector<16x128xbf16>
    %148 = arith.index_cast %c6_i32 : i32 to index
    %c0_68 = arith.constant 0 : index
    %c0_69 = arith.constant 0 : index
    %149 = vector.load %arg7[%148, %c0_68, %c0_69] : memref<16x128x128xbf16, #tpu.memory_space<vmem>>, vector<1x128x128xbf16>
    %150 = vector.shape_cast %149 : vector<1x128x128xbf16> to vector<128x128xbf16>
    %cst_70 = arith.constant dense<0.000000e+00> : vector<16x128xf32>
    %151 = tpu.matmul %147, %150, %cst_70 {dimension_numbers = #tpu.dot_dimension_numbers<[1], [0], [0], [1], [0, 0, 1, 1], [], []>} : vector<16x128xbf16>, vector<128x128xbf16>, vector<16x128xf32> -> vector<16x128xf32>
    %152 = arith.addf %132, %151 : vector<16x128xf32>
    %c7_i32 = arith.constant 7 : i32
    %153 = arith.truncf %141 : vector<16x128xf32> to vector<16x128xbf16>
    %cst_71 = arith.constant dense<0.000000e+00> : vector<16x128xf32>
    %154 = tpu.matmul %153, %9, %cst_71 {dimension_numbers = #tpu.dot_dimension_numbers<[1], [0], [0], [1], [0, 0, 1, 1], [], []>} : vector<16x128xbf16>, vector<128x128xbf16>, vector<16x128xf32> -> vector<16x128xf32>
    %155 = arith.index_cast %c7_i32 : i32 to index
    %c0_72 = arith.constant 0 : index
    %c0_73 = arith.constant 0 : index
    %156 = vector.load %arg10[%155, %c0_72, %c0_73] : memref<16x16x128xf32, #tpu.memory_space<vmem>>, vector<1x16x128xf32>
    %157 = vector.shape_cast %156 : vector<1x16x128xf32> to vector<16x128xf32>
    %158 = arith.addf %157, %154 : vector<16x128xf32>
    %159 = vector.broadcast %10 : vector<1x128xf32> to vector<16x128xf32>
    %160 = arith.addf %158, %159 : vector<16x128xf32>
    %161 = math.tanh %160 : vector<16x128xf32>
    %162 = arith.index_cast %c7_i32 : i32 to index
    %c0_74 = arith.constant 0 : index
    %c0_75 = arith.constant 0 : index
    %163 = vector.load %arg2[%162, %c0_74, %c0_75] : memref<16x16x1xf32, #tpu.memory_space<vmem>>, vector<1x16x1xf32>
    %164 = vector.shape_cast %163 : vector<1x16x1xf32> to vector<16x1xf32>
    %165 = vector.broadcast %164 : vector<16x1xf32> to vector<16x128xf32>
    %166 = arith.mulf %161, %165 : vector<16x128xf32>
    %167 = arith.truncf %166 : vector<16x128xf32> to vector<16x128xbf16>
    %168 = arith.index_cast %c7_i32 : i32 to index
    %c0_76 = arith.constant 0 : index
    %c0_77 = arith.constant 0 : index
    %169 = vector.load %arg7[%168, %c0_76, %c0_77] : memref<16x128x128xbf16, #tpu.memory_space<vmem>>, vector<1x128x128xbf16>
    %170 = vector.shape_cast %169 : vector<1x128x128xbf16> to vector<128x128xbf16>
    %cst_78 = arith.constant dense<0.000000e+00> : vector<16x128xf32>
    %171 = tpu.matmul %167, %170, %cst_78 {dimension_numbers = #tpu.dot_dimension_numbers<[1], [0], [0], [1], [0, 0, 1, 1], [], []>} : vector<16x128xbf16>, vector<128x128xbf16>, vector<16x128xf32> -> vector<16x128xf32>
    %172 = arith.addf %152, %171 : vector<16x128xf32>
    %c8_i32 = arith.constant 8 : i32
    %173 = arith.truncf %161 : vector<16x128xf32> to vector<16x128xbf16>
    %cst_79 = arith.constant dense<0.000000e+00> : vector<16x128xf32>
    %174 = tpu.matmul %173, %9, %cst_79 {dimension_numbers = #tpu.dot_dimension_numbers<[1], [0], [0], [1], [0, 0, 1, 1], [], []>} : vector<16x128xbf16>, vector<128x128xbf16>, vector<16x128xf32> -> vector<16x128xf32>
    %175 = arith.index_cast %c8_i32 : i32 to index
    %c0_80 = arith.constant 0 : index
    %c0_81 = arith.constant 0 : index
    %176 = vector.load %arg10[%175, %c0_80, %c0_81] : memref<16x16x128xf32, #tpu.memory_space<vmem>>, vector<1x16x128xf32>
    %177 = vector.shape_cast %176 : vector<1x16x128xf32> to vector<16x128xf32>
    %178 = arith.addf %177, %174 : vector<16x128xf32>
    %179 = vector.broadcast %10 : vector<1x128xf32> to vector<16x128xf32>
    %180 = arith.addf %178, %179 : vector<16x128xf32>
    %181 = math.tanh %180 : vector<16x128xf32>
    %182 = arith.index_cast %c8_i32 : i32 to index
    %c0_82 = arith.constant 0 : index
    %c0_83 = arith.constant 0 : index
    %183 = vector.load %arg2[%182, %c0_82, %c0_83] : memref<16x16x1xf32, #tpu.memory_space<vmem>>, vector<1x16x1xf32>
    %184 = vector.shape_cast %183 : vector<1x16x1xf32> to vector<16x1xf32>
    %185 = vector.broadcast %184 : vector<16x1xf32> to vector<16x128xf32>
    %186 = arith.mulf %181, %185 : vector<16x128xf32>
    %187 = arith.truncf %186 : vector<16x128xf32> to vector<16x128xbf16>
    %188 = arith.index_cast %c8_i32 : i32 to index
    %c0_84 = arith.constant 0 : index
    %c0_85 = arith.constant 0 : index
    %189 = vector.load %arg7[%188, %c0_84, %c0_85] : memref<16x128x128xbf16, #tpu.memory_space<vmem>>, vector<1x128x128xbf16>
    %190 = vector.shape_cast %189 : vector<1x128x128xbf16> to vector<128x128xbf16>
    %cst_86 = arith.constant dense<0.000000e+00> : vector<16x128xf32>
    %191 = tpu.matmul %187, %190, %cst_86 {dimension_numbers = #tpu.dot_dimension_numbers<[1], [0], [0], [1], [0, 0, 1, 1], [], []>} : vector<16x128xbf16>, vector<128x128xbf16>, vector<16x128xf32> -> vector<16x128xf32>
    %192 = arith.addf %172, %191 : vector<16x128xf32>
    %c9_i32 = arith.constant 9 : i32
    %193 = arith.truncf %181 : vector<16x128xf32> to vector<16x128xbf16>
    %cst_87 = arith.constant dense<0.000000e+00> : vector<16x128xf32>
    %194 = tpu.matmul %193, %9, %cst_87 {dimension_numbers = #tpu.dot_dimension_numbers<[1], [0], [0], [1], [0, 0, 1, 1], [], []>} : vector<16x128xbf16>, vector<128x128xbf16>, vector<16x128xf32> -> vector<16x128xf32>
    %195 = arith.index_cast %c9_i32 : i32 to index
    %c0_88 = arith.constant 0 : index
    %c0_89 = arith.constant 0 : index
    %196 = vector.load %arg10[%195, %c0_88, %c0_89] : memref<16x16x128xf32, #tpu.memory_space<vmem>>, vector<1x16x128xf32>
    %197 = vector.shape_cast %196 : vector<1x16x128xf32> to vector<16x128xf32>
    %198 = arith.addf %197, %194 : vector<16x128xf32>
    %199 = vector.broadcast %10 : vector<1x128xf32> to vector<16x128xf32>
    %200 = arith.addf %198, %199 : vector<16x128xf32>
    %201 = math.tanh %200 : vector<16x128xf32>
    %202 = arith.index_cast %c9_i32 : i32 to index
    %c0_90 = arith.constant 0 : index
    %c0_91 = arith.constant 0 : index
    %203 = vector.load %arg2[%202, %c0_90, %c0_91] : memref<16x16x1xf32, #tpu.memory_space<vmem>>, vector<1x16x1xf32>
    %204 = vector.shape_cast %203 : vector<1x16x1xf32> to vector<16x1xf32>
    %205 = vector.broadcast %204 : vector<16x1xf32> to vector<16x128xf32>
    %206 = arith.mulf %201, %205 : vector<16x128xf32>
    %207 = arith.truncf %206 : vector<16x128xf32> to vector<16x128xbf16>
    %208 = arith.index_cast %c9_i32 : i32 to index
    %c0_92 = arith.constant 0 : index
    %c0_93 = arith.constant 0 : index
    %209 = vector.load %arg7[%208, %c0_92, %c0_93] : memref<16x128x128xbf16, #tpu.memory_space<vmem>>, vector<1x128x128xbf16>
    %210 = vector.shape_cast %209 : vector<1x128x128xbf16> to vector<128x128xbf16>
    %cst_94 = arith.constant dense<0.000000e+00> : vector<16x128xf32>
    %211 = tpu.matmul %207, %210, %cst_94 {dimension_numbers = #tpu.dot_dimension_numbers<[1], [0], [0], [1], [0, 0, 1, 1], [], []>} : vector<16x128xbf16>, vector<128x128xbf16>, vector<16x128xf32> -> vector<16x128xf32>
    %212 = arith.addf %192, %211 : vector<16x128xf32>
    %c10_i32 = arith.constant 10 : i32
    %213 = arith.truncf %201 : vector<16x128xf32> to vector<16x128xbf16>
    %cst_95 = arith.constant dense<0.000000e+00> : vector<16x128xf32>
    %214 = tpu.matmul %213, %9, %cst_95 {dimension_numbers = #tpu.dot_dimension_numbers<[1], [0], [0], [1], [0, 0, 1, 1], [], []>} : vector<16x128xbf16>, vector<128x128xbf16>, vector<16x128xf32> -> vector<16x128xf32>
    %215 = arith.index_cast %c10_i32 : i32 to index
    %c0_96 = arith.constant 0 : index
    %c0_97 = arith.constant 0 : index
    %216 = vector.load %arg10[%215, %c0_96, %c0_97] : memref<16x16x128xf32, #tpu.memory_space<vmem>>, vector<1x16x128xf32>
    %217 = vector.shape_cast %216 : vector<1x16x128xf32> to vector<16x128xf32>
    %218 = arith.addf %217, %214 : vector<16x128xf32>
    %219 = vector.broadcast %10 : vector<1x128xf32> to vector<16x128xf32>
    %220 = arith.addf %218, %219 : vector<16x128xf32>
    %221 = math.tanh %220 : vector<16x128xf32>
    %222 = arith.index_cast %c10_i32 : i32 to index
    %c0_98 = arith.constant 0 : index
    %c0_99 = arith.constant 0 : index
    %223 = vector.load %arg2[%222, %c0_98, %c0_99] : memref<16x16x1xf32, #tpu.memory_space<vmem>>, vector<1x16x1xf32>
    %224 = vector.shape_cast %223 : vector<1x16x1xf32> to vector<16x1xf32>
    %225 = vector.broadcast %224 : vector<16x1xf32> to vector<16x128xf32>
    %226 = arith.mulf %221, %225 : vector<16x128xf32>
    %227 = arith.truncf %226 : vector<16x128xf32> to vector<16x128xbf16>
    %228 = arith.index_cast %c10_i32 : i32 to index
    %c0_100 = arith.constant 0 : index
    %c0_101 = arith.constant 0 : index
    %229 = vector.load %arg7[%228, %c0_100, %c0_101] : memref<16x128x128xbf16, #tpu.memory_space<vmem>>, vector<1x128x128xbf16>
    %230 = vector.shape_cast %229 : vector<1x128x128xbf16> to vector<128x128xbf16>
    %cst_102 = arith.constant dense<0.000000e+00> : vector<16x128xf32>
    %231 = tpu.matmul %227, %230, %cst_102 {dimension_numbers = #tpu.dot_dimension_numbers<[1], [0], [0], [1], [0, 0, 1, 1], [], []>} : vector<16x128xbf16>, vector<128x128xbf16>, vector<16x128xf32> -> vector<16x128xf32>
    %232 = arith.addf %212, %231 : vector<16x128xf32>
    %c11_i32 = arith.constant 11 : i32
    %233 = arith.truncf %221 : vector<16x128xf32> to vector<16x128xbf16>
    %cst_103 = arith.constant dense<0.000000e+00> : vector<16x128xf32>
    %234 = tpu.matmul %233, %9, %cst_103 {dimension_numbers = #tpu.dot_dimension_numbers<[1], [0], [0], [1], [0, 0, 1, 1], [], []>} : vector<16x128xbf16>, vector<128x128xbf16>, vector<16x128xf32> -> vector<16x128xf32>
    %235 = arith.index_cast %c11_i32 : i32 to index
    %c0_104 = arith.constant 0 : index
    %c0_105 = arith.constant 0 : index
    %236 = vector.load %arg10[%235, %c0_104, %c0_105] : memref<16x16x128xf32, #tpu.memory_space<vmem>>, vector<1x16x128xf32>
    %237 = vector.shape_cast %236 : vector<1x16x128xf32> to vector<16x128xf32>
    %238 = arith.addf %237, %234 : vector<16x128xf32>
    %239 = vector.broadcast %10 : vector<1x128xf32> to vector<16x128xf32>
    %240 = arith.addf %238, %239 : vector<16x128xf32>
    %241 = math.tanh %240 : vector<16x128xf32>
    %242 = arith.index_cast %c11_i32 : i32 to index
    %c0_106 = arith.constant 0 : index
    %c0_107 = arith.constant 0 : index
    %243 = vector.load %arg2[%242, %c0_106, %c0_107] : memref<16x16x1xf32, #tpu.memory_space<vmem>>, vector<1x16x1xf32>
    %244 = vector.shape_cast %243 : vector<1x16x1xf32> to vector<16x1xf32>
    %245 = vector.broadcast %244 : vector<16x1xf32> to vector<16x128xf32>
    %246 = arith.mulf %241, %245 : vector<16x128xf32>
    %247 = arith.truncf %246 : vector<16x128xf32> to vector<16x128xbf16>
    %248 = arith.index_cast %c11_i32 : i32 to index
    %c0_108 = arith.constant 0 : index
    %c0_109 = arith.constant 0 : index
    %249 = vector.load %arg7[%248, %c0_108, %c0_109] : memref<16x128x128xbf16, #tpu.memory_space<vmem>>, vector<1x128x128xbf16>
    %250 = vector.shape_cast %249 : vector<1x128x128xbf16> to vector<128x128xbf16>
    %cst_110 = arith.constant dense<0.000000e+00> : vector<16x128xf32>
    %251 = tpu.matmul %247, %250, %cst_110 {dimension_numbers = #tpu.dot_dimension_numbers<[1], [0], [0], [1], [0, 0, 1, 1], [], []>} : vector<16x128xbf16>, vector<128x128xbf16>, vector<16x128xf32> -> vector<16x128xf32>
    %252 = arith.addf %232, %251 : vector<16x128xf32>
    %c12_i32 = arith.constant 12 : i32
    %253 = arith.truncf %241 : vector<16x128xf32> to vector<16x128xbf16>
    %cst_111 = arith.constant dense<0.000000e+00> : vector<16x128xf32>
    %254 = tpu.matmul %253, %9, %cst_111 {dimension_numbers = #tpu.dot_dimension_numbers<[1], [0], [0], [1], [0, 0, 1, 1], [], []>} : vector<16x128xbf16>, vector<128x128xbf16>, vector<16x128xf32> -> vector<16x128xf32>
    %255 = arith.index_cast %c12_i32 : i32 to index
    %c0_112 = arith.constant 0 : index
    %c0_113 = arith.constant 0 : index
    %256 = vector.load %arg10[%255, %c0_112, %c0_113] : memref<16x16x128xf32, #tpu.memory_space<vmem>>, vector<1x16x128xf32>
    %257 = vector.shape_cast %256 : vector<1x16x128xf32> to vector<16x128xf32>
    %258 = arith.addf %257, %254 : vector<16x128xf32>
    %259 = vector.broadcast %10 : vector<1x128xf32> to vector<16x128xf32>
    %260 = arith.addf %258, %259 : vector<16x128xf32>
    %261 = math.tanh %260 : vector<16x128xf32>
    %262 = arith.index_cast %c12_i32 : i32 to index
    %c0_114 = arith.constant 0 : index
    %c0_115 = arith.constant 0 : index
    %263 = vector.load %arg2[%262, %c0_114, %c0_115] : memref<16x16x1xf32, #tpu.memory_space<vmem>>, vector<1x16x1xf32>
    %264 = vector.shape_cast %263 : vector<1x16x1xf32> to vector<16x1xf32>
    %265 = vector.broadcast %264 : vector<16x1xf32> to vector<16x128xf32>
    %266 = arith.mulf %261, %265 : vector<16x128xf32>
    %267 = arith.truncf %266 : vector<16x128xf32> to vector<16x128xbf16>
    %268 = arith.index_cast %c12_i32 : i32 to index
    %c0_116 = arith.constant 0 : index
    %c0_117 = arith.constant 0 : index
    %269 = vector.load %arg7[%268, %c0_116, %c0_117] : memref<16x128x128xbf16, #tpu.memory_space<vmem>>, vector<1x128x128xbf16>
    %270 = vector.shape_cast %269 : vector<1x128x128xbf16> to vector<128x128xbf16>
    %cst_118 = arith.constant dense<0.000000e+00> : vector<16x128xf32>
    %271 = tpu.matmul %267, %270, %cst_118 {dimension_numbers = #tpu.dot_dimension_numbers<[1], [0], [0], [1], [0, 0, 1, 1], [], []>} : vector<16x128xbf16>, vector<128x128xbf16>, vector<16x128xf32> -> vector<16x128xf32>
    %272 = arith.addf %252, %271 : vector<16x128xf32>
    %c13_i32 = arith.constant 13 : i32
    %273 = arith.truncf %261 : vector<16x128xf32> to vector<16x128xbf16>
    %cst_119 = arith.constant dense<0.000000e+00> : vector<16x128xf32>
    %274 = tpu.matmul %273, %9, %cst_119 {dimension_numbers = #tpu.dot_dimension_numbers<[1], [0], [0], [1], [0, 0, 1, 1], [], []>} : vector<16x128xbf16>, vector<128x128xbf16>, vector<16x128xf32> -> vector<16x128xf32>
    %275 = arith.index_cast %c13_i32 : i32 to index
    %c0_120 = arith.constant 0 : index
    %c0_121 = arith.constant 0 : index
    %276 = vector.load %arg10[%275, %c0_120, %c0_121] : memref<16x16x128xf32, #tpu.memory_space<vmem>>, vector<1x16x128xf32>
    %277 = vector.shape_cast %276 : vector<1x16x128xf32> to vector<16x128xf32>
    %278 = arith.addf %277, %274 : vector<16x128xf32>
    %279 = vector.broadcast %10 : vector<1x128xf32> to vector<16x128xf32>
    %280 = arith.addf %278, %279 : vector<16x128xf32>
    %281 = math.tanh %280 : vector<16x128xf32>
    %282 = arith.index_cast %c13_i32 : i32 to index
    %c0_122 = arith.constant 0 : index
    %c0_123 = arith.constant 0 : index
    %283 = vector.load %arg2[%282, %c0_122, %c0_123] : memref<16x16x1xf32, #tpu.memory_space<vmem>>, vector<1x16x1xf32>
    %284 = vector.shape_cast %283 : vector<1x16x1xf32> to vector<16x1xf32>
    %285 = vector.broadcast %284 : vector<16x1xf32> to vector<16x128xf32>
    %286 = arith.mulf %281, %285 : vector<16x128xf32>
    %287 = arith.truncf %286 : vector<16x128xf32> to vector<16x128xbf16>
    %288 = arith.index_cast %c13_i32 : i32 to index
    %c0_124 = arith.constant 0 : index
    %c0_125 = arith.constant 0 : index
    %289 = vector.load %arg7[%288, %c0_124, %c0_125] : memref<16x128x128xbf16, #tpu.memory_space<vmem>>, vector<1x128x128xbf16>
    %290 = vector.shape_cast %289 : vector<1x128x128xbf16> to vector<128x128xbf16>
    %cst_126 = arith.constant dense<0.000000e+00> : vector<16x128xf32>
    %291 = tpu.matmul %287, %290, %cst_126 {dimension_numbers = #tpu.dot_dimension_numbers<[1], [0], [0], [1], [0, 0, 1, 1], [], []>} : vector<16x128xbf16>, vector<128x128xbf16>, vector<16x128xf32> -> vector<16x128xf32>
    %292 = arith.addf %272, %291 : vector<16x128xf32>
    %c14_i32 = arith.constant 14 : i32
    %293 = arith.truncf %281 : vector<16x128xf32> to vector<16x128xbf16>
    %cst_127 = arith.constant dense<0.000000e+00> : vector<16x128xf32>
    %294 = tpu.matmul %293, %9, %cst_127 {dimension_numbers = #tpu.dot_dimension_numbers<[1], [0], [0], [1], [0, 0, 1, 1], [], []>} : vector<16x128xbf16>, vector<128x128xbf16>, vector<16x128xf32> -> vector<16x128xf32>
    %295 = arith.index_cast %c14_i32 : i32 to index
    %c0_128 = arith.constant 0 : index
    %c0_129 = arith.constant 0 : index
    %296 = vector.load %arg10[%295, %c0_128, %c0_129] : memref<16x16x128xf32, #tpu.memory_space<vmem>>, vector<1x16x128xf32>
    %297 = vector.shape_cast %296 : vector<1x16x128xf32> to vector<16x128xf32>
    %298 = arith.addf %297, %294 : vector<16x128xf32>
    %299 = vector.broadcast %10 : vector<1x128xf32> to vector<16x128xf32>
    %300 = arith.addf %298, %299 : vector<16x128xf32>
    %301 = math.tanh %300 : vector<16x128xf32>
    %302 = arith.index_cast %c14_i32 : i32 to index
    %c0_130 = arith.constant 0 : index
    %c0_131 = arith.constant 0 : index
    %303 = vector.load %arg2[%302, %c0_130, %c0_131] : memref<16x16x1xf32, #tpu.memory_space<vmem>>, vector<1x16x1xf32>
    %304 = vector.shape_cast %303 : vector<1x16x1xf32> to vector<16x1xf32>
    %305 = vector.broadcast %304 : vector<16x1xf32> to vector<16x128xf32>
    %306 = arith.mulf %301, %305 : vector<16x128xf32>
    %307 = arith.truncf %306 : vector<16x128xf32> to vector<16x128xbf16>
    %308 = arith.index_cast %c14_i32 : i32 to index
    %c0_132 = arith.constant 0 : index
    %c0_133 = arith.constant 0 : index
    %309 = vector.load %arg7[%308, %c0_132, %c0_133] : memref<16x128x128xbf16, #tpu.memory_space<vmem>>, vector<1x128x128xbf16>
    %310 = vector.shape_cast %309 : vector<1x128x128xbf16> to vector<128x128xbf16>
    %cst_134 = arith.constant dense<0.000000e+00> : vector<16x128xf32>
    %311 = tpu.matmul %307, %310, %cst_134 {dimension_numbers = #tpu.dot_dimension_numbers<[1], [0], [0], [1], [0, 0, 1, 1], [], []>} : vector<16x128xbf16>, vector<128x128xbf16>, vector<16x128xf32> -> vector<16x128xf32>
    %312 = arith.addf %292, %311 : vector<16x128xf32>
    %c15_i32 = arith.constant 15 : i32
    %313 = arith.truncf %301 : vector<16x128xf32> to vector<16x128xbf16>
    %cst_135 = arith.constant dense<0.000000e+00> : vector<16x128xf32>
    %314 = tpu.matmul %313, %9, %cst_135 {dimension_numbers = #tpu.dot_dimension_numbers<[1], [0], [0], [1], [0, 0, 1, 1], [], []>} : vector<16x128xbf16>, vector<128x128xbf16>, vector<16x128xf32> -> vector<16x128xf32>
    %315 = arith.index_cast %c15_i32 : i32 to index
    %c0_136 = arith.constant 0 : index
    %c0_137 = arith.constant 0 : index
    %316 = vector.load %arg10[%315, %c0_136, %c0_137] : memref<16x16x128xf32, #tpu.memory_space<vmem>>, vector<1x16x128xf32>
    %317 = vector.shape_cast %316 : vector<1x16x128xf32> to vector<16x128xf32>
    %318 = arith.addf %317, %314 : vector<16x128xf32>
    %319 = vector.broadcast %10 : vector<1x128xf32> to vector<16x128xf32>
    %320 = arith.addf %318, %319 : vector<16x128xf32>
    %321 = math.tanh %320 : vector<16x128xf32>
    %322 = arith.index_cast %c15_i32 : i32 to index
    %c0_138 = arith.constant 0 : index
    %c0_139 = arith.constant 0 : index
    %323 = vector.load %arg2[%322, %c0_138, %c0_139] : memref<16x16x1xf32, #tpu.memory_space<vmem>>, vector<1x16x1xf32>
    %324 = vector.shape_cast %323 : vector<1x16x1xf32> to vector<16x1xf32>
    %325 = vector.broadcast %324 : vector<16x1xf32> to vector<16x128xf32>
    %326 = arith.mulf %321, %325 : vector<16x128xf32>
    %327 = arith.truncf %326 : vector<16x128xf32> to vector<16x128xbf16>
    %328 = arith.index_cast %c15_i32 : i32 to index
    %c0_140 = arith.constant 0 : index
    %c0_141 = arith.constant 0 : index
    %329 = vector.load %arg7[%328, %c0_140, %c0_141] : memref<16x128x128xbf16, #tpu.memory_space<vmem>>, vector<1x128x128xbf16>
    %330 = vector.shape_cast %329 : vector<1x128x128xbf16> to vector<128x128xbf16>
    %cst_142 = arith.constant dense<0.000000e+00> : vector<16x128xf32>
    %331 = tpu.matmul %327, %330, %cst_142 {dimension_numbers = #tpu.dot_dimension_numbers<[1], [0], [0], [1], [0, 0, 1, 1], [], []>} : vector<16x128xbf16>, vector<128x128xbf16>, vector<16x128xf32> -> vector<16x128xf32>
    %332 = arith.addf %312, %331 : vector<16x128xf32>
    %c16_i32 = arith.constant 16 : i32
    %c0_143 = arith.constant 0 : index
    %c0_144 = arith.constant 0 : index
    %333 = vector.load %arg8[%c0_143, %c0_144] : memref<1x128xf32, #tpu.memory_space<vmem>>, vector<1x128xf32>
    %334 = vector.broadcast %333 : vector<1x128xf32> to vector<16x128xf32>
    %335 = arith.addf %332, %334 : vector<16x128xf32>
    %c0_145 = arith.constant 0 : index
    %c0_146 = arith.constant 0 : index
    %336 = vector.load %arg9[%c0_145, %c0_146] : memref<16x128xf32, #tpu.memory_space<vmem>>, vector<16x128xf32>
    tpu.vector_store %arg9[%c0_145, %c0_146], %335 {strides = array<i32>} : memref<16x128xf32, #tpu.memory_space<vmem>>, vector<16x128xf32>,
    return
  }
  func.func @transform_0(%arg0: i32) -> (i32, i32, i32) {
    %c0_i32 = arith.constant 0 : i32
    %c0_i32_0 = arith.constant 0 : i32
    %c0_i32_1 = arith.constant 0 : i32
    return %c0_i32, %arg0, %c0_i32_0 : i32, i32, i32
  }
  func.func @transform_1(%arg0: i32) -> (i32, i32, i32) {
    %c0_i32 = arith.constant 0 : i32
    %c0_i32_0 = arith.constant 0 : i32
    %c0_i32_1 = arith.constant 0 : i32
    return %c0_i32, %arg0, %c0_i32_0 : i32, i32, i32
  }
  func.func @transform_2(%arg0: i32) -> (i32, i32) {
    %c0_i32 = arith.constant 0 : i32
    %c0_i32_0 = arith.constant 0 : i32
    %c0_i32_1 = arith.constant 0 : i32
    return %c0_i32, %c0_i32_0 : i32, i32
  }
  func.func @transform_3(%arg0: i32) -> (i32, i32) {
    %c0_i32 = arith.constant 0 : i32
    %c0_i32_0 = arith.constant 0 : i32
    %c0_i32_1 = arith.constant 0 : i32
    return %c0_i32, %c0_i32_0 : i32, i32
  }
  func.func @transform_4(%arg0: i32) -> (i32, i32) {
    %c0_i32 = arith.constant 0 : i32
    %c0_i32_0 = arith.constant 0 : i32
    %c0_i32_1 = arith.constant 0 : i32
    return %c0_i32, %c0_i32_0 : i32, i32
  }
  func.func @transform_5(%arg0: i32) -> (i32, i32) {
    %c0_i32 = arith.constant 0 : i32
    %c0_i32_0 = arith.constant 0 : i32
    %c0_i32_1 = arith.constant 0 : i32
    return %c0_i32, %c0_i32_0 : i32, i32
  }
  func.func @transform_6(%arg0: i32) -> (i32, i32, i32) {
    %c0_i32 = arith.constant 0 : i32
    %c0_i32_0 = arith.constant 0 : i32
    %c0_i32_1 = arith.constant 0 : i32
    %c0_i32_2 = arith.constant 0 : i32
    return %c0_i32, %c0_i32_0, %c0_i32_1 : i32, i32, i32
  }
  func.func @transform_7(%arg0: i32) -> (i32, i32) {
    %c0_i32 = arith.constant 0 : i32
    %c0_i32_0 = arith.constant 0 : i32
    %c0_i32_1 = arith.constant 0 : i32
    return %c0_i32, %c0_i32_0 : i32, i32
  }
  func.func @transform_8(%arg0: i32) -> (i32, i32) {
    %c0_i32 = arith.constant 0 : i32
    %c0_i32_0 = arith.constant 0 : i32
    return %arg0, %c0_i32 : i32, i32
  }
}

</mosaic_0001>

<bundles_post_ra>
// kernel: tpu_custom_call.1
= control target key start
LH: loop header
LB: loop body
LE: loop exit
PB: predicated region body
PF: predicated region fallthrough
CT: control target
= control target key end

     0   :  { %13 = vsyncpa [#allocation6], 0  ;;  %s6818_s0 = inlined_call_operand.vmem [shape: bf16[16,32,128], index: 0, kind: input, shape index: {}]   ;;  %s6819_s1 = inlined_call_operand.vmem [shape: f32[16,32,1], index: 1, kind: input, shape index: {}]   ;;  %s6820_s2 = inlined_call_operand.vmem [shape: bf16[128,128], index: 2, kind: input, shape index: {}]   ;;  %s6821_s3 = inlined_call_operand.vmem [shape: f32[1,128], index: 3, kind: input, shape index: {}]   ;;  %s6822_s4 = inlined_call_operand.vmem [shape: bf16[128,128], index: 4, kind: input, shape index: {}]   ;;  %s6823_s5 = inlined_call_operand.vmem [shape: f32[1,128], index: 5, kind: input, shape index: {}]   ;;  %s6824_s6 = inlined_call_operand.hbm [shape: bf16[16,128,128], index: 6, kind: input, shape index: {}]   ;;  %s6825_s7 = inlined_call_operand.vmem [shape: f32[1,128], index: 7, kind: input, shape index: {}]   ;;  %s6826_s8 = inlined_call_operand.hbm [shape: f32[32,128], index: 8, kind: output, shape index: {}]  }
   0x1   :  { %14 = vsyncpa [#allocation7], 0 }
   0x2   :  { %16 = vsyncpa [#allocation7 + $0x1], 0  ;;  %s5714_s27 = smov 0   ;;  %s5716_s28 = smov 0  }
   0x3   :  { %s5718_s29 = smov 0   ;;  %s5720_s30 = smov 0  }
   0x4 LB: > { %s5735_s9 = sadd.s32 4294967295, %s5658_s30   ;;  %s4049_s10 = sadd.s32 4294967294, %s5658_s30   ;;  %s5658_s30 = sphi %s5720_s30, %s6837_s30   ;;  %s5654_s29 = sphi %s5718_s29, %s6836_s29   ;;  %s5650_s28 = sphi %s5716_s28, %s6835_s28   ;;  %s5646_s27 = sphi %s5714_s27, %s6834_s27  }
   0x5   : > { %s5739_s11 = sadd.s32 1, %s5658_s30   ;;  %s29_s12 = sadd.s32 1, %s5654_s29 }
   0x6   : > { %s26_s13 = ssub.s32 %s5658_s30, %s5739_s11  ;;  %p36_p0 = scmp.ne.s32.totalorder %s5654_s29, %s5650_s28 }
   0x7   : > { %p27_p1 = scmp.eq.s32.totalorder %s26_s13, 0  ;;  %p37_p2 = scmp.eq.s32.totalorder %s5658_s30, 0 }
   0x8   : > { %p218_p3 = scmp.eq.s32.totalorder %s5735_s9, 1  ;;  %p223_p4 = scmp.ne.s32.totalorder %s5650_s28, %s5646_s27 }
   0x9   : > { %s5751_s14 = scalar_select %p27_p1, %s5654_s29, %s29_s12  }
   0xa   : > { %p5753_p5 = por %p37_p2, %p36_p0  ;;  %p5757_p6 = por %p218_p3, %p36_p0 }
   0xb   : > { %p224_p7 = scmp.eq.s32.totalorder %s4049_s10, 1  ;;  %p4050_p8 = scmp.ge.s32.totalorder %s5658_s30, 1 }
   0xc   : > { %s6829_s16 = scalar_select %p5757_p6, 1, 0 }
   0xd   : > { %p231_p9 = scmp.lt.s32.totalorder %s5658_s30, 3  ;;  %p5763_p10 = por %p224_p7, %p223_p4 }
   0xe   : > { %p5279_p11 = scmp.eq.s32.totalorder %s5735_s9, 0  ;;  %s5660_s19 = smov [#allocation5]  }
   0xf   : > { %s6830_s17 = scalar_select %p5763_p10, 1, 0 }
  0x10   : > { %p5768_p12 = pnand %p4050_p8, %p231_p9  ;;  %s255_s20 = sshll.u32 %s5660_s19, 4  ;;  %s256_s20 = int_to_ptr.vmem [resolvable:$true] %s255_s20 }
  0x11   : > { %s5579_s21 = scalar_lea.vmem %s256_s20, 16384  ;;  %p5587_p7 = scmp.lt.s32.totalorder %s256_s20, %s256_s20 }
  0x12   : > { %p5271_p13 = pneg %p5768_p12  ;;  %p5580_p2 = scmp.ne.s32.totalorder %s256_s20, %s5579_s21 }
  0x13   : > { %p5588_p10 = scmp.lt.s32.totalorder %s5579_s21, %s5579_s21 }
  0x14   : > { %p5272_p0 = pnand %p5279_p11, %p5271_p13 }
  0x15   : > { %p5589_p6 = por %p5588_p10, %p5587_p7 }
  0x16   : > { %p5570_p1 = pneg %p5272_p0 }
  0x18   : > { %p5582_p3 = pnand %p5580_p2, %p5570_p1 }
  0x1a   : > { %p5583_p4 = pneg %p5582_p3 }
  0x1c   : > { %p5590_p8 = pnand %p5589_p6, %p5583_p4 }
  0x1e   : > { %5593 = shalt.err (!%p5590_p8)
}
  0x1f   : > { %s5661_s22 = smov 64   ;;  %s5662_s23 = smov 4  }
  0x20   : > { %5274 = dma.hbm_to_vmem [thread:$0]  (!%p5272_p0), %s6824_s6, 16384, %s256_s20, [#allocation6], %s5661_s22, %s5661_s22, %s5662_s23  }
  0x21   : > { %p4052_p9 = scmp.ge.s32.totalorder %s5658_s30, 2 }
  0x23   : > { %268 = sbr.rel (%p4052_p9) target bundleno = 72 (0x48), region = 40 }
  0x28   : > { %271 = sbr.rel (!%p5753_p5) target bundleno = 52 (0x34), region = 44  ;;  %s273_s26 = sand.u32 (%p5753_p5), 1, %s5654_s29  }
  0x29   : > { %s4262_s10 = sshll.u32 (%p5753_p5), %s5658_s30, 3  ;;  %s4053_s12 = sshll.u32 (%p5753_p5), %s273_s26, 7 }
  0x2a   : > { %s5789_s21 = scalar_lea.vmem (%p5753_p5), %s6818_s0, %s4262_s10  ;;  %s275_s20 = scalar_lea.vmem (%p5753_p5), [#allocation3], %s4053_s12 }
  0x2b   : > { %v295_v0 = vld [vmem:[%s5789_s21] sm:$0xff] (%p5753_p5)   ;;  %v299_v1 = vld [vmem:[%s5789_s21 + $0x10] sm:$0xff] (%p5753_p5)  }
  0x2c   : > { %v303_v2 = vld [vmem:[%s5789_s21 + $0x20] sm:$0xff] (%p5753_p5)   ;;  %296 = vst [vmem:[%s275_s20] sm:$0xff] (%p5753_p5), %v295_v0   ;;  %300 = vst [vmem:[%s275_s20 + $0x8] sm:$0xff] (%p5753_p5), %v299_v1   ;;  %v307_v3 = vld [vmem:[%s5789_s21 + $0x30] sm:$0xff] (%p5753_p5)  }
  0x2d   : > { %304 = vst [vmem:[%s275_s20 + $0x10] sm:$0xff] %v303_v2   ;;  %v311_v4 = vld [vmem:[%s5789_s21 + $0x40] sm:$0xff]   ;;  %v315_v5 = vld [vmem:[%s5789_s21 + $0x50] sm:$0xff]   ;;  %308 = vst [vmem:[%s275_s20 + $0x18] sm:$0xff] %v307_v3  }
  0x2e   : > { %312 = vst [vmem:[%s275_s20 + $0x20] sm:$0xff] %v311_v4   ;;  %316 = vst [vmem:[%s275_s20 + $0x28] sm:$0xff] %v315_v5   ;;  %v319_v6 = vld [vmem:[%s5789_s21 + $0x60] sm:$0xff]   ;;  %v323_v7 = vld [vmem:[%s5789_s21 + $0x70] sm:$0xff]  }
  0x2f   : > { %v327_v8 = vld [vmem:[%s5789_s21 + $0x80] sm:$0xff]   ;;  %320 = vst [vmem:[%s275_s20 + $0x30] sm:$0xff] %v319_v6   ;;  %324 = vst [vmem:[%s275_s20 + $0x38] sm:$0xff] %v323_v7   ;;  %v331_v9 = vld [vmem:[%s5789_s21 + $0x90] sm:$0xff]  }
  0x30   : > { %328 = vst [vmem:[%s275_s20 + $0x40] sm:$0xff] %v327_v8   ;;  %v335_v10 = vld [vmem:[%s5789_s21 + $0xa0] sm:$0xff]   ;;  %v339_v11 = vld [vmem:[%s5789_s21 + $0xb0] sm:$0xff]   ;;  %332 = vst [vmem:[%s275_s20 + $0x48] sm:$0xff] %v331_v9  }
  0x31   : > { %336 = vst [vmem:[%s275_s20 + $0x50] sm:$0xff] %v335_v10   ;;  %340 = vst [vmem:[%s275_s20 + $0x58] sm:$0xff] %v339_v11   ;;  %v343_v12 = vld [vmem:[%s5789_s21 + $0xc0] sm:$0xff]   ;;  %v347_v13 = vld [vmem:[%s5789_s21 + $0xd0] sm:$0xff]  }
  0x32   : > { %v351_v14 = vld [vmem:[%s5789_s21 + $0xe0] sm:$0xff]   ;;  %344 = vst [vmem:[%s275_s20 + $0x60] sm:$0xff] %v343_v12   ;;  %348 = vst [vmem:[%s275_s20 + $0x68] sm:$0xff] %v347_v13   ;;  %v355_v15 = vld [vmem:[%s5789_s21 + $0xf0] sm:$0xff]  }
  0x33   : > { %352 = vst [vmem:[%s275_s20 + $0x70] sm:$0xff] %v351_v14   ;;  %356 = vst [vmem:[%s275_s20 + $0x78] sm:$0xff] %v355_v15  }
  0x34 PF: > { %446 = sbr.rel (!%p5753_p5) target bundleno = 72 (0x48), region = 85  ;;  %s448_s22 = sand.u32 (%p5753_p5), 1, %s5654_s29  }
  0x35   : > { %s4263_s23 = sshll.u32 (%p5753_p5), %s5658_s30, 4  ;;  %s4056_s24 = sshll.u32 (%p5753_p5), %s448_s22, 8 }
  0x36   : > { %s5814_s10 = scalar_lea.vmem (%p5753_p5), %s6819_s1, %s4263_s23  ;;  %s5819_s15 = scalar_lea.vmem (%p5753_p5), [#allocation4], %s4056_s24 }
  0x37   : > { %v544_v16 = vld [vmem:[%s5814_s10] sm:$0xff] (%p5753_p5)  ;;  %v546_v17 = vld [vmem:[%s5814_s10 + $0x8] sm:$0xff] (%p5753_p5) }
  0x38   : > { %v548_v18 = vld [vmem:[%s5814_s10 + $0x20] sm:$0xff] (%p5753_p5)  ;;  %545 = vst [vmem:[%s5819_s15] sm:$0xff] (%p5753_p5), %v544_v16  ;;  %547 = vst [vmem:[%s5819_s15 + $0x8] sm:$0xff] (%p5753_p5), %v546_v17  ;;  %v550_v19 = vld [vmem:[%s5814_s10 + $0x28] sm:$0xff] (%p5753_p5) }
  0x39   : > { %549 = vst [vmem:[%s5819_s15 + $0x10] sm:$0xff] %v548_v18  ;;  %v552_v20 = vld [vmem:[%s5814_s10 + $0x40] sm:$0xff]  ;;  %v554_v21 = vld [vmem:[%s5814_s10 + $0x48] sm:$0xff]  ;;  %551 = vst [vmem:[%s5819_s15 + $0x18] sm:$0xff] %v550_v19 }
  0x3a   : > { %553 = vst [vmem:[%s5819_s15 + $0x20] sm:$0xff] %v552_v20  ;;  %555 = vst [vmem:[%s5819_s15 + $0x28] sm:$0xff] %v554_v21  ;;  %v556_v22 = vld [vmem:[%s5814_s10 + $0x60] sm:$0xff]  ;;  %v558_v23 = vld [vmem:[%s5814_s10 + $0x68] sm:$0xff] }
  0x3b   : > { %v560_v24 = vld [vmem:[%s5814_s10 + $0x80] sm:$0xff]  ;;  %557 = vst [vmem:[%s5819_s15 + $0x30] sm:$0xff] %v556_v22  ;;  %559 = vst [vmem:[%s5819_s15 + $0x38] sm:$0xff] %v558_v23  ;;  %v562_v25 = vld [vmem:[%s5814_s10 + $0x88] sm:$0xff] }
  0x3c   : > { %561 = vst [vmem:[%s5819_s15 + $0x40] sm:$0xff] %v560_v24  ;;  %v564_v26 = vld [vmem:[%s5814_s10 + $0xa0] sm:$0xff]  ;;  %v566_v27 = vld [vmem:[%s5814_s10 + $0xa8] sm:$0xff]  ;;  %563 = vst [vmem:[%s5819_s15 + $0x48] sm:$0xff] %v562_v25 }
  0x3d   : > { %565 = vst [vmem:[%s5819_s15 + $0x50] sm:$0xff] %v564_v26  ;;  %567 = vst [vmem:[%s5819_s15 + $0x58] sm:$0xff] %v566_v27  ;;  %v568_v28 = vld [vmem:[%s5814_s10 + $0xc0] sm:$0xff]  ;;  %v570_v29 = vld [vmem:[%s5814_s10 + $0xc8] sm:$0xff] }
  0x3e   : > { %v572_v30 = vld [vmem:[%s5814_s10 + $0xe0] sm:$0xff]  ;;  %569 = vst [vmem:[%s5819_s15 + $0x60] sm:$0xff] %v568_v28  ;;  %571 = vst [vmem:[%s5819_s15 + $0x68] sm:$0xff] %v570_v29  ;;  %v574_v31 = vld [vmem:[%s5814_s10 + $0xe8] sm:$0xff] }
  0x3f   : > { %573 = vst [vmem:[%s5819_s15 + $0x70] sm:$0xff] %v572_v30  ;;  %v576_v32 = vld [vmem:[%s5814_s10 + $0x100] sm:$0xff]  ;;  %v578_v33 = vld [vmem:[%s5814_s10 + $0x108] sm:$0xff]  ;;  %575 = vst [vmem:[%s5819_s15 + $0x78] sm:$0xff] %v574_v31 }
  0x40   : > { %577 = vst [vmem:[%s5819_s15 + $0x80] sm:$0xff] %v576_v32  ;;  %579 = vst [vmem:[%s5819_s15 + $0x88] sm:$0xff] %v578_v33  ;;  %v580_v34 = vld [vmem:[%s5814_s10 + $0x120] sm:$0xff]  ;;  %v582_v35 = vld [vmem:[%s5814_s10 + $0x128] sm:$0xff] }
  0x41   : > { %v584_v36 = vld [vmem:[%s5814_s10 + $0x140] sm:$0xff]  ;;  %581 = vst [vmem:[%s5819_s15 + $0x90] sm:$0xff] %v580_v34  ;;  %583 = vst [vmem:[%s5819_s15 + $0x98] sm:$0xff] %v582_v35  ;;  %v586_v37 = vld [vmem:[%s5814_s10 + $0x148] sm:$0xff] }
  0x42   : > { %585 = vst [vmem:[%s5819_s15 + $0xa0] sm:$0xff] %v584_v36  ;;  %v588_v38 = vld [vmem:[%s5814_s10 + $0x160] sm:$0xff]  ;;  %v590_v39 = vld [vmem:[%s5814_s10 + $0x168] sm:$0xff]  ;;  %587 = vst [vmem:[%s5819_s15 + $0xa8] sm:$0xff] %v586_v37 }
  0x43   : > { %589 = vst [vmem:[%s5819_s15 + $0xb0] sm:$0xff] %v588_v38  ;;  %591 = vst [vmem:[%s5819_s15 + $0xb8] sm:$0xff] %v590_v39  ;;  %v592_v40 = vld [vmem:[%s5814_s10 + $0x180] sm:$0xff]  ;;  %v594_v41 = vld [vmem:[%s5814_s10 + $0x188] sm:$0xff] }
  0x44   : > { %v596_v42 = vld [vmem:[%s5814_s10 + $0x1a0] sm:$0xff]  ;;  %593 = vst [vmem:[%s5819_s15 + $0xc0] sm:$0xff] %v592_v40  ;;  %595 = vst [vmem:[%s5819_s15 + $0xc8] sm:$0xff] %v594_v41  ;;  %v598_v43 = vld [vmem:[%s5814_s10 + $0x1a8] sm:$0xff] }
  0x45   : > { %597 = vst [vmem:[%s5819_s15 + $0xd0] sm:$0xff] %v596_v42  ;;  %v600_v44 = vld [vmem:[%s5814_s10 + $0x1c0] sm:$0xff]  ;;  %v602_v45 = vld [vmem:[%s5814_s10 + $0x1c8] sm:$0xff]  ;;  %599 = vst [vmem:[%s5819_s15 + $0xd8] sm:$0xff] %v598_v43 }
  0x46   : > { %601 = vst [vmem:[%s5819_s15 + $0xe0] sm:$0xff] %v600_v44  ;;  %603 = vst [vmem:[%s5819_s15 + $0xe8] sm:$0xff] %v602_v45  ;;  %v604_v46 = vld [vmem:[%s5814_s10 + $0x1e0] sm:$0xff]  ;;  %v606_v47 = vld [vmem:[%s5814_s10 + $0x1e8] sm:$0xff] }
  0x47   : > { %605 = vst [vmem:[%s5819_s15 + $0xf0] sm:$0xff] %v604_v46  ;;  %607 = vst [vmem:[%s5819_s15 + $0xf8] sm:$0xff] %v606_v47 }
  0x48 PF: > { %616 = sbr.rel (%p5768_p12) target bundleno = 3840 (0xf00), region = 123  ;;  %s5885_s12 = sand.u32 (!%p5768_p12), 1, %s5650_s28  }
  0x49   : > { %s4060_s13 = sshll.u32 (!%p5768_p12), %s5885_s12, 7  ;;  %s4061_s19 = sshll.u32 (!%p5768_p12), %s5885_s12, 8 }
  0x4a   : > { %s5889_s21 = scalar_lea.vmem (!%p5768_p12), [#allocation3], %s4060_s13  ;;  %s5891_s20 = scalar_lea.vmem (!%p5768_p12), [#allocation4], %s4061_s19 }
  0x4d   : > { %5637 = dma.done.wait (%p5279_p11), [#allocation6], 16384  }
  0x4e   : > { %5639 = vsyncadd (%p5279_p11), [#allocation6], 4294950912  ;;  %v5663_v48 = vmov 0.0   ;;  %vm5664_vm0 = vmmov 0   ;;  %v5665_v49 = vmov 0   ;;  %v5324_v50 = vld [vmem:[%s6820_s2 + $0x38] sm:$0xff]  }
  0x4f   : > { %4625 = vmatprep.subr.bf16.mxu1 %v5663_v48  ;;  %4641 = vmatprep.mubr.msk.bf16.mxu1 %vm5664_vm0, %v5663_v48  ;;  %v5325_v51 = vld [vmem:[%s6822_s4 + $0x38] sm:$0xff]   ;;  %v5326_v52 = vld [vmem:[%s6820_s2 + $0x30] sm:$0xff]   ;;  %v5328_v54 = vld [vmem:[%s6820_s2 + $0x28] sm:$0xff]   ;;  %s4063_s22 = sshll.u32 %s5885_s12, 4  ;;  %s3938_s13 = scalar_lea.sflag [#allocation7], %s5885_s12 }
  0x50   : > { %5323 = vset.pattern.permute.xlu1 %v5665_v49  ;;  %5322 = vset.pattern.permute.xlu0 %v5665_v49  ;;  %v5327_v53 = vld [vmem:[%s6822_s4 + $0x30] sm:$0xff]   ;;  %v5329_v55 = vld [vmem:[%s6822_s4 + $0x28] sm:$0xff]   ;;  %v5330_v56 = vld [vmem:[%s6820_s2 + $0x20] sm:$0xff]   ;;  %s666_s25 = scalar_lea.vmem [#allocation8], %s4063_s22  ;;  %p6832_p6 = scmp.ne.s32.totalorder %s6829_s16, 0 }
  0x51   : > { %4577 = vmatprep.subr.bf16.mxu0 %v5324_v50  ;;  %4626 = vmatpush3.bf16.msra.mxu1 %v5325_v51  ;;  %v5331_v57 = vld [vmem:[%s6822_s4 + $0x20] sm:$0xff]   ;;  %v5332_v58 = vld [vmem:[%s6820_s2 + $0x18] sm:$0xff]   ;;  %v5334_v60 = vld [vmem:[%s6820_s2 + $0x10] sm:$0xff]   ;;  %s3951_s26 = sshll.u32 %s666_s25, 4  ;;  %s6770_s26 = int_to_ptr.vmem [resolvable:$true] %s3951_s26 }
  0x52   : > { %4578 = vmatpush3.bf16.msra.mxu0 %v5324_v50  ;;  %4627 = vmatprep.subr.bf16.mxu1 %v5663_v48  ;;  %v5333_v59 = vld [vmem:[%s6822_s4 + $0x18] sm:$0xff]   ;;  %v5340_v61 = vld [vmem:[%s5889_s21] sm:$0xff]   ;;  %v5941_v62 = vld [vmem:[%s6822_s4 + $0x10] sm:$0xff]   ;;  %s5594_s19 = scalar_lea.vmem %s6770_s26, 256 }
  0x53   : > { %4579 = vmatprep.subr.bf16.mxu0 %v5326_v52  ;;  %v5336_v63 = vld [vmem:[%s6820_s2 + $0x8] sm:$0xff]   ;;  %4593 = vmatprep.mubr.bf16.mxu0 %v5340_v61  ;;  %v1183_v0 = vld [vmem:[%s5891_s20] sm:$0xff]  ;;  %v4098_v6 = vld [vmem:[%s5891_s20 + $0x10] sm:$0xff]  ;;  %p5595_p5 = scmp.ne.s32.totalorder %s6770_s26, %s5594_s19 }
  0x54   : > { %v1184_v1 = vld [vmem:[%s5891_s20 + $0x8] sm:$0xff]  ;;  %1187 = vperm.xlu1 %5323, %v1183_v0   ;;  %v5338_v3 = vld [vmem:[%s6820_s2] sm:$0xff]   ;;  %1270 = vperm.xlu0 %5322, %v4098_v6   ;;  %v4099_v7 = vld [vmem:[%s5891_s20 + $0x18] sm:$0xff] }
  0x55   : > { %4628 = vmatpush3.bf16.msra.mxu1 %v5327_v53  ;;  %v5952_v2 = vld [vmem:[%s6822_s4 + $0x8] sm:$0xff]   ;;  %v5962_v4 = vld [vmem:[%s6822_s4] sm:$0xff]   ;;  %v4126_v9 = vld [vmem:[%s5891_s20 + $0x30] sm:$0xff]  ;;  %p5596_p10 = pnand %p5595_p5, %p6832_p6 }
  0x56   : > { %4580 = vmatpush3.bf16.msra.mxu0 %v5326_v52  ;;  %4629 = vmatprep.subr.bf16.mxu1 %v5663_v48  ;;  %v5341_v5 = vld [vmem:[%s5889_s21 + $0x8] sm:$0xff]   ;;  %v4116_v8 = vld [vmem:[%s5891_s20 + $0x20] sm:$0xff]  ;;  %v5350_v10 = vld [vmem:[#allocation5 + $0x78] sm:$0xff]  }
  0x57   : > { %4581 = vmatprep.subr.bf16.mxu0 %v5328_v54  ;;  %v5351_v11 = vld [vmem:[%s5889_s21 + $0x10] sm:$0xff]   ;;  %v5352_v12 = vld [vmem:[%s5889_s21 + $0x18] sm:$0xff]   ;;  %v5354_v14 = vld [vmem:[%s5889_s21 + $0x20] sm:$0xff]   ;;  %p5597_p11 = pneg %p5596_p10 }
  0x58   : > { %1192 = vperm.xlu1 %5323, %v1184_v1   ;;  %1275 = vperm.xlu0 %5322, %v4099_v7   ;;  %v5353_v13 = vld [vmem:[#allocation5 + $0x70] sm:$0xff]   ;;  %v4136_v15 = vld [vmem:[%s5891_s20 + $0x40] sm:$0xff]  ;;  %v5356_v16 = vld [vmem:[#allocation5 + $0x68] sm:$0xff]  }
  0x59   : > { %4630 = vmatpush3.bf16.msra.mxu1 %v5329_v55  ;;  %v4146_v17 = vld [vmem:[%s5891_s20 + $0x50] sm:$0xff]  ;;  %v5355_v18 = vld [vmem:[%s5889_s21 + $0x28] sm:$0xff]   ;;  %v4156_v20 = vld [vmem:[%s5891_s20 + $0x60] sm:$0xff] }
  0x5a   : > { %4582 = vmatpush3.bf16.msra.mxu0 %v5328_v54  ;;  %4631 = vmatprep.subr.bf16.mxu1 %v5663_v48  ;;  %v5357_v19 = vld [vmem:[%s5889_s21 + $0x30] sm:$0xff]   ;;  %v5359_v21 = vld [vmem:[#allocation5 + $0x60] sm:$0xff]   ;;  %v5358_v23 = vld [vmem:[%s5889_s21 + $0x38] sm:$0xff]  }
  0x5b   : > { %4583 = vmatprep.subr.bf16.mxu0 %v5330_v56  ;;  %v4166_v22 = vld [vmem:[%s5891_s20 + $0x70] sm:$0xff]  ;;  %v5360_v24 = vld [vmem:[%s5889_s21 + $0x40] sm:$0xff]   ;;  %v5362_v26 = vld [vmem:[#allocation5 + $0x58] sm:$0xff]  }
  0x5c   : > { %1532 = vperm.xlu0 %5322, %v4116_v8   ;;  %v4176_v25 = vld [vmem:[%s5891_s20 + $0x80] sm:$0xff]  ;;  %v4186_v27 = vld [vmem:[%s5891_s20 + $0x90] sm:$0xff]  ;;  %v5361_v28 = vld [vmem:[%s5889_s21 + $0x48] sm:$0xff]  }
  0x5d   : > { %4632 = vmatpush3.bf16.msra.mxu1 %v5331_v57  ;;  %v5363_v29 = vld [vmem:[%s5889_s21 + $0x50] sm:$0xff]   ;;  %v4196_v30 = vld [vmem:[%s5891_s20 + $0xa0] sm:$0xff]  ;;  %v5364_v32 = vld [vmem:[%s5889_s21 + $0x58] sm:$0xff]  }
  0x5e   : > { %4584 = vmatpush3.bf16.msra.mxu0 %v5330_v56  ;;  %4633 = vmatprep.subr.bf16.mxu1 %v5663_v48  ;;  %v4206_v31 = vld [vmem:[%s5891_s20 + $0xb0] sm:$0xff]  ;;  %v4216_v33 = vld [vmem:[%s5891_s20 + $0xc0] sm:$0xff]  ;;  %v5342_v56 = vld [vmem:[#allocation5 + $0x38] sm:$0xff]  }
  0x5f   : > { %4585 = vmatprep.subr.bf16.mxu0 %v5332_v58  ;;  %v4226_v34 = vld [vmem:[%s5891_s20 + $0xd0] sm:$0xff]  ;;  %v4236_v35 = vld [vmem:[%s5891_s20 + $0xe0] sm:$0xff]  ;;  %v5346_v61 = vld [vmem:[#allocation5 + $0x18] sm:$0xff]  }
  0x60   : > { %1707 = vperm.xlu0 %5322, %v4126_v9   ;;  %v4246_v36 = vld [vmem:[%s5891_s20 + $0xf0] sm:$0xff]  ;;  %v6019_v39 = vld [vmem:[%s6821_s3] ss:$0 sm:$0xff]  ;;  %v5348_v1 = vld [vmem:[#allocation5 + $0x8] sm:$0xff]  }
  0x61   : > { %4634 = vmatpush3.bf16.msra.mxu1 %v5333_v59  ;;  %v6027_v45 = vld [vmem:[%s6823_s5] ss:$0 sm:$0xff]  ;;  %v5347_v0 = vld [vmem:[#allocation5 + $0x10] sm:$0xff]  }
  0x62   : > { %4586 = vmatpush3.bf16.msra.mxu0 %v5332_v58  ;;  %4635 = vmatprep.subr.bf16.mxu1 %v5663_v48  ;;  %v5343_v58 = vld [vmem:[#allocation5 + $0x30] sm:$0xff]   ;;  %v5366_v9 = vld [vmem:[%s5889_s21 + $0x60] sm:$0xff]  }
  0x63   : > { %4587 = vmatprep.subr.bf16.mxu0 %v5334_v60 }
  0x64   : > { %1882 = vperm.xlu0 %5322, %v4136_v15   ;;  %v5371_v15 = vld [vmem:[#allocation5 + $0x40] sm:$0xff]  }
  0x65   : > { %4636 = vmatpush3.bf16.msra.mxu1 %v5941_v62 }
  0x66   : > { %4588 = vmatpush3.bf16.msra.mxu0 %v5334_v60  ;;  %4637 = vmatprep.subr.bf16.mxu1 %v5663_v48  ;;  %v5345_v60 = vld [vmem:[#allocation5 + $0x20] sm:$0xff]  }
  0x67   : > { %4589 = vmatprep.subr.bf16.mxu0 %v5336_v63 }
  0x68   : > { %2057 = vperm.xlu0 %5322, %v4146_v17  }
  0x69   : > { %4638 = vmatpush3.bf16.msra.mxu1 %v5952_v2 }
  0x6a   : > { %4590 = vmatpush3.bf16.msra.mxu0 %v5336_v63  ;;  %4639 = vmatprep.subr.bf16.mxu1 %v5663_v48 }
  0x6b   : > { %4591 = vmatprep.subr.bf16.mxu0 %v5338_v3 }
  0x6c   : > { %2232 = vperm.xlu0 %5322, %v4156_v20  }
  0x6d   : > { %4640 = vmatpush3.bf16.msra.mxu1 %v5962_v4 }
  0x6e   : > { %4592 = vmatpush3.bf16.msra.mxu0 %v5338_v3  ;;  %4645 = vmatprep.subr.bf16.mxu1 %v5663_v48 }
  0x6f   : > { %4665 = vmatprep.subr.bf16.mxu0 %v5663_v48 }
  0x70   : > { %4642 = vmatmul.mubr.bf16.vlgmr.msra.gmra.mxu1 %v5665_v49  ;;  %2407 = vperm.xlu0 %5322, %v4166_v22  }
  0x71   : > { %4594 = vmatmul.mubr.bf16.vlgmr.msra.gmra.mxu0 %v5341_v5  ;;  %4646 = vmatpush3.bf16.msra.mxu1 %v5325_v51  ;;  %v5349_v5 = vld [vmem:[#allocation5] sm:$0xff]  }
  0x72   : > { %4661 = vmatprep.mubr.msk.bf16.mxu1 %vm5664_vm0, %v5663_v48  ;;  %4647 = vmatprep.subr.bf16.mxu1 %v5663_v48 }
  0x73   : > { %4666 = vmatpush3.bf16.msra.mxu0 %v5350_v10  ;;  %4597 = vmatprep.mubr.bf16.mxu0 %v5351_v11  ;;  %v5367_v10 = vld [vmem:[%s5889_s21 + $0x68] sm:$0xff]   ;;  %v5365_v11 = vld [vmem:[#allocation5 + $0x50] sm:$0xff]  }
  0x74   : > { %4667 = vmatprep.subr.bf16.mxu0 %v5663_v48  ;;  %2582 = vperm.xlu0 %5322, %v4176_v25  }
  0x75   : > { %4648 = vmatpush3.bf16.msra.mxu1 %v5327_v53 }
  0x76   : > { %4649 = vmatprep.subr.bf16.mxu1 %v5663_v48 }
  0x77   : > { %4668 = vmatpush3.bf16.msra.mxu0 %v5353_v13  ;;  %v5369_v13 = vld [vmem:[%s5889_s21 + $0x70] sm:$0xff]  }
  0x78   : > { %4669 = vmatprep.subr.bf16.mxu0 %v5663_v48  ;;  %2757 = vperm.xlu0 %5322, %v4186_v27  }
  0x79   : > { %4650 = vmatpush3.bf16.msra.mxu1 %v5329_v55  ;;  %4598 = vmatmul.mubr.bf16.gmra.mxu0 %v5352_v12  ;;  %v5368_v12 = vld [vmem:[#allocation5 + $0x48] sm:$0xff]  }
  0x7a   : > { %4651 = vmatprep.subr.bf16.mxu1 %v5663_v48  ;;  %4601 = vmatprep.mubr.bf16.mxu0 %v5354_v14  ;;  %v5370_v14 = vld [vmem:[%s5889_s21 + $0x78] sm:$0xff]   ;;  %s4264_s21 = sshll.u32 %s5735_s9, 8  ;;  %s5666_s9 = smov [#allocation8]  }
  0x7b   : > { %4670 = vmatpush3.bf16.msra.mxu0 %v5356_v16  ;;  %v4117_v16 = vld [vmem:[%s5891_s20 + $0x28] sm:$0xff]  ;;  %s5598_s18 = sshll.u32 %s5666_s9, 4  ;;  %s5599_s18 = int_to_ptr.vmem [resolvable:$false] %s5598_s18 }
  0x7c   : > { %4671 = vmatprep.subr.bf16.mxu0 %v5663_v48  ;;  %2932 = vperm.xlu0 %5322, %v4196_v30   ;;  %s5600_s22 = scalar_lea.vmem %s5599_s18, 512  ;;  %p5601_p12 = scmp.lt.s32.totalorder %s6770_s26, %s5599_s18 }
  0x7d   : > { %4652 = vmatpush3.bf16.msra.mxu1 %v5331_v57  ;;  %1537 = vperm.xlu1 %5323, %v4117_v16   ;;  %p5602_p13 = scmp.lt.s32.totalorder %s5600_s22, %s5594_s19 }
  0x7e   : > { %4653 = vmatprep.subr.bf16.mxu1 %v5663_v48 }
  0x7f   : > { %4672 = vmatpush3.bf16.msra.mxu0 %v5359_v21  ;;  %p5603_p0 = por %p5602_p13, %p5601_p12 }
  0x80   : > { %4673 = vmatprep.subr.bf16.mxu0 %v5663_v48  ;;  %3107 = vperm.xlu0 %5322, %v4206_v31  }
  0x81   : > { %4654 = vmatpush3.bf16.msra.mxu1 %v5333_v59  ;;  %4602 = vmatmul.mubr.bf16.gmra.mxu0 %v5355_v18  ;;  %v5344_v59 = vld [vmem:[#allocation5 + $0x28] sm:$0xff]   ;;  %p5604_p1 = pnand %p5603_p0, %p5597_p11 }
  0x82   : > { %4655 = vmatprep.subr.bf16.mxu1 %v5663_v48  ;;  %4605 = vmatprep.mubr.bf16.mxu0 %v5357_v19 }
  0x83   : > { %4674 = vmatpush3.bf16.msra.mxu0 %v5362_v26 }
  0x84   : > { %4675 = vmatprep.subr.bf16.mxu0 %v5663_v48  ;;  %3282 = vperm.xlu0 %5322, %v4216_v33  }
  0x85   : > { %4656 = vmatpush3.bf16.msra.mxu1 %v5941_v62 }
  0x86   : > { %4657 = vmatprep.subr.bf16.mxu1 %v5663_v48 }
  0x87   : > { %4676 = vmatpush3.bf16.msra.mxu0 %v5365_v11 }
  0x88   : > { %3457 = vperm.xlu0 %5322, %v4226_v34   ;;  %4677 = vmatprep.subr.bf16.mxu0 %v5663_v48 }
  0x89   : > { %4658 = vmatpush3.bf16.msra.mxu1 %v5952_v2  ;;  %4606 = vmatmul.mubr.bf16.gmra.mxu0 %v5358_v23 }
  0x8a   : > { %4659 = vmatprep.subr.bf16.mxu1 %v5663_v48  ;;  %4609 = vmatprep.mubr.bf16.mxu0 %v5360_v24 }
  0x8b   : > { %4678 = vmatpush3.bf16.msra.mxu0 %v5368_v12 }
  0x8c   : > { %3632 = vperm.xlu0 %5322, %v4236_v35   ;;  %4679 = vmatprep.subr.bf16.mxu0 %v5663_v48  ;;  %v6063_v35 = vld [vmem:[%s6822_s4 + $0x38] sm:$0xff]  }
  0x8d   : > { %4660 = vmatpush3.bf16.msra.mxu1 %v5962_v4 }
  0x8e   : > { %4685 = vmatprep.subr.bf16.mxu1 %v5663_v48 }
  0x8f   : > { %4680 = vmatpush3.bf16.msra.mxu0 %v5371_v15 }
  0x90   : > { %3807 = vperm.xlu0 %5322, %v4246_v36   ;;  %4705 = vmatprep.subr.bf16.mxu0 %v5663_v48 }
  0x91   : > { %4610 = vmatmul.mubr.bf16.gmra.mxu0 %v5361_v28 }
  0x92   : > { %4613 = vmatprep.mubr.bf16.mxu0 %v5363_v29 }
  0x99   : > { %4614 = vmatmul.mubr.bf16.gmra.mxu0 %v5364_v32 }
  0x9a   : > { %4617 = vmatprep.mubr.bf16.mxu0 %v5366_v9 }
  0xa1   : > { %4618 = vmatmul.mubr.bf16.gmra.mxu0 %v5367_v10 }
  0xa2   : > { %4621 = vmatprep.mubr.bf16.mxu0 %v5369_v13 }
  0xa9   : > { %4622 = vmatmul.mubr.bf16.gmra.mxu0 %v5370_v14 }
  0xaa   : > { %4681 = vmatprep.mubr.msk.bf16.mxu0 %vm5664_vm0, %v5663_v48 }
  0xcf   : > { %v1188_v63 = vpop.permute.xlu1 %1187  ;;  %v1271_v27 = vpop.permute.xlu0 %1270 }
  0xd3   : > { %v1193_v3 = vpop.permute.xlu1 %1192  ;;  %v1276_v30 = vpop.permute.xlu0 %1275 }
 0x130   : > { %v1162_v37 = vpop.f32.mrf.mxu1 }
 0x131   : > { %v6014_v38 = vpop.f32.mrf.mxu0 }
 0x132   : > { %v4643_v40 = vpop.f32.mrf.mxu1  ;;  %v913_v17 = vadd.f32 %v6014_v38, %v6019_v39 }
 0x133   : > { %v904_v41 = vpop.f32.mrf.mxu0 }
 0x134   : > { %v905_v42 = vadd.f32 %v6019_v39, %v904_v41  ;;  %v1165_v43 = vpop.f32.mrf.mxu1  ;;  %v6083_v41 = vld [vmem:[%s6822_s4 + $0x28] sm:$0xff]  }
 0x135   : > { %v6022_v44 = vpop.f32.mrf.mxu0 }
 0x136   : > { %v1171_v46 = vadd.f32 %v1162_v37, %v905_v42  ;;  %v4644_v47 = vpop.f32.mrf.mxu1  ;;  %v916_v21 = vadd.f32 %v6022_v44, %v6019_v39  ;;  %v6074_v37 = vld [vmem:[%s6822_s4 + $0x30] sm:$0xff]   ;;  %v6097_v44 = vld [vmem:[%s6822_s4 + $0x18] sm:$0xff]  }
 0x137   : > { %v907_v49 = vpop.f32.mrf.mxu0 }
 0x138   : > { %v908_v50 = vadd.f32 %v6019_v39, %v907_v49  ;;  %v1179_v51 = vadd.f32 %v6027_v45, %v1171_v46  ;;  %v5372_v46 = vld [vmem:[#allocation5 + $0xb8] sm:$0xff]  }
 0x139   : > { %v6131_v47 = vpop.f32.mrf.mxu0 }
 0x13a   : > { %v1172_v52 = vadd.f32 %v1165_v43, %v908_v50  ;;  %5484 = vtanh.f32 %v1179_v51  ;;  %v6090_v43 = vld [vmem:[%s6822_s4 + $0x20] sm:$0xff]  }
 0x13b   : > { %v920_v49 = vpop.f32.mrf.mxu0 }
 0x13c   : > { %v1180_v53 = vadd.f32 %v6027_v45, %v1172_v52  ;;  %v5373_v52 = vld [vmem:[#allocation5 + $0xb0] sm:$0xff]  }
 0x13d   : > { %v6133_v50 = vpop.f32.mrf.mxu0 }
 0x13e   : > { %5486 = vtanh.f32 %v1180_v53  ;;  %v5374_v53 = vld [vmem:[#allocation5 + $0xa8] sm:$0xff]  }
 0x13f   : > { %v923_v51 = vpop.f32.mrf.mxu0 }
 0x147   : > { %v5485_v54 = vpop.eup %5484 }
 0x148   : > { %v1195_v7 = vmul.f32 %v5485_v54, %v1188_v63  ;;  %v5379_v63 = vld [vmem:[#allocation5 + $0x80] sm:$0xff]  }
 0x14b   : > { %v5487_v55 = vpop.eup %5486 }
 0x14c   : > { %v1214_v57 = vpack.c.bf16 %v5487_v55, %v5485_v54  ;;  %v1196_v6 = vmul.f32 %v5487_v55, %v1193_v3  ;;  %v5375_v54 = vld [vmem:[#allocation5 + $0xa0] sm:$0xff]   ;;  %v5376_v55 = vld [vmem:[#allocation5 + $0x98] sm:$0xff]  }
 0x14e   : > { %4662 = vmatmul.mubr.bf16.vlgmr.msra.gmra.mxu1 %v1214_v57  ;;  %v1197_v8 = vpack.c.bf16 %v1196_v6, %v1195_v7  ;;  %v5377_v57 = vld [vmem:[#allocation5 + $0x90] sm:$0xff]  }
 0x14f   : > { %4686 = vmatpush3.bf16.msra.mxu1 %v5342_v56  ;;  %4701 = vmatprep.mubr.msk.bf16.mxu1 %vm5664_vm0, %v5663_v48 }
 0x150   : > { %4687 = vmatprep.subr.bf16.mxu1 %v5663_v48 }
 0x153   : > { %4688 = vmatpush3.bf16.msra.mxu1 %v5343_v58 }
 0x154   : > { %4689 = vmatprep.subr.bf16.mxu1 %v5663_v48 }
 0x157   : > { %4690 = vmatpush3.bf16.msra.mxu1 %v5344_v59  ;;  %v5378_v59 = vld [vmem:[#allocation5 + $0x88] sm:$0xff]  }
 0x158   : > { %4691 = vmatprep.subr.bf16.mxu1 %v5663_v48 }
 0x15b   : > { %4692 = vmatpush3.bf16.msra.mxu1 %v5345_v60 }
 0x15c   : > { %4693 = vmatprep.subr.bf16.mxu1 %v5663_v48 }
 0x15f   : > { %4694 = vmatpush3.bf16.msra.mxu1 %v5346_v61 }
 0x160   : > { %4695 = vmatprep.subr.bf16.mxu1 %v5663_v48 }
 0x163   : > { %4696 = vmatpush3.bf16.msra.mxu1 %v5347_v0 }
 0x164   : > { %4697 = vmatprep.subr.bf16.mxu1 %v5663_v48 }
 0x167   : > { %4698 = vmatpush3.bf16.msra.mxu1 %v5348_v1  ;;  %v4127_v1 = vld [vmem:[%s5891_s20 + $0x38] sm:$0xff] }
 0x168   : > { %4699 = vmatprep.subr.bf16.mxu1 %v5663_v48  ;;  %1712 = vperm.xlu1 %5323, %v4127_v1   ;;  %v5382_v1 = vld [vmem:[#allocation5 + $0xe8] sm:$0xff]  }
 0x16b   : > { %4700 = vmatpush3.bf16.msra.mxu1 %v5349_v5 }
 0x16c   : > { %4725 = vmatprep.subr.bf16.mxu1 %v5663_v48 }
 0x16e   : > { %4702 = vmatmul.mubr.bf16.vlgmr.msra.gmra.mxu1 %v1197_v8 }
 0x16f   : > { %4741 = vmatprep.mubr.msk.bf16.mxu1 %vm5664_vm0, %v5663_v48  ;;  %4726 = vmatpush3.bf16.msra.mxu1 %v5372_v46 }
 0x170   : > { %4727 = vmatprep.subr.bf16.mxu1 %v5663_v48 }
 0x173   : > { %4728 = vmatpush3.bf16.msra.mxu1 %v5373_v52  ;;  %v1533_v52 = vpop.permute.xlu0 %1532 }
 0x174   : > { %4729 = vmatprep.subr.bf16.mxu1 %v5663_v48 }
 0x177   : > { %4730 = vmatpush3.bf16.msra.mxu1 %v5374_v53 }
 0x178   : > { %4731 = vmatprep.subr.bf16.mxu1 %v5663_v48 }
 0x17b   : > { %4732 = vmatpush3.bf16.msra.mxu1 %v5375_v54 }
 0x17c   : > { %4733 = vmatprep.subr.bf16.mxu1 %v5663_v48 }
 0x17f   : > { %4734 = vmatpush3.bf16.msra.mxu1 %v5376_v55  ;;  %v5380_v55 = vld [vmem:[#allocation5 + $0xf8] sm:$0xff]  }
 0x180   : > { %4735 = vmatprep.subr.bf16.mxu1 %v5663_v48 }
 0x183   : > { %4736 = vmatpush3.bf16.msra.mxu1 %v5377_v57 }
 0x184   : > { %4737 = vmatprep.subr.bf16.mxu1 %v5663_v48 }
 0x187   : > { %4738 = vmatpush3.bf16.msra.mxu1 %v5378_v59  ;;  %v6226_v59 = vld [vmem:[%s6822_s4] sm:$0xff]  }
 0x188   : > { %4739 = vmatprep.subr.bf16.mxu1 %v5663_v48 }
 0x18b   : > { %4740 = vmatpush3.bf16.msra.mxu1 %v5379_v63  ;;  %v5381_v63 = vld [vmem:[#allocation5 + $0xf0] sm:$0xff]  }
 0x18c   : > { %4765 = vmatprep.subr.bf16.mxu1 %v5663_v48 }
 0x20e   : > { %v1249_v18 = vpop.f32.mrf.mxu1 }
 0x20f   : > { %v1259_v19 = vadd.f32 %v1249_v18, %v913_v17 }
 0x210   : > { %v4663_v20 = vpop.f32.mrf.mxu1 }
 0x211   : > { %v1261_v22 = vadd.f32 %v6027_v45, %v1259_v19 }
 0x212   : > { %v1252_v23 = vpop.f32.mrf.mxu1 }
 0x213   : > { %v1260_v24 = vadd.f32 %v1252_v23, %v916_v21  ;;  %5488 = vtanh.f32 %v1261_v22 }
 0x214   : > { %v4664_v25 = vpop.f32.mrf.mxu1 }
 0x215   : > { %v1262_v26 = vadd.f32 %v6027_v45, %v1260_v24  ;;  %v921_v25 = vadd.f32 %v6019_v39, %v920_v49 }
 0x217   : > { %5490 = vtanh.f32 %v1262_v26 }
 0x220   : > { %v5489_v28 = vpop.eup %5488 }
 0x221   : > { %v1278_v31 = vmul.f32 %v5489_v28, %v1271_v27 }
 0x224   : > { %v5491_v29 = vpop.eup %5490 }
 0x225   : > { %v1279_v32 = vmul.f32 %v5491_v29, %v1276_v30  ;;  %v1476_v33 = vpack.c.bf16 %v5491_v29, %v5489_v28  ;;  %v924_v29 = vadd.f32 %v6019_v39, %v923_v51  ;;  %v6219_v51 = vld [vmem:[%s6822_s4 + $0x8] sm:$0xff]  }
 0x227   : > { %v1280_v34 = vpack.c.bf16 %v1279_v32, %v1278_v31 }
 0x229   : > { %4682 = vmatmul.mubr.bf16.vlgmr.msra.gmra.mxu0 %v1280_v34 }
 0x22a   : > { %4706 = vmatpush3.bf16.msra.mxu0 %v6063_v35  ;;  %4721 = vmatprep.mubr.msk.bf16.mxu0 %vm5664_vm0, %v5663_v48 }
 0x22b   : > { %4707 = vmatprep.subr.bf16.mxu0 %v5663_v48 }
 0x22e   : > { %v6069_v36 = vpop.f32.mrf.mxu1  ;;  %4708 = vmatpush3.bf16.msra.mxu0 %v6074_v37 }
 0x22f   : > { %4709 = vmatprep.subr.bf16.mxu0 %v5663_v48 }
 0x230   : > { %v4703_v38 = vpop.f32.mrf.mxu1 }
 0x232   : > { %v6078_v40 = vpop.f32.mrf.mxu1  ;;  %4710 = vmatpush3.bf16.msra.mxu0 %v6083_v41 }
 0x233   : > { %4711 = vmatprep.subr.bf16.mxu0 %v5663_v48 }
 0x234   : > { %v4704_v42 = vpop.f32.mrf.mxu1 }
 0x235   : > { %v1538_v42 = vpop.permute.xlu1 %1537 }
 0x236   : > { %4712 = vmatpush3.bf16.msra.mxu0 %v6090_v43 }
 0x237   : > { %4713 = vmatprep.subr.bf16.mxu0 %v5663_v48 }
 0x23a   : > { %4714 = vmatpush3.bf16.msra.mxu0 %v6097_v44 }
 0x23b   : > { %4715 = vmatprep.subr.bf16.mxu0 %v5663_v48 }
 0x23e   : > { %4716 = vmatpush3.bf16.msra.mxu0 %v5941_v62  ;;  %v6122_v62 = vld [vmem:[%s6822_s4 + $0x10] sm:$0xff]  }
 0x23f   : > { %4717 = vmatprep.subr.bf16.mxu0 %v5663_v48 }
 0x242   : > { %4718 = vmatpush3.bf16.msra.mxu0 %v5952_v2 }
 0x243   : > { %4719 = vmatprep.subr.bf16.mxu0 %v5663_v48 }
 0x246   : > { %4720 = vmatpush3.bf16.msra.mxu0 %v5962_v4 }
 0x247   : > { %4745 = vmatprep.subr.bf16.mxu0 %v5663_v48 }
 0x249   : > { %4722 = vmatmul.mubr.bf16.vlgmr.msra.gmra.mxu0 %v1476_v33 }
 0x24a   : > { %4746 = vmatpush3.bf16.msra.mxu0 %v6063_v35  ;;  %4761 = vmatprep.mubr.msk.bf16.mxu0 %vm5664_vm0, %v5663_v48 }
 0x24b   : > { %4747 = vmatprep.subr.bf16.mxu0 %v5663_v48 }
 0x24e   : > { %4748 = vmatpush3.bf16.msra.mxu0 %v6074_v37 }
 0x24f   : > { %4749 = vmatprep.subr.bf16.mxu0 %v5663_v48 }
 0x252   : > { %4750 = vmatpush3.bf16.msra.mxu0 %v6083_v41 }
 0x253   : > { %4751 = vmatprep.subr.bf16.mxu0 %v5663_v48 }
 0x256   : > { %4752 = vmatpush3.bf16.msra.mxu0 %v6090_v43 }
 0x257   : > { %4753 = vmatprep.subr.bf16.mxu0 %v5663_v48 }
 0x25a   : > { %4754 = vmatpush3.bf16.msra.mxu0 %v6097_v44 }
 0x25b   : > { %4755 = vmatprep.subr.bf16.mxu0 %v5663_v48 }
 0x25e   : > { %4756 = vmatpush3.bf16.msra.mxu0 %v6122_v62 }
 0x25f   : > { %4757 = vmatprep.subr.bf16.mxu0 %v5663_v48 }
 0x262   : > { %4758 = vmatpush3.bf16.msra.mxu0 %v5952_v2  ;;  %v6136_v2 = vpop.f32.mrf.mxu0 }
 0x263   : > { %4759 = vmatprep.subr.bf16.mxu0 %v5663_v48 }
 0x266   : > { %4760 = vmatpush3.bf16.msra.mxu0 %v5962_v4  ;;  %v6139_v4 = vpop.f32.mrf.mxu0 }
 0x267   : > { %4785 = vmatprep.subr.bf16.mxu0 %v5663_v48 }
 0x268   : > { %v6142_v56 = vpop.f32.mrf.mxu0 }
 0x26a   : > { %v6145_v58 = vpop.f32.mrf.mxu0 }
 0x26c   : > { %v6148_v60 = vpop.f32.mrf.mxu0 }
 0x26e   : > { %v6151_v61 = vpop.f32.mrf.mxu0 }
 0x270   : > { %v6154_v0 = vpop.f32.mrf.mxu0 }
 0x272   : > { %v6157_v3 = vpop.f32.mrf.mxu0 }
 0x274   : > { %v6159_v5 = vpop.f32.mrf.mxu0 }
 0x276   : > { %v6161_v6 = vpop.f32.mrf.mxu0 }
 0x278   : > { %v6163_v7 = vpop.f32.mrf.mxu0 }
 0x27a   : > { %v6165_v8 = vpop.f32.mrf.mxu0 }
 0x27c   : > { %v6167_v9 = vpop.f32.mrf.mxu0 }
 0x27e   : > { %v6169_v10 = vpop.f32.mrf.mxu0 }
 0x280   : > { %v6171_v11 = vpop.f32.mrf.mxu0 }
 0x282   : > { %v6173_v12 = vpop.f32.mrf.mxu0 }
 0x284   : > { %v6175_v13 = vpop.f32.mrf.mxu0 }
 0x286   : > { %v6177_v14 = vpop.f32.mrf.mxu0 }
 0x288   : > { %v6179_v15 = vpop.f32.mrf.mxu0 }
 0x28a   : > { %v6181_v16 = vpop.f32.mrf.mxu0 }
 0x28c   : > { %v6183_v17 = vpop.f32.mrf.mxu0 }
 0x28e   : > { %v6185_v18 = vpop.f32.mrf.mxu0 }
 0x290   : > { %v6187_v19 = vpop.f32.mrf.mxu0 }
 0x292   : > { %v6189_v20 = vpop.f32.mrf.mxu0 }
 0x2e9   : > { %v6191_v21 = vpop.f32.mrf.mxu0 }
 0x2eb   : > { %v4683_v22 = vpop.f32.mrf.mxu0 }
 0x2ec   : > { %v5383_v22 = vld [vmem:[#allocation5 + $0xe0] sm:$0xff]  }
 0x2ed   : > { %v6193_v23 = vpop.f32.mrf.mxu0 }
 0x2ef   : > { %v4684_v24 = vpop.f32.mrf.mxu0 }
 0x2f0   : > { %v5384_v24 = vld [vmem:[#allocation5 + $0xd8] sm:$0xff]  }
 0x309   : > { %v1511_v26 = vpop.f32.mrf.mxu0 }
 0x30a   : > { %v1521_v27 = vadd.f32 %v1511_v26, %v921_v25  ;;  %v5385_v25 = vld [vmem:[#allocation5 + $0xd0] sm:$0xff]   ;;  %v5386_v26 = vld [vmem:[#allocation5 + $0xc8] sm:$0xff]  }
 0x30b   : > { %v4723_v28 = vpop.f32.mrf.mxu0 }
 0x30c   : > { %v1523_v30 = vadd.f32 %v6027_v45, %v1521_v27  ;;  %v5387_v27 = vld [vmem:[#allocation5 + $0xc0] sm:$0xff]   ;;  %v4137_v28 = vld [vmem:[%s5891_s20 + $0x48] sm:$0xff] }
 0x30d   : > { %v1514_v31 = vpop.f32.mrf.mxu0  ;;  %1887 = vperm.xlu1 %5323, %v4137_v28  }
 0x30e   : > { %v1522_v32 = vadd.f32 %v1514_v31, %v924_v29  ;;  %5492 = vtanh.f32 %v1523_v30  ;;  %v929_v29 = vadd.f32 %v6131_v47, %v6019_v39  ;;  %v1470_v31 = vadd.f32 %v6069_v36, %v6191_v21 }
 0x30f   : > { %v4724_v33 = vpop.f32.mrf.mxu0 }
 0x310   : > { %v1524_v34 = vadd.f32 %v6027_v45, %v1522_v32 }
 0x312   : > { %5494 = vtanh.f32 %v1524_v34 }
 0x31b   : > { %v5493_v38 = vpop.eup %5492 }
 0x31c   : > { %v1540_v53 = vmul.f32 %v5493_v38, %v1533_v52 }
 0x31f   : > { %v5495_v46 = vpop.eup %5494 }
 0x320   : > { %v1541_v49 = vmul.f32 %v5495_v46, %v1538_v42  ;;  %v1651_v54 = vpack.c.bf16 %v5495_v46, %v5493_v38  ;;  %v932_v38 = vadd.f32 %v6133_v50, %v6019_v39 }
 0x322   : > { %v1542_v57 = vpack.c.bf16 %v1541_v49, %v1540_v53  ;;  %4762 = vmatmul.mubr.bf16.vlgmr.msra.gmra.mxu0 %v1651_v54  ;;  %v1473_v49 = vadd.f32 %v6078_v40, %v6193_v23  ;;  %v5389_v40 = vld [vmem:[#allocation5 + $0x130] sm:$0xff]   ;;  %v5390_v23 = vld [vmem:[#allocation5 + $0x128] sm:$0xff]  }
 0x323   : > { %4786 = vmatpush3.bf16.msra.mxu0 %v6063_v35  ;;  %4801 = vmatprep.mubr.msk.bf16.mxu0 %vm5664_vm0, %v5663_v48 }
 0x324   : > { %4742 = vmatmul.mubr.bf16.vlgmr.msra.gmra.mxu1 %v1542_v57  ;;  %4787 = vmatprep.subr.bf16.mxu0 %v5663_v48 }
 0x325   : > { %4766 = vmatpush3.bf16.msra.mxu1 %v5380_v55  ;;  %4781 = vmatprep.mubr.msk.bf16.mxu1 %vm5664_vm0, %v5663_v48 }
 0x326   : > { %4767 = vmatprep.subr.bf16.mxu1 %v5663_v48 }
 0x327   : > { %4788 = vmatpush3.bf16.msra.mxu0 %v6074_v37 }
 0x328   : > { %4789 = vmatprep.subr.bf16.mxu0 %v5663_v48 }
 0x329   : > { %4768 = vmatpush3.bf16.msra.mxu1 %v5381_v63  ;;  %v1713_v63 = vpop.permute.xlu1 %1712 }
 0x32a   : > { %4769 = vmatprep.subr.bf16.mxu1 %v5663_v48 }
 0x32b   : > { %4790 = vmatpush3.bf16.msra.mxu0 %v6083_v41 }
 0x32c   : > { %4791 = vmatprep.subr.bf16.mxu0 %v5663_v48 }
 0x32d   : > { %4770 = vmatpush3.bf16.msra.mxu1 %v5382_v1 }
 0x32e   : > { %4771 = vmatprep.subr.bf16.mxu1 %v5663_v48 }
 0x32f   : > { %4792 = vmatpush3.bf16.msra.mxu0 %v6090_v43 }
 0x330   : > { %4793 = vmatprep.subr.bf16.mxu0 %v5663_v48 }
 0x331   : > { %4772 = vmatpush3.bf16.msra.mxu1 %v5383_v22  ;;  %v1708_v22 = vpop.permute.xlu0 %1707 }
 0x332   : > { %4773 = vmatprep.subr.bf16.mxu1 %v5663_v48 }
 0x333   : > { %4794 = vmatpush3.bf16.msra.mxu0 %v6097_v44 }
 0x334   : > { %4795 = vmatprep.subr.bf16.mxu0 %v5663_v48 }
 0x335   : > { %4774 = vmatpush3.bf16.msra.mxu1 %v5384_v24 }
 0x336   : > { %4775 = vmatprep.subr.bf16.mxu1 %v5663_v48 }
 0x337   : > { %4796 = vmatpush3.bf16.msra.mxu0 %v6122_v62 }
 0x338   : > { %4797 = vmatprep.subr.bf16.mxu0 %v5663_v48 }
 0x339   : > { %4776 = vmatpush3.bf16.msra.mxu1 %v5385_v25 }
 0x33a   : > { %4777 = vmatprep.subr.bf16.mxu1 %v5663_v48 }
 0x33b   : > { %4798 = vmatpush3.bf16.msra.mxu0 %v6219_v51 }
 0x33c   : > { %4799 = vmatprep.subr.bf16.mxu0 %v5663_v48 }
 0x33d   : > { %4778 = vmatpush3.bf16.msra.mxu1 %v5386_v26 }
 0x33e   : > { %4779 = vmatprep.subr.bf16.mxu1 %v5663_v48 }
 0x33f   : > { %4800 = vmatpush3.bf16.msra.mxu0 %v6226_v59 }
 0x340   : > { %4825 = vmatprep.subr.bf16.mxu0 %v5663_v48 }
 0x341   : > { %4780 = vmatpush3.bf16.msra.mxu1 %v5387_v27  ;;  %v5388_v27 = vld [vmem:[#allocation5 + $0x138] sm:$0xff]  }
 0x342   : > { %4805 = vmatprep.subr.bf16.mxu1 %v5663_v48 }
 0x3e2   : > { %v1686_v30 = vpop.f32.mrf.mxu0 }
 0x3e3   : > { %v1696_v32 = vadd.f32 %v1686_v30, %v929_v29  ;;  %v5391_v29 = vld [vmem:[#allocation5 + $0x120] sm:$0xff]   ;;  %v5392_v30 = vld [vmem:[#allocation5 + $0x118] sm:$0xff]  }
 0x3e4   : > { %v1642_v33 = vpop.f32.mrf.mxu1  ;;  %v4763_v34 = vpop.f32.mrf.mxu0 }
 0x3e5   : > { %v1698_v42 = vadd.f32 %v6027_v45, %v1696_v32  ;;  %v6245_v46 = vadd.f32 %v1642_v33, %v1470_v31  ;;  %v5393_v31 = vld [vmem:[#allocation5 + $0x110] sm:$0xff]   ;;  %v5394_v32 = vld [vmem:[#allocation5 + $0x108] sm:$0xff]   ;;  %v5395_v33 = vld [vmem:[#allocation5 + $0x100] sm:$0xff]  }
 0x3e6   : > { %v4743_v52 = vpop.f32.mrf.mxu1  ;;  %v1689_v53 = vpop.f32.mrf.mxu0  ;;  %v4147_v34 = vld [vmem:[%s5891_s20 + $0x58] sm:$0xff] }
 0x3e7   : > { %v1697_v47 = vadd.f32 %v1689_v53, %v932_v38  ;;  %5496 = vtanh.f32 %v1698_v42  ;;  %2062 = vperm.xlu1 %5323, %v4147_v34   ;;  %v937_v38 = vadd.f32 %v6019_v39, %v6139_v4  ;;  %v5402_v34 = vld [vmem:[#allocation5 + $0x148] sm:$0xff]  }
 0x3e8   : > { %v1645_v54 = vpop.f32.mrf.mxu1  ;;  %v4764_v55 = vpop.f32.mrf.mxu0 }
 0x3e9   : > { %v1699_v36 = vadd.f32 %v6027_v45, %v1697_v47  ;;  %v6250_v21 = vadd.f32 %v1645_v54, %v1473_v49  ;;  %v940_v47 = vadd.f32 %v6019_v39, %v6145_v58  ;;  %v1888_v58 = vpop.permute.xlu1 %1887 }
 0x3ea   : > { %v4744_v57 = vpop.f32.mrf.mxu1 }
 0x3eb   : > { %5498 = vtanh.f32 %v1699_v36 }
 0x3f4   : > { %v5497_v50 = vpop.eup %5496 }
 0x3f5   : > { %v1715_v24 = vmul.f32 %v5497_v50, %v1708_v22 }
 0x3f8   : > { %v5499_v1 = vpop.eup %5498 }
 0x3f9   : > { %v1716_v25 = vmul.f32 %v5499_v1, %v1713_v63  ;;  %v1826_v26 = vpack.c.bf16 %v5499_v1, %v5497_v50 }
 0x3fb   : > { %v1717_v28 = vpack.c.bf16 %v1716_v25, %v1715_v24  ;;  %4802 = vmatmul.mubr.bf16.vlgmr.msra.gmra.mxu0 %v1826_v26 }
 0x3fc   : > { %4826 = vmatpush3.bf16.msra.mxu0 %v6063_v35  ;;  %4841 = vmatprep.mubr.msk.bf16.mxu0 %vm5664_vm0, %v5663_v48 }
 0x3fd   : > { %4782 = vmatmul.mubr.bf16.vlgmr.msra.gmra.mxu1 %v1717_v28  ;;  %4827 = vmatprep.subr.bf16.mxu0 %v5663_v48 }
 0x3fe   : > { %4806 = vmatpush3.bf16.msra.mxu1 %v5388_v27  ;;  %4821 = vmatprep.mubr.msk.bf16.mxu1 %vm5664_vm0, %v5663_v48  ;;  %v1883_v27 = vpop.permute.xlu0 %1882 }
 0x3ff   : > { %4807 = vmatprep.subr.bf16.mxu1 %v5663_v48 }
 0x400   : > { %4828 = vmatpush3.bf16.msra.mxu0 %v6074_v37 }
 0x401   : > { %4829 = vmatprep.subr.bf16.mxu0 %v5663_v48 }
 0x402   : > { %4808 = vmatpush3.bf16.msra.mxu1 %v5389_v40 }
 0x403   : > { %4809 = vmatprep.subr.bf16.mxu1 %v5663_v48 }
 0x404   : > { %4830 = vmatpush3.bf16.msra.mxu0 %v6083_v41 }
 0x405   : > { %4831 = vmatprep.subr.bf16.mxu0 %v5663_v48 }
 0x406   : > { %4810 = vmatpush3.bf16.msra.mxu1 %v5390_v23  ;;  %v5396_v23 = vld [vmem:[#allocation5 + $0x178] sm:$0xff]  }
 0x407   : > { %4811 = vmatprep.subr.bf16.mxu1 %v5663_v48 }
 0x408   : > { %4832 = vmatpush3.bf16.msra.mxu0 %v6090_v43 }
 0x409   : > { %4833 = vmatprep.subr.bf16.mxu0 %v5663_v48 }
 0x40a   : > { %4812 = vmatpush3.bf16.msra.mxu1 %v5391_v29 }
 0x40b   : > { %4813 = vmatprep.subr.bf16.mxu1 %v5663_v48 }
 0x40c   : > { %4834 = vmatpush3.bf16.msra.mxu0 %v6097_v44 }
 0x40d   : > { %4835 = vmatprep.subr.bf16.mxu0 %v5663_v48 }
 0x40e   : > { %4814 = vmatpush3.bf16.msra.mxu1 %v5392_v30  ;;  %v5398_v30 = vld [vmem:[#allocation5 + $0x168] sm:$0xff]  }
 0x40f   : > { %4815 = vmatprep.subr.bf16.mxu1 %v5663_v48 }
 0x410   : > { %4836 = vmatpush3.bf16.msra.mxu0 %v6122_v62 }
 0x411   : > { %4837 = vmatprep.subr.bf16.mxu0 %v5663_v48 }
 0x412   : > { %4816 = vmatpush3.bf16.msra.mxu1 %v5393_v31  ;;  %v5399_v31 = vld [vmem:[#allocation5 + $0x160] sm:$0xff]  }
 0x413   : > { %4817 = vmatprep.subr.bf16.mxu1 %v5663_v48 }
 0x414   : > { %4838 = vmatpush3.bf16.msra.mxu0 %v6219_v51 }
 0x415   : > { %4839 = vmatprep.subr.bf16.mxu0 %v5663_v48 }
 0x416   : > { %4818 = vmatpush3.bf16.msra.mxu1 %v5394_v32  ;;  %v5400_v32 = vld [vmem:[#allocation5 + $0x158] sm:$0xff]  }
 0x417   : > { %4819 = vmatprep.subr.bf16.mxu1 %v5663_v48 }
 0x418   : > { %4840 = vmatpush3.bf16.msra.mxu0 %v6226_v59 }
 0x419   : > { %4865 = vmatprep.subr.bf16.mxu0 %v5663_v48 }
 0x41a   : > { %4820 = vmatpush3.bf16.msra.mxu1 %v5395_v33  ;;  %v5401_v33 = vld [vmem:[#allocation5 + $0x150] sm:$0xff]  }
 0x41b   : > { %4845 = vmatprep.subr.bf16.mxu1 %v5663_v48 }
 0x4bb   : > { %v1861_v42 = vpop.f32.mrf.mxu0 }
 0x4bc   : > { %v1871_v52 = vadd.f32 %v1861_v42, %v937_v38  ;;  %v5403_v38 = vld [vmem:[#allocation5 + $0x140] sm:$0xff]   ;;  %v4157_v42 = vld [vmem:[%s5891_s20 + $0x68] sm:$0xff] }
 0x4bd   : > { %v1817_v53 = vpop.f32.mrf.mxu1  ;;  %v4803_v49 = vpop.f32.mrf.mxu0  ;;  %2237 = vperm.xlu1 %5323, %v4157_v42   ;;  %v4167_v42 = vld [vmem:[%s5891_s20 + $0x78] sm:$0xff] }
 0x4be   : > { %v1873_v54 = vadd.f32 %v6027_v45, %v1871_v52  ;;  %v6287_v55 = vadd.f32 %v1817_v53, %v6245_v46  ;;  %v945_v52 = vadd.f32 %v6136_v2, %v6019_v39 }
 0x4bf   : > { %v4783_v36 = vpop.f32.mrf.mxu1  ;;  %v1864_v57 = vpop.f32.mrf.mxu0 }
 0x4c0   : > { %v1872_v50 = vadd.f32 %v1864_v57, %v940_v47  ;;  %5500 = vtanh.f32 %v1873_v54  ;;  %v948_v36 = vadd.f32 %v6142_v56, %v6019_v39  ;;  %v2063_v56 = vpop.permute.xlu1 %2062 }
 0x4c1   : > { %v1820_v63 = vpop.f32.mrf.mxu1  ;;  %v4804_v1 = vpop.f32.mrf.mxu0  ;;  %2412 = vperm.xlu1 %5323, %v4167_v42  }
 0x4c2   : > { %v1874_v4 = vadd.f32 %v6027_v45, %v1872_v50  ;;  %v6291_v22 = vadd.f32 %v1820_v63, %v6250_v21  ;;  %v5397_v21 = vld [vmem:[#allocation5 + $0x170] sm:$0xff]  }
 0x4c3   : > { %v4784_v24 = vpop.f32.mrf.mxu1 }
 0x4c4   : > { %5502 = vtanh.f32 %v1874_v4 }
 0x4cd   : > { %v5501_v25 = vpop.eup %5500 }
 0x4ce   : > { %v1890_v28 = vmul.f32 %v5501_v25, %v1883_v27 }
 0x4d1   : > { %v5503_v26 = vpop.eup %5502 }
 0x4d2   : > { %v1891_v46 = vmul.f32 %v5503_v26, %v1888_v58  ;;  %v2001_v40 = vpack.c.bf16 %v5503_v26, %v5501_v25 }
 0x4d4   : > { %v1892_v29 = vpack.c.bf16 %v1891_v46, %v1890_v28  ;;  %4842 = vmatmul.mubr.bf16.vlgmr.msra.gmra.mxu0 %v2001_v40  ;;  %v2058_v46 = vpop.permute.xlu0 %2057 }
 0x4d5   : > { %4866 = vmatpush3.bf16.msra.mxu0 %v6063_v35  ;;  %4881 = vmatprep.mubr.msk.bf16.mxu0 %vm5664_vm0, %v5663_v48 }
 0x4d6   : > { %4822 = vmatmul.mubr.bf16.vlgmr.msra.gmra.mxu1 %v1892_v29  ;;  %4867 = vmatprep.subr.bf16.mxu0 %v5663_v48  ;;  %v5404_v29 = vld [vmem:[#allocation5 + $0x1b8] sm:$0xff]  }
 0x4d7   : > { %4846 = vmatpush3.bf16.msra.mxu1 %v5396_v23  ;;  %4861 = vmatprep.mubr.msk.bf16.mxu1 %vm5664_vm0, %v5663_v48 }
 0x4d8   : > { %4847 = vmatprep.subr.bf16.mxu1 %v5663_v48 }
 0x4d9   : > { %4868 = vmatpush3.bf16.msra.mxu0 %v6074_v37 }
 0x4da   : > { %4869 = vmatprep.subr.bf16.mxu0 %v5663_v48 }
 0x4db   : > { %4848 = vmatpush3.bf16.msra.mxu1 %v5397_v21 }
 0x4dc   : > { %4849 = vmatprep.subr.bf16.mxu1 %v5663_v48 }
 0x4dd   : > { %4870 = vmatpush3.bf16.msra.mxu0 %v6083_v41 }
 0x4de   : > { %4871 = vmatprep.subr.bf16.mxu0 %v5663_v48 }
 0x4df   : > { %4850 = vmatpush3.bf16.msra.mxu1 %v5398_v30  ;;  %v5406_v30 = vld [vmem:[#allocation5 + $0x1a8] sm:$0xff]  }
 0x4e0   : > { %4851 = vmatprep.subr.bf16.mxu1 %v5663_v48 }
 0x4e1   : > { %4872 = vmatpush3.bf16.msra.mxu0 %v6090_v43 }
 0x4e2   : > { %4873 = vmatprep.subr.bf16.mxu0 %v5663_v48 }
 0x4e3   : > { %4852 = vmatpush3.bf16.msra.mxu1 %v5399_v31  ;;  %v5407_v31 = vld [vmem:[#allocation5 + $0x1a0] sm:$0xff]  }
 0x4e4   : > { %4853 = vmatprep.subr.bf16.mxu1 %v5663_v48 }
 0x4e5   : > { %4874 = vmatpush3.bf16.msra.mxu0 %v6097_v44 }
 0x4e6   : > { %4875 = vmatprep.subr.bf16.mxu0 %v5663_v48 }
 0x4e7   : > { %4854 = vmatpush3.bf16.msra.mxu1 %v5400_v32  ;;  %v5408_v32 = vld [vmem:[#allocation5 + $0x198] sm:$0xff]  }
 0x4e8   : > { %4855 = vmatprep.subr.bf16.mxu1 %v5663_v48 }
 0x4e9   : > { %4876 = vmatpush3.bf16.msra.mxu0 %v6122_v62 }
 0x4ea   : > { %4877 = vmatprep.subr.bf16.mxu0 %v5663_v48 }
 0x4eb   : > { %4856 = vmatpush3.bf16.msra.mxu1 %v5401_v33  ;;  %v5409_v33 = vld [vmem:[#allocation5 + $0x190] sm:$0xff]  }
 0x4ec   : > { %4857 = vmatprep.subr.bf16.mxu1 %v5663_v48 }
 0x4ed   : > { %4878 = vmatpush3.bf16.msra.mxu0 %v6219_v51 }
 0x4ee   : > { %4879 = vmatprep.subr.bf16.mxu0 %v5663_v48 }
 0x4ef   : > { %4858 = vmatpush3.bf16.msra.mxu1 %v5402_v34  ;;  %v5410_v34 = vld [vmem:[#allocation5 + $0x188] sm:$0xff]  }
 0x4f0   : > { %4859 = vmatprep.subr.bf16.mxu1 %v5663_v48 }
 0x4f1   : > { %4880 = vmatpush3.bf16.msra.mxu0 %v6226_v59 }
 0x4f2   : > { %4905 = vmatprep.subr.bf16.mxu0 %v5663_v48 }
 0x4f3   : > { %4860 = vmatpush3.bf16.msra.mxu1 %v5403_v38  ;;  %v5411_v38 = vld [vmem:[#allocation5 + $0x180] sm:$0xff]  }
 0x4f4   : > { %4885 = vmatprep.subr.bf16.mxu1 %v5663_v48 }
 0x594   : > { %v2036_v53 = vpop.f32.mrf.mxu0 }
 0x595   : > { %v2046_v49 = vadd.f32 %v2036_v53, %v945_v52  ;;  %v953_v52 = vadd.f32 %v6019_v39, %v6151_v61 }
 0x596   : > { %v1992_v47 = vpop.f32.mrf.mxu1  ;;  %v4843_v54 = vpop.f32.mrf.mxu0 }
 0x597   : > { %v2048_v57 = vadd.f32 %v6027_v45, %v2046_v49  ;;  %v6328_v50 = vadd.f32 %v1992_v47, %v6287_v55 }
 0x598   : > { %v4823_v63 = vpop.f32.mrf.mxu1  ;;  %v2039_v1 = vpop.f32.mrf.mxu0 }
 0x599   : > { %v2047_v4 = vadd.f32 %v2039_v1, %v948_v36  ;;  %5504 = vtanh.f32 %v2048_v57  ;;  %v956_v36 = vadd.f32 %v6019_v39, %v6157_v3  ;;  %v2238_v39 = vpop.permute.xlu1 %2237 }
 0x59a   : > { %v1995_v24 = vpop.f32.mrf.mxu1  ;;  %v4844_v25 = vpop.f32.mrf.mxu0 }
 0x59b   : > { %v2049_v2 = vadd.f32 %v6027_v45, %v2047_v4  ;;  %v6332_v58 = vadd.f32 %v1995_v24, %v6291_v22  ;;  %v5405_v22 = vld [vmem:[#allocation5 + $0x1b0] sm:$0xff]  }
 0x59c   : > { %v4824_v26 = vpop.f32.mrf.mxu1 }
 0x59d   : > { %5506 = vtanh.f32 %v2049_v2 }
 0x5a6   : > { %v5505_v27 = vpop.eup %5504 }
 0x5a7   : > { %v2065_v40 = vmul.f32 %v5505_v27, %v2058_v46 }
 0x5aa   : > { %v5507_v28 = vpop.eup %5506 }
 0x5ab   : > { %v2066_v55 = vmul.f32 %v5507_v28, %v2063_v56  ;;  %v2176_v23 = vpack.c.bf16 %v5507_v28, %v5505_v27  ;;  %v2233_v28 = vpop.permute.xlu0 %2232 }
 0x5ad   : > { %v2067_v21 = vpack.c.bf16 %v2066_v55, %v2065_v40  ;;  %4882 = vmatmul.mubr.bf16.vlgmr.msra.gmra.mxu0 %v2176_v23  ;;  %v5412_v55 = vld [vmem:[#allocation5 + $0x1f8] sm:$0xff]  }
 0x5ae   : > { %4906 = vmatpush3.bf16.msra.mxu0 %v6063_v35  ;;  %4921 = vmatprep.mubr.msk.bf16.mxu0 %vm5664_vm0, %v5663_v48 }
 0x5af   : > { %4862 = vmatmul.mubr.bf16.vlgmr.msra.gmra.mxu1 %v2067_v21  ;;  %4907 = vmatprep.subr.bf16.mxu0 %v5663_v48  ;;  %v5416_v21 = vld [vmem:[#allocation5 + $0x1d8] sm:$0xff]  }
 0x5b0   : > { %4886 = vmatpush3.bf16.msra.mxu1 %v5404_v29  ;;  %4901 = vmatprep.mubr.msk.bf16.mxu1 %vm5664_vm0, %v5663_v48  ;;  %v5415_v29 = vld [vmem:[#allocation5 + $0x1e0] sm:$0xff]  }
 0x5b1   : > { %4887 = vmatprep.subr.bf16.mxu1 %v5663_v48 }
 0x5b2   : > { %4908 = vmatpush3.bf16.msra.mxu0 %v6074_v37 }
 0x5b3   : > { %4909 = vmatprep.subr.bf16.mxu0 %v5663_v48 }
 0x5b4   : > { %4888 = vmatpush3.bf16.msra.mxu1 %v5405_v22  ;;  %v5417_v22 = vld [vmem:[#allocation5 + $0x1d0] sm:$0xff]  }
 0x5b5   : > { %4889 = vmatprep.subr.bf16.mxu1 %v5663_v48 }
 0x5b6   : > { %4910 = vmatpush3.bf16.msra.mxu0 %v6083_v41 }
 0x5b7   : > { %4911 = vmatprep.subr.bf16.mxu0 %v5663_v48 }
 0x5b8   : > { %4890 = vmatpush3.bf16.msra.mxu1 %v5406_v30  ;;  %v5418_v30 = vld [vmem:[#allocation5 + $0x1c8] sm:$0xff]  }
 0x5b9   : > { %4891 = vmatprep.subr.bf16.mxu1 %v5663_v48 }
 0x5ba   : > { %4912 = vmatpush3.bf16.msra.mxu0 %v6090_v43 }
 0x5bb   : > { %4913 = vmatprep.subr.bf16.mxu0 %v5663_v48 }
 0x5bc   : > { %4892 = vmatpush3.bf16.msra.mxu1 %v5407_v31  ;;  %v5419_v31 = vld [vmem:[#allocation5 + $0x1c0] sm:$0xff]  }
 0x5bd   : > { %4893 = vmatprep.subr.bf16.mxu1 %v5663_v48 }
 0x5be   : > { %4914 = vmatpush3.bf16.msra.mxu0 %v6097_v44 }
 0x5bf   : > { %4915 = vmatprep.subr.bf16.mxu0 %v5663_v48 }
 0x5c0   : > { %4894 = vmatpush3.bf16.msra.mxu1 %v5408_v32  ;;  %v4177_v32 = vld [vmem:[%s5891_s20 + $0x88] sm:$0xff] }
 0x5c1   : > { %4895 = vmatprep.subr.bf16.mxu1 %v5663_v48  ;;  %2587 = vperm.xlu1 %5323, %v4177_v32  }
 0x5c2   : > { %4916 = vmatpush3.bf16.msra.mxu0 %v6122_v62 }
 0x5c3   : > { %4917 = vmatprep.subr.bf16.mxu0 %v5663_v48 }
 0x5c4   : > { %4896 = vmatpush3.bf16.msra.mxu1 %v5409_v33  ;;  %v6407_v33 = vld [vmem:[%s6821_s3] ss:$0 sm:$0xff] }
 0x5c5   : > { %4897 = vmatprep.subr.bf16.mxu1 %v5663_v48 }
 0x5c6   : > { %4918 = vmatpush3.bf16.msra.mxu0 %v6219_v51 }
 0x5c7   : > { %4919 = vmatprep.subr.bf16.mxu0 %v5663_v48 }
 0x5c8   : > { %4898 = vmatpush3.bf16.msra.mxu1 %v5410_v34  ;;  %v961_v34 = vadd.f32 %v6407_v33, %v6148_v60 }
 0x5c9   : > { %4899 = vmatprep.subr.bf16.mxu1 %v5663_v48 }
 0x5ca   : > { %4920 = vmatpush3.bf16.msra.mxu0 %v6226_v59 }
 0x5cb   : > { %4945 = vmatprep.subr.bf16.mxu0 %v5663_v48 }
 0x5cc   : > { %4900 = vmatpush3.bf16.msra.mxu1 %v5411_v38 }
 0x5cd   : > { %4925 = vmatprep.subr.bf16.mxu1 %v5663_v48 }
 0x66d   : > { %v2211_v53 = vpop.f32.mrf.mxu0 }
 0x66e   : > { %v2221_v49 = vadd.f32 %v2211_v53, %v953_v52 }
 0x66f   : > { %v2167_v47 = vpop.f32.mrf.mxu1  ;;  %v4883_v54 = vpop.f32.mrf.mxu0 }
 0x670   : > { %v2223_v57 = vadd.f32 %v6027_v45, %v2221_v49  ;;  %v6369_v63 = vadd.f32 %v2167_v47, %v6328_v50  ;;  %v964_v49 = vadd.f32 %v6407_v33, %v6154_v0  ;;  %v6416_v47 = vld [vmem:[%s6823_s5] ss:$0 sm:$0xff] }
 0x671   : > { %v4863_v1 = vpop.f32.mrf.mxu1  ;;  %v2214_v4 = vpop.f32.mrf.mxu0 }
 0x672   : > { %v2222_v24 = vadd.f32 %v2214_v4, %v956_v36  ;;  %5508 = vtanh.f32 %v2223_v57 }
 0x673   : > { %v2170_v25 = vpop.f32.mrf.mxu1  ;;  %v4884_v2 = vpop.f32.mrf.mxu0 }
 0x674   : > { %v2224_v61 = vadd.f32 %v6027_v45, %v2222_v24  ;;  %v6373_v26 = vadd.f32 %v2170_v25, %v6332_v58  ;;  %v5413_v45 = vld [vmem:[#allocation5 + $0x1f0] sm:$0xff]   ;;  %v5414_v58 = vld [vmem:[#allocation5 + $0x1e8] sm:$0xff]  }
 0x675   : > { %v4864_v27 = vpop.f32.mrf.mxu1 }
 0x676   : > { %5510 = vtanh.f32 %v2224_v61  ;;  %v2413_v27 = vpop.permute.xlu1 %2412 }
 0x67f   : > { %v5509_v56 = vpop.eup %5508 }
 0x680   : > { %v2240_v46 = vmul.f32 %v5509_v56, %v2233_v28 }
 0x683   : > { %v5511_v3 = vpop.eup %5510 }
 0x684   : > { %v2241_v50 = vmul.f32 %v5511_v3, %v2238_v39  ;;  %v2351_v40 = vpack.c.bf16 %v5511_v3, %v5509_v56  ;;  %v2408_v39 = vpop.permute.xlu0 %2407 }
 0x686   : > { %v2242_v23 = vpack.c.bf16 %v2241_v50, %v2240_v46  ;;  %4922 = vmatmul.mubr.bf16.vlgmr.msra.gmra.mxu0 %v2351_v40  ;;  %v5420_v46 = vld [vmem:[#allocation5 + $0x238] sm:$0xff]  }
 0x687   : > { %4946 = vmatpush3.bf16.msra.mxu0 %v6063_v35  ;;  %4961 = vmatprep.mubr.msk.bf16.mxu0 %vm5664_vm0, %v5663_v48  ;;  %v4187_v40 = vld [vmem:[%s5891_s20 + $0x98] sm:$0xff] }
 0x688   : > { %4902 = vmatmul.mubr.bf16.vlgmr.msra.gmra.mxu1 %v2242_v23  ;;  %4947 = vmatprep.subr.bf16.mxu0 %v5663_v48 }
 0x689   : > { %4926 = vmatpush3.bf16.msra.mxu1 %v5412_v55  ;;  %4941 = vmatprep.mubr.msk.bf16.mxu1 %vm5664_vm0, %v5663_v48  ;;  %v969_v55 = vadd.f32 %v6407_v33, %v6161_v6 }
 0x68a   : > { %4927 = vmatprep.subr.bf16.mxu1 %v5663_v48  ;;  %2762 = vperm.xlu1 %5323, %v4187_v40   ;;  %v980_v40 = vadd.f32 %v6407_v33, %v6163_v7 }
 0x68b   : > { %4948 = vmatpush3.bf16.msra.mxu0 %v6074_v37 }
 0x68c   : > { %4949 = vmatprep.subr.bf16.mxu0 %v5663_v48 }
 0x68d   : > { %4928 = vmatpush3.bf16.msra.mxu1 %v5413_v45 }
 0x68e   : > { %4929 = vmatprep.subr.bf16.mxu1 %v5663_v48 }
 0x68f   : > { %4950 = vmatpush3.bf16.msra.mxu0 %v6083_v41 }
 0x690   : > { %4951 = vmatprep.subr.bf16.mxu0 %v5663_v48 }
 0x691   : > { %4930 = vmatpush3.bf16.msra.mxu1 %v5414_v58 }
 0x692   : > { %4931 = vmatprep.subr.bf16.mxu1 %v5663_v48 }
 0x693   : > { %4952 = vmatpush3.bf16.msra.mxu0 %v6090_v43 }
 0x694   : > { %4953 = vmatprep.subr.bf16.mxu0 %v5663_v48 }
 0x695   : > { %4932 = vmatpush3.bf16.msra.mxu1 %v5415_v29 }
 0x696   : > { %4933 = vmatprep.subr.bf16.mxu1 %v5663_v48 }
 0x697   : > { %4954 = vmatpush3.bf16.msra.mxu0 %v6097_v44 }
 0x698   : > { %4955 = vmatprep.subr.bf16.mxu0 %v5663_v48 }
 0x699   : > { %4934 = vmatpush3.bf16.msra.mxu1 %v5416_v21  ;;  %v972_v21 = vadd.f32 %v6407_v33, %v6165_v8  ;;  %v2588_v8 = vpop.permute.xlu1 %2587 }
 0x69a   : > { %4935 = vmatprep.subr.bf16.mxu1 %v5663_v48 }
 0x69b   : > { %4956 = vmatpush3.bf16.msra.mxu0 %v6122_v62 }
 0x69c   : > { %4957 = vmatprep.subr.bf16.mxu0 %v5663_v48 }
 0x69d   : > { %4936 = vmatpush3.bf16.msra.mxu1 %v5417_v22 }
 0x69e   : > { %4937 = vmatprep.subr.bf16.mxu1 %v5663_v48 }
 0x69f   : > { %4958 = vmatpush3.bf16.msra.mxu0 %v6219_v51 }
 0x6a0   : > { %4959 = vmatprep.subr.bf16.mxu0 %v5663_v48 }
 0x6a1   : > { %4938 = vmatpush3.bf16.msra.mxu1 %v5418_v30 }
 0x6a2   : > { %4939 = vmatprep.subr.bf16.mxu1 %v5663_v48 }
 0x6a3   : > { %4960 = vmatpush3.bf16.msra.mxu0 %v6226_v59 }
 0x6a4   : > { %4985 = vmatprep.subr.bf16.mxu0 %v5663_v48 }
 0x6a5   : > { %4940 = vmatpush3.bf16.msra.mxu1 %v5419_v31 }
 0x6a6   : > { %4965 = vmatprep.subr.bf16.mxu1 %v5663_v48 }
 0x705   : > { %v2763_v7 = vpop.permute.xlu1 %2762 }
 0x746   : > { %v2386_v38 = vpop.f32.mrf.mxu0 }
 0x747   : > { %v2396_v42 = vadd.f32 %v2386_v38, %v961_v34 }
 0x748   : > { %v2342_v52 = vpop.f32.mrf.mxu1  ;;  %v4923_v53 = vpop.f32.mrf.mxu0 }
 0x749   : > { %v2398_v54 = vadd.f32 %v6416_v47, %v2396_v42  ;;  %v6420_v36 = vadd.f32 %v2342_v52, %v6369_v63 }
 0x74a   : > { %v4903_v57 = vpop.f32.mrf.mxu1  ;;  %v2389_v1 = vpop.f32.mrf.mxu0 }
 0x74b   : > { %v2397_v60 = vadd.f32 %v2389_v1, %v964_v49  ;;  %5512 = vtanh.f32 %v2398_v54  ;;  %v2583_v57 = vpop.permute.xlu0 %2582 }
 0x74c   : > { %v2345_v4 = vpop.f32.mrf.mxu1  ;;  %v4924_v24 = vpop.f32.mrf.mxu0 }
 0x74d   : > { %v2399_v25 = vadd.f32 %v6416_v47, %v2397_v60  ;;  %v6424_v0 = vadd.f32 %v2345_v4, %v6373_v26  ;;  %v5427_v26 = vld [vmem:[#allocation5 + $0x200] sm:$0xff]   ;;  %v5428_v4 = vld [vmem:[#allocation5 + $0x278] sm:$0xff]  }
 0x74e   : > { %v4904_v2 = vpop.f32.mrf.mxu1 }
 0x74f   : > { %5514 = vtanh.f32 %v2399_v25  ;;  %v6470_v25 = vld [vmem:[%s6822_s4 + $0x38] sm:$0xff]   ;;  %v6489_v2 = vld [vmem:[%s6822_s4 + $0x28] sm:$0xff]  }
 0x758   : > { %v5513_v61 = vpop.eup %5512 }
 0x759   : > { %v2415_v3 = vmul.f32 %v5513_v61, %v2408_v39  ;;  %v5429_v39 = vld [vmem:[#allocation5 + $0x270] sm:$0xff]  }
 0x75c   : > { %v5515_v56 = vpop.eup %5514 }
 0x75d   : > { %v2416_v63 = vmul.f32 %v5515_v56, %v2413_v27  ;;  %v2526_v28 = vpack.c.bf16 %v5515_v56, %v5513_v61  ;;  %v6496_v61 = vld [vmem:[%s6822_s4 + $0x20] sm:$0xff]   ;;  %v6503_v27 = vld [vmem:[%s6822_s4 + $0x18] sm:$0xff]   ;;  %v6510_v56 = vld [vmem:[%s6822_s4 + $0x10] sm:$0xff]  }
 0x75f   : > { %v2417_v50 = vpack.c.bf16 %v2416_v63, %v2415_v3  ;;  %4962 = vmatmul.mubr.bf16.vlgmr.msra.gmra.mxu0 %v2526_v28  ;;  %v5430_v3 = vld [vmem:[#allocation5 + $0x268] sm:$0xff]   ;;  %v5431_v63 = vld [vmem:[#allocation5 + $0x260] sm:$0xff]   ;;  %v5432_v28 = vld [vmem:[#allocation5 + $0x258] sm:$0xff]  }
 0x760   : > { %4986 = vmatpush3.bf16.msra.mxu0 %v6063_v35  ;;  %5001 = vmatprep.mubr.msk.bf16.mxu0 %vm5664_vm0, %v5663_v48  ;;  %v5421_v35 = vld [vmem:[#allocation5 + $0x230] sm:$0xff]  }
 0x761   : > { %4942 = vmatmul.mubr.bf16.vlgmr.msra.gmra.mxu1 %v2417_v50  ;;  %4987 = vmatprep.subr.bf16.mxu0 %v5663_v48  ;;  %v5434_v50 = vld [vmem:[#allocation5 + $0x248] sm:$0xff]  }
 0x762   : > { %4966 = vmatpush3.bf16.msra.mxu1 %v5420_v46  ;;  %4981 = vmatprep.mubr.msk.bf16.mxu1 %vm5664_vm0, %v5663_v48  ;;  %v5433_v46 = vld [vmem:[#allocation5 + $0x250] sm:$0xff]  }
 0x763   : > { %4967 = vmatprep.subr.bf16.mxu1 %v5663_v48 }
 0x764   : > { %4988 = vmatpush3.bf16.msra.mxu0 %v6074_v37  ;;  %v5422_v37 = vld [vmem:[#allocation5 + $0x228] sm:$0xff]  }
 0x765   : > { %4989 = vmatprep.subr.bf16.mxu0 %v5663_v48 }
 0x766   : > { %4968 = vmatpush3.bf16.msra.mxu1 %v5421_v35  ;;  %v5435_v35 = vld [vmem:[#allocation5 + $0x240] sm:$0xff]  }
 0x767   : > { %4969 = vmatprep.subr.bf16.mxu1 %v5663_v48 }
 0x768   : > { %4990 = vmatpush3.bf16.msra.mxu0 %v6083_v41  ;;  %v5423_v41 = vld [vmem:[#allocation5 + $0x220] sm:$0xff]  }
 0x769   : > { %4991 = vmatprep.subr.bf16.mxu0 %v5663_v48 }
 0x76a   : > { %4970 = vmatpush3.bf16.msra.mxu1 %v5422_v37  ;;  %v4197_v37 = vld [vmem:[%s5891_s20 + $0xa8] sm:$0xff] }
 0x76b   : > { %4971 = vmatprep.subr.bf16.mxu1 %v5663_v48  ;;  %2937 = vperm.xlu1 %5323, %v4197_v37  }
 0x76c   : > { %4992 = vmatpush3.bf16.msra.mxu0 %v6090_v43  ;;  %v5424_v43 = vld [vmem:[#allocation5 + $0x218] sm:$0xff]  }
 0x76d   : > { %4993 = vmatprep.subr.bf16.mxu0 %v5663_v48 }
 0x76e   : > { %4972 = vmatpush3.bf16.msra.mxu1 %v5423_v41  ;;  %v977_v41 = vadd.f32 %v6407_v33, %v6159_v5 }
 0x76f   : > { %4973 = vmatprep.subr.bf16.mxu1 %v5663_v48 }
 0x770   : > { %4994 = vmatpush3.bf16.msra.mxu0 %v6097_v44  ;;  %v5425_v44 = vld [vmem:[#allocation5 + $0x210] sm:$0xff]  }
 0x771   : > { %4995 = vmatprep.subr.bf16.mxu0 %v5663_v48 }
 0x772   : > { %4974 = vmatpush3.bf16.msra.mxu1 %v5424_v43 }
 0x773   : > { %4975 = vmatprep.subr.bf16.mxu1 %v5663_v48 }
 0x774   : > { %4996 = vmatpush3.bf16.msra.mxu0 %v6122_v62  ;;  %v5426_v62 = vld [vmem:[#allocation5 + $0x208] sm:$0xff]  }
 0x775   : > { %4997 = vmatprep.subr.bf16.mxu0 %v5663_v48 }
 0x776   : > { %4976 = vmatpush3.bf16.msra.mxu1 %v5425_v44 }
 0x777   : > { %4977 = vmatprep.subr.bf16.mxu1 %v5663_v48 }
 0x778   : > { %4998 = vmatpush3.bf16.msra.mxu0 %v6219_v51 }
 0x779   : > { %4999 = vmatprep.subr.bf16.mxu0 %v5663_v48 }
 0x77a   : > { %4978 = vmatpush3.bf16.msra.mxu1 %v5426_v62 }
 0x77b   : > { %4979 = vmatprep.subr.bf16.mxu1 %v5663_v48 }
 0x77c   : > { %5000 = vmatpush3.bf16.msra.mxu0 %v6226_v59 }
 0x77d   : > { %5025 = vmatprep.subr.bf16.mxu0 %v5663_v48 }
 0x77e   : > { %4980 = vmatpush3.bf16.msra.mxu1 %v5427_v26 }
 0x77f   : > { %5005 = vmatprep.subr.bf16.mxu1 %v5663_v48 }
 0x81f   : > { %v2561_v23 = vpop.f32.mrf.mxu0 }
 0x820   : > { %v2571_v45 = vadd.f32 %v2561_v23, %v969_v55 }
 0x821   : > { %v2517_v58 = vpop.f32.mrf.mxu1  ;;  %v4963_v29 = vpop.f32.mrf.mxu0 }
 0x822   : > { %v2573_v22 = vadd.f32 %v6416_v47, %v2571_v45  ;;  %v6461_v30 = vadd.f32 %v2517_v58, %v6420_v36 }
 0x823   : > { %v4943_v31 = vpop.f32.mrf.mxu1  ;;  %v2564_v32 = vpop.f32.mrf.mxu0 }
 0x824   : > { %v2572_v34 = vadd.f32 %v2564_v32, %v972_v21  ;;  %5516 = vtanh.f32 %v2573_v22 }
 0x825   : > { %v2520_v38 = vpop.f32.mrf.mxu1  ;;  %v4964_v42 = vpop.f32.mrf.mxu0 }
 0x826   : > { %v2574_v6 = vadd.f32 %v6416_v47, %v2572_v34  ;;  %v6465_v52 = vadd.f32 %v2520_v38, %v6424_v0  ;;  %v6482_v0 = vld [vmem:[%s6822_s4 + $0x30] sm:$0xff]   ;;  %v2758_v42 = vpop.permute.xlu0 %2757 }
 0x827   : > { %v4944_v53 = vpop.f32.mrf.mxu1 }
 0x828   : > { %5518 = vtanh.f32 %v2574_v6 }
 0x831   : > { %v5517_v49 = vpop.eup %5516 }
 0x832   : > { %v2590_v1 = vmul.f32 %v5517_v49, %v2583_v57  ;;  %v5439_v57 = vld [vmem:[#allocation5 + $0x2a0] sm:$0xff]  }
 0x835   : > { %v5519_v54 = vpop.eup %5518 }
 0x836   : > { %v2591_v36 = vmul.f32 %v5519_v54, %v2588_v8  ;;  %v2701_v60 = vpack.c.bf16 %v5519_v54, %v5517_v49  ;;  %v5436_v49 = vld [vmem:[#allocation5 + $0x2b8] sm:$0xff]   ;;  %v5438_v54 = vld [vmem:[#allocation5 + $0x2a8] sm:$0xff]  }
 0x838   : > { %v2592_v24 = vpack.c.bf16 %v2591_v36, %v2590_v1  ;;  %5002 = vmatmul.mubr.bf16.vlgmr.msra.gmra.mxu0 %v2701_v60  ;;  %v5441_v1 = vld [vmem:[#allocation5 + $0x290] sm:$0xff]   ;;  %v5443_v36 = vld [vmem:[#allocation5 + $0x280] sm:$0xff]   ;;  %v4207_v60 = vld [vmem:[%s5891_s20 + $0xb8] sm:$0xff] }
 0x839   : > { %5026 = vmatpush3.bf16.msra.mxu0 %v6470_v25  ;;  %5041 = vmatprep.mubr.msk.bf16.mxu0 %vm5664_vm0, %v5663_v48 }
 0x83a   : > { %4982 = vmatmul.mubr.bf16.vlgmr.msra.gmra.mxu1 %v2592_v24  ;;  %5027 = vmatprep.subr.bf16.mxu0 %v5663_v48 }
 0x83b   : > { %5006 = vmatpush3.bf16.msra.mxu1 %v5428_v4  ;;  %5021 = vmatprep.mubr.msk.bf16.mxu1 %vm5664_vm0, %v5663_v48  ;;  %v985_v4 = vadd.f32 %v6407_v33, %v6169_v10 }
 0x83c   : > { %5007 = vmatprep.subr.bf16.mxu1 %v5663_v48  ;;  %3112 = vperm.xlu1 %5323, %v4207_v60  }
 0x83d   : > { %5028 = vmatpush3.bf16.msra.mxu0 %v6482_v0 }
 0x83e   : > { %5029 = vmatprep.subr.bf16.mxu0 %v5663_v48 }
 0x83f   : > { %5008 = vmatpush3.bf16.msra.mxu1 %v5429_v39 }
 0x840   : > { %5009 = vmatprep.subr.bf16.mxu1 %v5663_v48 }
 0x841   : > { %5030 = vmatpush3.bf16.msra.mxu0 %v6489_v2 }
 0x842   : > { %5031 = vmatprep.subr.bf16.mxu0 %v5663_v48 }
 0x843   : > { %5010 = vmatpush3.bf16.msra.mxu1 %v5430_v3 }
 0x844   : > { %5011 = vmatprep.subr.bf16.mxu1 %v5663_v48 }
 0x845   : > { %5032 = vmatpush3.bf16.msra.mxu0 %v6496_v61 }
 0x846   : > { %5033 = vmatprep.subr.bf16.mxu0 %v5663_v48 }
 0x847   : > { %5012 = vmatpush3.bf16.msra.mxu1 %v5431_v63 }
 0x848   : > { %5013 = vmatprep.subr.bf16.mxu1 %v5663_v48 }
 0x849   : > { %5034 = vmatpush3.bf16.msra.mxu0 %v6503_v27 }
 0x84a   : > { %5035 = vmatprep.subr.bf16.mxu0 %v5663_v48 }
 0x84b   : > { %5014 = vmatpush3.bf16.msra.mxu1 %v5432_v28  ;;  %v988_v28 = vadd.f32 %v6407_v33, %v6173_v12  ;;  %v2938_v12 = vpop.permute.xlu1 %2937 }
 0x84c   : > { %5015 = vmatprep.subr.bf16.mxu1 %v5663_v48 }
 0x84d   : > { %5036 = vmatpush3.bf16.msra.mxu0 %v6510_v56 }
 0x84e   : > { %5037 = vmatprep.subr.bf16.mxu0 %v5663_v48 }
 0x84f   : > { %5016 = vmatpush3.bf16.msra.mxu1 %v5433_v46 }
 0x850   : > { %5017 = vmatprep.subr.bf16.mxu1 %v5663_v48 }
 0x851   : > { %5038 = vmatpush3.bf16.msra.mxu0 %v6219_v51 }
 0x852   : > { %5039 = vmatprep.subr.bf16.mxu0 %v5663_v48 }
 0x853   : > { %5018 = vmatpush3.bf16.msra.mxu1 %v5434_v50 }
 0x854   : > { %5019 = vmatprep.subr.bf16.mxu1 %v5663_v48 }
 0x855   : > { %5040 = vmatpush3.bf16.msra.mxu0 %v6226_v59 }
 0x856   : > { %5065 = vmatprep.subr.bf16.mxu0 %v5663_v48 }
 0x857   : > { %5020 = vmatpush3.bf16.msra.mxu1 %v5435_v35 }
 0x858   : > { %5045 = vmatprep.subr.bf16.mxu1 %v5663_v48 }
 0x8f8   : > { %v2736_v43 = vpop.f32.mrf.mxu0 }
 0x8f9   : > { %v2746_v44 = vadd.f32 %v2736_v43, %v977_v41 }
 0x8fa   : > { %v2692_v62 = vpop.f32.mrf.mxu1  ;;  %v5003_v26 = vpop.f32.mrf.mxu0 }
 0x8fb   : > { %v2748_v55 = vadd.f32 %v6416_v47, %v2746_v44  ;;  %v6532_v23 = vadd.f32 %v2692_v62, %v6461_v30 }
 0x8fc   : > { %v4983_v45 = vpop.f32.mrf.mxu1  ;;  %v2739_v58 = vpop.f32.mrf.mxu0 }
 0x8fd   : > { %v2747_v29 = vadd.f32 %v2739_v58, %v980_v40  ;;  %5520 = vtanh.f32 %v2748_v55  ;;  %v2933_v45 = vpop.permute.xlu0 %2932 }
 0x8fe   : > { %v2695_v21 = vpop.f32.mrf.mxu1  ;;  %v5004_v22 = vpop.f32.mrf.mxu0 }
 0x8ff   : > { %v2749_v5 = vadd.f32 %v6416_v47, %v2747_v29  ;;  %v6536_v31 = vadd.f32 %v2695_v21, %v6465_v52  ;;  %v5437_v52 = vld [vmem:[#allocation5 + $0x2b0] sm:$0xff]   ;;  %v5444_v21 = vld [vmem:[#allocation5 + $0x2f8] sm:$0xff]  }
 0x900   : > { %v4984_v32 = vpop.f32.mrf.mxu1 }
 0x901   : > { %5522 = vtanh.f32 %v2749_v5  ;;  %v6599_v5 = vld [vmem:[%s6822_s4 + $0x8] sm:$0xff]   ;;  %v5445_v32 = vld [vmem:[#allocation5 + $0x2f0] sm:$0xff]  }
 0x90a   : > { %v5521_v34 = vpop.eup %5520 }
 0x90b   : > { %v2765_v6 = vmul.f32 %v5521_v34, %v2758_v42  ;;  %v5449_v42 = vld [vmem:[#allocation5 + $0x2d0] sm:$0xff]  }
 0x90e   : > { %v5523_v38 = vpop.eup %5522 }
 0x90f   : > { %v2766_v30 = vmul.f32 %v5523_v38, %v2763_v7  ;;  %v2876_v53 = vpack.c.bf16 %v5523_v38, %v5521_v34  ;;  %v5446_v34 = vld [vmem:[#allocation5 + $0x2e8] sm:$0xff]   ;;  %v5447_v7 = vld [vmem:[#allocation5 + $0x2e0] sm:$0xff]   ;;  %v5448_v38 = vld [vmem:[#allocation5 + $0x2d8] sm:$0xff]  }
 0x911   : > { %v2767_v8 = vpack.c.bf16 %v2766_v30, %v2765_v6  ;;  %5042 = vmatmul.mubr.bf16.vlgmr.msra.gmra.mxu0 %v2876_v53  ;;  %v5450_v6 = vld [vmem:[#allocation5 + $0x2c8] sm:$0xff]   ;;  %v5451_v30 = vld [vmem:[#allocation5 + $0x2c0] sm:$0xff]  }
 0x912   : > { %5066 = vmatpush3.bf16.msra.mxu0 %v6470_v25  ;;  %5081 = vmatprep.mubr.msk.bf16.mxu0 %vm5664_vm0, %v5663_v48  ;;  %v4217_v53 = vld [vmem:[%s5891_s20 + $0xc8] sm:$0xff] }
 0x913   : > { %5022 = vmatmul.mubr.bf16.vlgmr.msra.gmra.mxu1 %v2767_v8  ;;  %5067 = vmatprep.subr.bf16.mxu0 %v5663_v48 }
 0x914   : > { %5046 = vmatpush3.bf16.msra.mxu1 %v5436_v49  ;;  %5061 = vmatprep.mubr.msk.bf16.mxu1 %vm5664_vm0, %v5663_v48  ;;  %v993_v49 = vadd.f32 %v6407_v33, %v6167_v9 }
 0x915   : > { %5047 = vmatprep.subr.bf16.mxu1 %v5663_v48  ;;  %3287 = vperm.xlu1 %5323, %v4217_v53  }
 0x916   : > { %5068 = vmatpush3.bf16.msra.mxu0 %v6482_v0 }
 0x917   : > { %5069 = vmatprep.subr.bf16.mxu0 %v5663_v48 }
 0x918   : > { %5048 = vmatpush3.bf16.msra.mxu1 %v5437_v52 }
 0x919   : > { %5049 = vmatprep.subr.bf16.mxu1 %v5663_v48 }
 0x91a   : > { %5070 = vmatpush3.bf16.msra.mxu0 %v6489_v2 }
 0x91b   : > { %5071 = vmatprep.subr.bf16.mxu0 %v5663_v48 }
 0x91c   : > { %5050 = vmatpush3.bf16.msra.mxu1 %v5438_v54 }
 0x91d   : > { %5051 = vmatprep.subr.bf16.mxu1 %v5663_v48 }
 0x91e   : > { %5072 = vmatpush3.bf16.msra.mxu0 %v6496_v61 }
 0x91f   : > { %5073 = vmatprep.subr.bf16.mxu0 %v5663_v48 }
 0x920   : > { %5052 = vmatpush3.bf16.msra.mxu1 %v5439_v57 }
 0x921   : > { %5053 = vmatprep.subr.bf16.mxu1 %v5663_v48 }
 0x922   : > { %5074 = vmatpush3.bf16.msra.mxu0 %v6503_v27 }
 0x923   : > { %5075 = vmatprep.subr.bf16.mxu0 %v5663_v48 }
 0x926   : > { %5076 = vmatpush3.bf16.msra.mxu0 %v6510_v56 }
 0x927   : > { %5077 = vmatprep.subr.bf16.mxu0 %v5663_v48 }
 0x92a   : > { %5078 = vmatpush3.bf16.msra.mxu0 %v6219_v51  ;;  %v5440_v51 = vld [vmem:[#allocation5 + $0x298] sm:$0xff]  }
 0x92b   : > { %5079 = vmatprep.subr.bf16.mxu0 %v5663_v48  ;;  %5054 = vmatpush3.bf16.msra.mxu1 %v5440_v51  ;;  %v996_v51 = vadd.f32 %v6407_v33, %v6171_v11  ;;  %v3113_v11 = vpop.permute.xlu1 %3112 }
 0x92c   : > { %5055 = vmatprep.subr.bf16.mxu1 %v5663_v48 }
 0x92e   : > { %5080 = vmatpush3.bf16.msra.mxu0 %v6226_v59  ;;  %v5442_v59 = vld [vmem:[#allocation5 + $0x288] sm:$0xff]  }
 0x92f   : > { %5105 = vmatprep.subr.bf16.mxu0 %v5663_v48  ;;  %5056 = vmatpush3.bf16.msra.mxu1 %v5441_v1 }
 0x930   : > { %5057 = vmatprep.subr.bf16.mxu1 %v5663_v48 }
 0x933   : > { %5058 = vmatpush3.bf16.msra.mxu1 %v5442_v59 }
 0x934   : > { %5059 = vmatprep.subr.bf16.mxu1 %v5663_v48 }
 0x937   : > { %5060 = vmatpush3.bf16.msra.mxu1 %v5443_v36 }
 0x938   : > { %5085 = vmatprep.subr.bf16.mxu1 %v5663_v48 }
 0x9d1   : > { %v2911_v24 = vpop.f32.mrf.mxu0 }
 0x9d2   : > { %v2921_v39 = vadd.f32 %v2911_v24, %v985_v4 }
 0x9d3   : > { %v2867_v3 = vpop.f32.mrf.mxu1  ;;  %v5043_v63 = vpop.f32.mrf.mxu0 }
 0x9d4   : > { %v2923_v46 = vadd.f32 %v6416_v47, %v2921_v39  ;;  %v6573_v50 = vadd.f32 %v2867_v3, %v6532_v23 }
 0x9d5   : > { %v5023_v35 = vpop.f32.mrf.mxu1  ;;  %v2914_v37 = vpop.f32.mrf.mxu0 }
 0x9d6   : > { %v2922_v41 = vadd.f32 %v2914_v37, %v988_v28  ;;  %5524 = vtanh.f32 %v2923_v46  ;;  %v3108_v35 = vpop.permute.xlu0 %3107 }
 0x9d7   : > { %v2870_v43 = vpop.f32.mrf.mxu1  ;;  %v5044_v44 = vpop.f32.mrf.mxu0 }
 0x9d8   : > { %v2924_v10 = vadd.f32 %v6416_v47, %v2922_v41  ;;  %v6577_v62 = vadd.f32 %v2870_v43, %v6536_v31  ;;  %v6606_v31 = vld [vmem:[%s6822_s4] sm:$0xff]   ;;  %v5452_v43 = vld [vmem:[#allocation5 + $0x338] sm:$0xff]  }
 0x9d9   : > { %v5024_v26 = vpop.f32.mrf.mxu1 }
 0x9da   : > { %5526 = vtanh.f32 %v2924_v10  ;;  %v5453_v10 = vld [vmem:[#allocation5 + $0x330] sm:$0xff]   ;;  %v5455_v26 = vld [vmem:[#allocation5 + $0x320] sm:$0xff]  }
 0x9e3   : > { %v5525_v40 = vpop.eup %5524 }
 0x9e4   : > { %v2940_v58 = vmul.f32 %v5525_v40, %v2933_v45  ;;  %v5459_v45 = vld [vmem:[#allocation5 + $0x300] sm:$0xff]  }
 0x9e7   : > { %v5527_v55 = vpop.eup %5526 }
 0x9e8   : > { %v2941_v23 = vmul.f32 %v5527_v55, %v2938_v12  ;;  %v3051_v29 = vpack.c.bf16 %v5527_v55, %v5525_v40  ;;  %v5456_v40 = vld [vmem:[#allocation5 + $0x318] sm:$0xff]   ;;  %v5457_v12 = vld [vmem:[#allocation5 + $0x310] sm:$0xff]   ;;  %v5458_v55 = vld [vmem:[#allocation5 + $0x308] sm:$0xff]  }
 0x9ea   : > { %v2942_v22 = vpack.c.bf16 %v2941_v23, %v2940_v58  ;;  %5082 = vmatmul.mubr.bf16.vlgmr.msra.gmra.mxu0 %v3051_v29  ;;  %v4227_v58 = vld [vmem:[%s5891_s20 + $0xd8] sm:$0xff]  ;;  %v4237_v23 = vld [vmem:[%s5891_s20 + $0xe8] sm:$0xff] }
 0x9eb   : > { %5106 = vmatpush3.bf16.msra.mxu0 %v6470_v25  ;;  %5121 = vmatprep.mubr.msk.bf16.mxu0 %vm5664_vm0, %v5663_v48  ;;  %v4247_v29 = vld [vmem:[%s5891_s20 + $0xf8] sm:$0xff]  ;;  %s6775_s20 = scalar_lea.hbm %s6826_s8, %s4264_s21 }
 0x9ec   : > { %5062 = vmatmul.mubr.bf16.vlgmr.msra.gmra.mxu1 %v2942_v22  ;;  %5107 = vmatprep.subr.bf16.mxu0 %v5663_v48 }
 0x9ed   : > { %5086 = vmatpush3.bf16.msra.mxu1 %v5444_v21  ;;  %5101 = vmatprep.mubr.msk.bf16.mxu1 %vm5664_vm0, %v5663_v48  ;;  %v1001_v21 = vadd.f32 %v6407_v33, %v6177_v14 }
 0x9ee   : > { %5087 = vmatprep.subr.bf16.mxu1 %v5663_v48  ;;  %3462 = vperm.xlu1 %5323, %v4227_v58  }
 0x9ef   : > { %5108 = vmatpush3.bf16.msra.mxu0 %v6482_v0 }
 0x9f0   : > { %5109 = vmatprep.subr.bf16.mxu0 %v5663_v48 }
 0x9f1   : > { %5088 = vmatpush3.bf16.msra.mxu1 %v5445_v32 }
 0x9f2   : > { %5089 = vmatprep.subr.bf16.mxu1 %v5663_v48  ;;  %3637 = vperm.xlu1 %5323, %v4237_v23  }
 0x9f3   : > { %5110 = vmatpush3.bf16.msra.mxu0 %v6489_v2 }
 0x9f4   : > { %5111 = vmatprep.subr.bf16.mxu0 %v5663_v48 }
 0x9f5   : > { %5090 = vmatpush3.bf16.msra.mxu1 %v5446_v34 }
 0x9f6   : > { %5091 = vmatprep.subr.bf16.mxu1 %v5663_v48  ;;  %3812 = vperm.xlu1 %5323, %v4247_v29  }
 0x9f7   : > { %5112 = vmatpush3.bf16.msra.mxu0 %v6496_v61 }
 0x9f8   : > { %5113 = vmatprep.subr.bf16.mxu0 %v5663_v48 }
 0x9f9   : > { %5092 = vmatpush3.bf16.msra.mxu1 %v5447_v7 }
 0x9fa   : > { %5093 = vmatprep.subr.bf16.mxu1 %v5663_v48 }
 0x9fb   : > { %5114 = vmatpush3.bf16.msra.mxu0 %v6503_v27 }
 0x9fc   : > { %5115 = vmatprep.subr.bf16.mxu0 %v5663_v48 }
 0x9fd   : > { %5094 = vmatpush3.bf16.msra.mxu1 %v5448_v38  ;;  %v1004_v38 = vadd.f32 %v6407_v33, %v6181_v16  ;;  %v3288_v16 = vpop.permute.xlu1 %3287 }
 0x9fe   : > { %5095 = vmatprep.subr.bf16.mxu1 %v5663_v48 }
 0x9ff   : > { %5116 = vmatpush3.bf16.msra.mxu0 %v6510_v56 }
 0xa00   : > { %5117 = vmatprep.subr.bf16.mxu0 %v5663_v48 }
 0xa01   : > { %5096 = vmatpush3.bf16.msra.mxu1 %v5449_v42 }
 0xa02   : > { %5097 = vmatprep.subr.bf16.mxu1 %v5663_v48 }
 0xa03   : > { %5118 = vmatpush3.bf16.msra.mxu0 %v6599_v5 }
 0xa04   : > { %5119 = vmatprep.subr.bf16.mxu0 %v5663_v48 }
 0xa05   : > { %5098 = vmatpush3.bf16.msra.mxu1 %v5450_v6 }
 0xa06   : > { %5099 = vmatprep.subr.bf16.mxu1 %v5663_v48 }
 0xa07   : > { %5120 = vmatpush3.bf16.msra.mxu0 %v6606_v31 }
 0xa08   : > { %5145 = vmatprep.subr.bf16.mxu0 %v5663_v48 }
 0xa09   : > { %5100 = vmatpush3.bf16.msra.mxu1 %v5451_v30 }
 0xa0a   : > { %5125 = vmatprep.subr.bf16.mxu1 %v5663_v48 }
 0xaaa   : > { %v3086_v8 = vpop.f32.mrf.mxu0 }
 0xaab   : > { %v3096_v52 = vadd.f32 %v3086_v8, %v993_v49 }
 0xaac   : > { %v3042_v54 = vpop.f32.mrf.mxu1  ;;  %v5083_v57 = vpop.f32.mrf.mxu0 }
 0xaad   : > { %v3098_v1 = vadd.f32 %v6416_v47, %v3096_v52  ;;  %v6624_v59 = vadd.f32 %v3042_v54, %v6573_v50 }
 0xaae   : > { %v5063_v36 = vpop.f32.mrf.mxu1  ;;  %v3089_v60 = vpop.f32.mrf.mxu0 }
 0xaaf   : > { %v3097_v4 = vadd.f32 %v3089_v60, %v996_v51  ;;  %5528 = vtanh.f32 %v3098_v1  ;;  %v3283_v36 = vpop.permute.xlu0 %3282 }
 0xab0   : > { %v3045_v24 = vpop.f32.mrf.mxu1  ;;  %v5084_v39 = vpop.f32.mrf.mxu0 }
 0xab1   : > { %v3099_v9 = vadd.f32 %v6416_v47, %v3097_v4  ;;  %v6628_v3 = vadd.f32 %v3045_v24, %v6577_v62  ;;  %v5454_v62 = vld [vmem:[#allocation5 + $0x328] sm:$0xff]   ;;  %v5460_v24 = vld [vmem:[#allocation5 + $0x378] sm:$0xff]  }
 0xab2   : > { %v5064_v63 = vpop.f32.mrf.mxu1 }
 0xab3   : > { %5530 = vtanh.f32 %v3099_v9  ;;  %v5461_v9 = vld [vmem:[#allocation5 + $0x370] sm:$0xff]   ;;  %v5463_v63 = vld [vmem:[#allocation5 + $0x360] sm:$0xff]  }
 0xabc   : > { %v5529_v28 = vpop.eup %5528 }
 0xabd   : > { %v3115_v37 = vmul.f32 %v5529_v28, %v3108_v35  ;;  %v5467_v35 = vld [vmem:[#allocation5 + $0x340] sm:$0xff]  }
 0xac0   : > { %v5531_v46 = vpop.eup %5530 }
 0xac1   : > { %v3116_v50 = vmul.f32 %v5531_v46, %v3113_v11  ;;  %v3226_v41 = vpack.c.bf16 %v5531_v46, %v5529_v28  ;;  %v5464_v28 = vld [vmem:[#allocation5 + $0x358] sm:$0xff]   ;;  %v5465_v11 = vld [vmem:[#allocation5 + $0x350] sm:$0xff]   ;;  %v5466_v46 = vld [vmem:[#allocation5 + $0x348] sm:$0xff]  }
 0xac3   : > { %v3117_v44 = vpack.c.bf16 %v3116_v50, %v3115_v37  ;;  %5122 = vmatmul.mubr.bf16.vlgmr.msra.gmra.mxu0 %v3226_v41  ;;  %v1009_v37 = vadd.f32 %v6407_v33, %v6175_v13 }
 0xac4   : > { %5146 = vmatpush3.bf16.msra.mxu0 %v6470_v25  ;;  %5161 = vmatprep.mubr.msk.bf16.mxu0 %vm5664_vm0, %v5663_v48 }
 0xac5   : > { %5102 = vmatmul.mubr.bf16.vlgmr.msra.gmra.mxu1 %v3117_v44  ;;  %5147 = vmatprep.subr.bf16.mxu0 %v5663_v48 }
 0xac6   : > { %5126 = vmatpush3.bf16.msra.mxu1 %v5452_v43  ;;  %5141 = vmatprep.mubr.msk.bf16.mxu1 %vm5664_vm0, %v5663_v48 }
 0xac7   : > { %5127 = vmatprep.subr.bf16.mxu1 %v5663_v48 }
 0xac8   : > { %5148 = vmatpush3.bf16.msra.mxu0 %v6482_v0 }
 0xac9   : > { %5149 = vmatprep.subr.bf16.mxu0 %v5663_v48 }
 0xaca   : > { %5128 = vmatpush3.bf16.msra.mxu1 %v5453_v10  ;;  %v1012_v10 = vadd.f32 %v6407_v33, %v6179_v15 }
 0xacb   : > { %5129 = vmatprep.subr.bf16.mxu1 %v5663_v48 }
 0xacc   : > { %5150 = vmatpush3.bf16.msra.mxu0 %v6489_v2 }
 0xacd   : > { %5151 = vmatprep.subr.bf16.mxu0 %v5663_v48 }
 0xace   : > { %5130 = vmatpush3.bf16.msra.mxu1 %v5454_v62 }
 0xacf   : > { %5131 = vmatprep.subr.bf16.mxu1 %v5663_v48 }
 0xad0   : > { %5152 = vmatpush3.bf16.msra.mxu0 %v6496_v61 }
 0xad1   : > { %5153 = vmatprep.subr.bf16.mxu0 %v5663_v48 }
 0xad2   : > { %5132 = vmatpush3.bf16.msra.mxu1 %v5455_v26 }
 0xad3   : > { %5133 = vmatprep.subr.bf16.mxu1 %v5663_v48 }
 0xad4   : > { %5154 = vmatpush3.bf16.msra.mxu0 %v6503_v27 }
 0xad5   : > { %5155 = vmatprep.subr.bf16.mxu0 %v5663_v48 }
 0xad6   : > { %5134 = vmatpush3.bf16.msra.mxu1 %v5456_v40 }
 0xad7   : > { %5135 = vmatprep.subr.bf16.mxu1 %v5663_v48 }
 0xad8   : > { %5156 = vmatpush3.bf16.msra.mxu0 %v6510_v56 }
 0xad9   : > { %5157 = vmatprep.subr.bf16.mxu0 %v5663_v48 }
 0xada   : > { %5136 = vmatpush3.bf16.msra.mxu1 %v5457_v12 }
 0xadb   : > { %5137 = vmatprep.subr.bf16.mxu1 %v5663_v48 }
 0xadc   : > { %5158 = vmatpush3.bf16.msra.mxu0 %v6599_v5 }
 0xadd   : > { %5159 = vmatprep.subr.bf16.mxu0 %v5663_v48 }
 0xade   : > { %5138 = vmatpush3.bf16.msra.mxu1 %v5458_v55 }
 0xadf   : > { %5139 = vmatprep.subr.bf16.mxu1 %v5663_v48 }
 0xae0   : > { %5160 = vmatpush3.bf16.msra.mxu0 %v6606_v31 }
 0xae1   : > { %5185 = vmatprep.subr.bf16.mxu0 %v5663_v48 }
 0xae2   : > { %5140 = vmatpush3.bf16.msra.mxu1 %v5459_v45 }
 0xae3   : > { %5165 = vmatprep.subr.bf16.mxu1 %v5663_v48 }
 0xb83   : > { %v3261_v22 = vpop.f32.mrf.mxu0 }
 0xb84   : > { %v3271_v32 = vadd.f32 %v3261_v22, %v1001_v21  ;;  %v3458_v22 = vpop.permute.xlu0 %3457 }
 0xb85   : > { %v3217_v34 = vpop.f32.mrf.mxu1  ;;  %v5123_v7 = vpop.f32.mrf.mxu0 }
 0xb86   : > { %v3273_v42 = vadd.f32 %v6416_v47, %v3271_v32  ;;  %v6667_v6 = vadd.f32 %v3217_v34, %v6624_v59  ;;  %v3463_v32 = vpop.permute.xlu1 %3462 }
 0xb87   : > { %v5103_v30 = vpop.f32.mrf.mxu1  ;;  %v3264_v53 = vpop.f32.mrf.mxu0 }
 0xb88   : > { %v3272_v49 = vadd.f32 %v3264_v53, %v1004_v38  ;;  %5532 = vtanh.f32 %v3273_v42  ;;  %v5468_v42 = vld [vmem:[#allocation5 + $0x3b8] sm:$0xff]  }
 0xb89   : > { %v3220_v8 = vpop.f32.mrf.mxu1  ;;  %v5124_v52 = vpop.f32.mrf.mxu0 }
 0xb8a   : > { %v3274_v14 = vadd.f32 %v6416_v47, %v3272_v49  ;;  %v6671_v54 = vadd.f32 %v3220_v8, %v6628_v3  ;;  %v5462_v3 = vld [vmem:[#allocation5 + $0x368] sm:$0xff]   ;;  %v1020_v52 = vadd.f32 %v6407_v33, %v6189_v20  ;;  %v3638_v20 = vpop.permute.xlu1 %3637 }
 0xb8b   : > { %v5104_v57 = vpop.f32.mrf.mxu1 }
 0xb8c   : > { %5534 = vtanh.f32 %v3274_v14 }
 0xb95   : > { %v5533_v51 = vpop.eup %5532 }
 0xb96   : > { %v3290_v60 = vmul.f32 %v5533_v51, %v3283_v36 }
 0xb99   : > { %v5535_v1 = vpop.eup %5534 }
 0xb9a   : > { %v3291_v59 = vmul.f32 %v5535_v1, %v3288_v16  ;;  %v3401_v4 = vpack.c.bf16 %v5535_v1, %v5533_v51 }
 0xb9c   : > { %v3292_v39 = vpack.c.bf16 %v3291_v59, %v3290_v60  ;;  %5162 = vmatmul.mubr.bf16.vlgmr.msra.gmra.mxu0 %v3401_v4 }
 0xb9d   : > { %5186 = vmatpush3.bf16.msra.mxu0 %v6470_v25  ;;  %5201 = vmatprep.mubr.msk.bf16.mxu0 %vm5664_vm0, %v5663_v48 }
 0xb9e   : > { %5142 = vmatmul.mubr.bf16.vlgmr.msra.gmra.mxu1 %v3292_v39  ;;  %5187 = vmatprep.subr.bf16.mxu0 %v5663_v48  ;;  %v3633_v39 = vpop.permute.xlu0 %3632 }
 0xb9f   : > { %5166 = vmatpush3.bf16.msra.mxu1 %v5460_v24  ;;  %5181 = vmatprep.mubr.msk.bf16.mxu1 %vm5664_vm0, %v5663_v48 }
 0xba0   : > { %5167 = vmatprep.subr.bf16.mxu1 %v5663_v48 }
 0xba1   : > { %5188 = vmatpush3.bf16.msra.mxu0 %v6482_v0 }
 0xba2   : > { %5189 = vmatprep.subr.bf16.mxu0 %v5663_v48 }
 0xba3   : > { %5168 = vmatpush3.bf16.msra.mxu1 %v5461_v9 }
 0xba4   : > { %5169 = vmatprep.subr.bf16.mxu1 %v5663_v48 }
 0xba5   : > { %5190 = vmatpush3.bf16.msra.mxu0 %v6489_v2 }
 0xba6   : > { %5191 = vmatprep.subr.bf16.mxu0 %v5663_v48 }
 0xba7   : > { %5170 = vmatpush3.bf16.msra.mxu1 %v5462_v3 }
 0xba8   : > { %5171 = vmatprep.subr.bf16.mxu1 %v5663_v48 }
 0xba9   : > { %5192 = vmatpush3.bf16.msra.mxu0 %v6496_v61 }
 0xbaa   : > { %5193 = vmatprep.subr.bf16.mxu0 %v5663_v48 }
 0xbab   : > { %5172 = vmatpush3.bf16.msra.mxu1 %v5463_v63  ;;  %v5476_v63 = vld [vmem:[#allocation5 + $0x3f8] sm:$0xff]  }
 0xbac   : > { %5173 = vmatprep.subr.bf16.mxu1 %v5663_v48 }
 0xbad   : > { %5194 = vmatpush3.bf16.msra.mxu0 %v6503_v27 }
 0xbae   : > { %5195 = vmatprep.subr.bf16.mxu0 %v5663_v48 }
 0xbaf   : > { %5174 = vmatpush3.bf16.msra.mxu1 %v5464_v28 }
 0xbb0   : > { %5175 = vmatprep.subr.bf16.mxu1 %v5663_v48 }
 0xbb1   : > { %5196 = vmatpush3.bf16.msra.mxu0 %v6510_v56 }
 0xbb2   : > { %5197 = vmatprep.subr.bf16.mxu0 %v5663_v48 }
 0xbb3   : > { %5176 = vmatpush3.bf16.msra.mxu1 %v5465_v11  ;;  %v5478_v11 = vld [vmem:[#allocation5 + $0x3e8] sm:$0xff]  }
 0xbb4   : > { %5177 = vmatprep.subr.bf16.mxu1 %v5663_v48 }
 0xbb5   : > { %5198 = vmatpush3.bf16.msra.mxu0 %v6599_v5 }
 0xbb6   : > { %5199 = vmatprep.subr.bf16.mxu0 %v5663_v48 }
 0xbb7   : > { %5178 = vmatpush3.bf16.msra.mxu1 %v5466_v46  ;;  %v5479_v46 = vld [vmem:[#allocation5 + $0x3e0] sm:$0xff]  }
 0xbb8   : > { %5179 = vmatprep.subr.bf16.mxu1 %v5663_v48 }
 0xbb9   : > { %5200 = vmatpush3.bf16.msra.mxu0 %v6606_v31 }
 0xbba   : > { %5225 = vmatprep.subr.bf16.mxu0 %v5663_v48 }
 0xbbb   : > { %5180 = vmatpush3.bf16.msra.mxu1 %v5467_v35  ;;  %v5480_v35 = vld [vmem:[#allocation5 + $0x3d8] sm:$0xff]  }
 0xbbc   : > { %5205 = vmatprep.subr.bf16.mxu1 %v5663_v48 }
 0xc5c   : > { %v3436_v50 = vpop.f32.mrf.mxu0 }
 0xc5d   : > { %v3446_v41 = vadd.f32 %v3436_v50, %v1009_v37  ;;  %v5481_v37 = vld [vmem:[#allocation5 + $0x3d0] sm:$0xff]   ;;  %v5482_v50 = vld [vmem:[#allocation5 + $0x3c8] sm:$0xff]  }
 0xc5e   : > { %v3392_v43 = vpop.f32.mrf.mxu1  ;;  %v5163_v44 = vpop.f32.mrf.mxu0 }
 0xc5f   : > { %v3448_v62 = vadd.f32 %v6416_v47, %v3446_v41  ;;  %v6707_v26 = vadd.f32 %v3392_v43, %v6667_v6  ;;  %v5483_v41 = vld [vmem:[#allocation5 + $0x3c0] sm:$0xff]  }
 0xc60   : > { %v5143_v40 = vpop.f32.mrf.mxu1  ;;  %v3439_v12 = vpop.f32.mrf.mxu0  ;;  %v5566_v43 = vld [vmem:[%s6821_s3] ss:$0 sm:$0xff] }
 0xc61   : > { %v3447_v55 = vadd.f32 %v3439_v12, %v1012_v10  ;;  %5536 = vtanh.f32 %v3448_v62  ;;  %v1025_v44 = vadd.f32 %v5566_v43, %v6183_v17  ;;  %v1028_v12 = vadd.f32 %v5566_v43, %v6187_v19 }
 0xc62   : > { %v3395_v45 = vpop.f32.mrf.mxu1  ;;  %v5164_v58 = vpop.f32.mrf.mxu0 }
 0xc63   : > { %v3449_v13 = vadd.f32 %v6416_v47, %v3447_v55  ;;  %v6711_v23 = vadd.f32 %v3395_v45, %v6671_v54  ;;  %v5567_v55 = vld [vmem:[%s6823_s5] ss:$0 sm:$0xff] }
 0xc64   : > { %v5144_v29 = vpop.f32.mrf.mxu1 }
 0xc65   : > { %5538 = vtanh.f32 %v3449_v13 }
 0xc6e   : > { %v5537_v21 = vpop.eup %5536 }
 0xc6f   : > { %v3465_v7 = vmul.f32 %v5537_v21, %v3458_v22 }
 0xc72   : > { %v5539_v15 = vpop.eup %5538 }
 0xc73   : > { %v3576_v34 = vpack.c.bf16 %v5539_v15, %v5537_v21  ;;  %v3466_v38 = vmul.f32 %v5539_v15, %v3463_v32 }
 0xc75   : > { %5202 = vmatmul.mubr.bf16.vlgmr.msra.gmra.mxu0 %v3576_v34  ;;  %v3467_v6 = vpack.c.bf16 %v3466_v38, %v3465_v7  ;;  %v3808_v34 = vpop.permute.xlu0 %3807  ;;  %v3813_v7 = vpop.permute.xlu1 %3812 }
 0xc76   : > { %5226 = vmatpush3.bf16.msra.mxu0 %v6470_v25  ;;  %5241 = vmatprep.mubr.msk.bf16.mxu0 %vm5664_vm0, %v5663_v48  ;;  %v5469_v25 = vld [vmem:[#allocation5 + $0x3b0] sm:$0xff]  }
 0xc77   : > { %5182 = vmatmul.mubr.bf16.vlgmr.msra.gmra.mxu1 %v3467_v6  ;;  %5227 = vmatprep.subr.bf16.mxu0 %v5663_v48 }
 0xc78   : > { %5206 = vmatpush3.bf16.msra.mxu1 %v5468_v42  ;;  %5221 = vmatprep.mubr.msk.bf16.mxu1 %vm5664_vm0, %v5663_v48 }
 0xc79   : > { %5207 = vmatprep.subr.bf16.mxu1 %v5663_v48 }
 0xc7a   : > { %5228 = vmatpush3.bf16.msra.mxu0 %v6482_v0  ;;  %v5470_v0 = vld [vmem:[#allocation5 + $0x3a8] sm:$0xff]  }
 0xc7b   : > { %5229 = vmatprep.subr.bf16.mxu0 %v5663_v48 }
 0xc7c   : > { %5208 = vmatpush3.bf16.msra.mxu1 %v5469_v25 }
 0xc7d   : > { %5209 = vmatprep.subr.bf16.mxu1 %v5663_v48 }
 0xc7e   : > { %5230 = vmatpush3.bf16.msra.mxu0 %v6489_v2  ;;  %v5471_v2 = vld [vmem:[#allocation5 + $0x3a0] sm:$0xff]  }
 0xc7f   : > { %5231 = vmatprep.subr.bf16.mxu0 %v5663_v48 }
 0xc80   : > { %5210 = vmatpush3.bf16.msra.mxu1 %v5470_v0  ;;  %v4256_v0 = vld [vmem:[%s6825_s7] ss:$0 sm:$0xff] }
 0xc81   : > { %5211 = vmatprep.subr.bf16.mxu1 %v5663_v48 }
 0xc82   : > { %5232 = vmatpush3.bf16.msra.mxu0 %v6496_v61  ;;  %v5472_v61 = vld [vmem:[#allocation5 + $0x398] sm:$0xff]  }
 0xc83   : > { %5233 = vmatprep.subr.bf16.mxu0 %v5663_v48 }
 0xc84   : > { %5212 = vmatpush3.bf16.msra.mxu1 %v5471_v2 }
 0xc85   : > { %5213 = vmatprep.subr.bf16.mxu1 %v5663_v48 }
 0xc86   : > { %5234 = vmatpush3.bf16.msra.mxu0 %v6503_v27  ;;  %v5473_v27 = vld [vmem:[#allocation5 + $0x390] sm:$0xff]  }
 0xc87   : > { %5235 = vmatprep.subr.bf16.mxu0 %v5663_v48 }
 0xc88   : > { %5214 = vmatpush3.bf16.msra.mxu1 %v5472_v61 }
 0xc89   : > { %5215 = vmatprep.subr.bf16.mxu1 %v5663_v48 }
 0xc8a   : > { %5236 = vmatpush3.bf16.msra.mxu0 %v6510_v56  ;;  %v5474_v56 = vld [vmem:[#allocation5 + $0x388] sm:$0xff]  }
 0xc8b   : > { %5237 = vmatprep.subr.bf16.mxu0 %v5663_v48 }
 0xc8c   : > { %5216 = vmatpush3.bf16.msra.mxu1 %v5473_v27 }
 0xc8d   : > { %5217 = vmatprep.subr.bf16.mxu1 %v5663_v48 }
 0xc8e   : > { %5238 = vmatpush3.bf16.msra.mxu0 %v6599_v5  ;;  %v5475_v5 = vld [vmem:[#allocation5 + $0x380] sm:$0xff]  }
 0xc8f   : > { %5239 = vmatprep.subr.bf16.mxu0 %v5663_v48 }
 0xc90   : > { %5218 = vmatpush3.bf16.msra.mxu1 %v5474_v56 }
 0xc91   : > { %5219 = vmatprep.subr.bf16.mxu1 %v5663_v48 }
 0xc92   : > { %5240 = vmatpush3.bf16.msra.mxu0 %v6606_v31  ;;  %v1017_v31 = vadd.f32 %v6407_v33, %v6185_v18 }
 0xc94   : > { %5220 = vmatpush3.bf16.msra.mxu1 %v5475_v5 }
 0xc95   : > { %5245 = vmatprep.subr.bf16.mxu1 %v5663_v48 }
 0xd35   : > { %v3611_v30 = vpop.f32.mrf.mxu0 }
 0xd36   : > { %v3621_v53 = vadd.f32 %v3611_v30, %v1017_v31 }
 0xd37   : > { %v3567_v49 = vpop.f32.mrf.mxu1  ;;  %v5203_v8 = vpop.f32.mrf.mxu0 }
 0xd38   : > { %v3623_v14 = vadd.f32 %v6416_v47, %v3621_v53  ;;  %v3574_v54 = vadd.f32 %v3567_v49, %v6707_v26 }
 0xd39   : > { %v5183_v57 = vpop.f32.mrf.mxu1  ;;  %v3614_v51 = vpop.f32.mrf.mxu0 }
 0xd3a   : > { %v3622_v16 = vadd.f32 %v3614_v51, %v1020_v52  ;;  %5540 = vtanh.f32 %v3623_v14 }
 0xd3b   : > { %v3570_v1 = vpop.f32.mrf.mxu1  ;;  %v5204_v36 = vpop.f32.mrf.mxu0 }
 0xd3c   : > { %v3624_v60 = vadd.f32 %v6416_v47, %v3622_v16  ;;  %v3575_v18 = vadd.f32 %v3570_v1, %v6711_v23  ;;  %v5477_v47 = vld [vmem:[#allocation5 + $0x3f0] sm:$0xff]  }
 0xd3d   : > { %v5184_v59 = vpop.f32.mrf.mxu1 }
 0xd3e   : > { %5542 = vtanh.f32 %v3624_v60 }
 0xd47   : > { %v5541_v4 = vpop.eup %5540 }
 0xd48   : > { %v3640_v9 = vmul.f32 %v5541_v4, %v3633_v39 }
 0xd4b   : > { %v5543_v24 = vpop.eup %5542 }
 0xd4c   : > { %v3751_v33 = vpack.c.bf16 %v5543_v24, %v5541_v4  ;;  %v3641_v3 = vmul.f32 %v5543_v24, %v3638_v20 }
 0xd4e   : > { %5242 = vmatmul.mubr.bf16.vlgmr.msra.gmra.mxu0 %v3751_v33  ;;  %v3642_v28 = vpack.c.bf16 %v3641_v3, %v3640_v9 }
 0xd50   : > { %5222 = vmatmul.mubr.bf16.vlgmr.msra.gmra.mxu1 %v3642_v28 }
 0xd51   : > { %5246 = vmatpush3.bf16.msra.mxu1 %v5476_v63  ;;  %5261 = vmatprep.mubr.msk.bf16.mxu1 %vm5664_vm0, %v5663_v48 }
 0xd52   : > { %5247 = vmatprep.subr.bf16.mxu1 %v5663_v48 }
 0xd55   : > { %5248 = vmatpush3.bf16.msra.mxu1 %v5477_v47 }
 0xd56   : > { %5249 = vmatprep.subr.bf16.mxu1 %v5663_v48 }
 0xd59   : > { %5250 = vmatpush3.bf16.msra.mxu1 %v5478_v11 }
 0xd5a   : > { %5251 = vmatprep.subr.bf16.mxu1 %v5663_v48 }
 0xd5d   : > { %5252 = vmatpush3.bf16.msra.mxu1 %v5479_v46 }
 0xd5e   : > { %5253 = vmatprep.subr.bf16.mxu1 %v5663_v48 }
 0xd61   : > { %5254 = vmatpush3.bf16.msra.mxu1 %v5480_v35 }
 0xd62   : > { %5255 = vmatprep.subr.bf16.mxu1 %v5663_v48 }
 0xd65   : > { %5256 = vmatpush3.bf16.msra.mxu1 %v5481_v37 }
 0xd66   : > { %5257 = vmatprep.subr.bf16.mxu1 %v5663_v48 }
 0xd69   : > { %5258 = vmatpush3.bf16.msra.mxu1 %v5482_v50 }
 0xd6a   : > { %5259 = vmatprep.subr.bf16.mxu1 %v5663_v48 }
 0xd6d   : > { %5260 = vmatpush3.bf16.msra.mxu1 %v5483_v41 }
 0xe0e   : > { %v3786_v10 = vpop.f32.mrf.mxu0 }
 0xe0f   : > { %v3796_v62 = vadd.f32 %v3786_v10, %v1025_v44 }
 0xe10   : > { %v3742_v26 = vpop.f32.mrf.mxu1  ;;  %v5243_v40 = vpop.f32.mrf.mxu0 }
 0xe11   : > { %v3798_v45 = vadd.f32 %v5567_v55, %v3796_v62  ;;  %v3749_v58 = vadd.f32 %v3742_v26, %v3574_v54 }
 0xe12   : > { %v5223_v48 = vpop.f32.mrf.mxu1  ;;  %v3789_v13 = vpop.f32.mrf.mxu0 }
 0xe13   : > { %v3797_v23 = vadd.f32 %v3789_v13, %v1028_v12  ;;  %5544 = vtanh.f32 %v3798_v45 }
 0xe14   : > { %v3745_v29 = vpop.f32.mrf.mxu1  ;;  %v5244_v21 = vpop.f32.mrf.mxu0 }
 0xe15   : > { %v3799_v17 = vadd.f32 %v5567_v55, %v3797_v23  ;;  %v3750_v15 = vadd.f32 %v3745_v29, %v3575_v18 }
 0xe16   : > { %v5224_v22 = vpop.f32.mrf.mxu1 }
 0xe17   : > { %5546 = vtanh.f32 %v3799_v17 }
 0xe20   : > { %v5545_v32 = vpop.eup %5544 }
 0xe21   : > { %v3815_v38 = vmul.f32 %v5545_v32, %v3808_v34 }
 0xe24   : > { %v5547_v19 = vpop.eup %5546 }
 0xe25   : > { %v3816_v42 = vmul.f32 %v5547_v19, %v3813_v7 }
 0xe27   : > { %v3817_v6 = vpack.c.bf16 %v3816_v42, %v3815_v38 }
 0xe29   : > { %5262 = vmatmul.mubr.bf16.vlgmr.msra.gmra.mxu1 %v3817_v6 }
 0xee9   : > { %v3917_v25 = vpop.f32.mrf.mxu1 }
 0xeea   : > { %v3924_v2 = vadd.f32 %v3917_v25, %v3749_v58 }
 0xeeb   : > { %v5263_v61 = vpop.f32.mrf.mxu1 }
 0xeec   : > { %v3933_v27 = vadd.f32 %v4256_v0, %v3924_v2 }
 0xeed   : > { %v3920_v56 = vpop.f32.mrf.mxu1 }
 0xeee   : > { %3935 = vst [vmem:[%s666_s25] sm:$0xff] %v3933_v27  ;;  %v3925_v5 = vadd.f32 %v3920_v56, %v3750_v15 }
 0xeef   : > { %v5264_v31 = vpop.f32.mrf.mxu1 }
 0xef0   : > { %v3934_v30 = vadd.f32 %v4256_v0, %v3925_v5 }
 0xef2   : > { %3936 = vst [vmem:[%s666_s25 + $0x8] sm:$0xff] %v3934_v30 }
 0xef3   : > { %5607 = shalt.err (!%p5604_p1)
}
 0xef4   : > { %s5608_s23 = scalar_lea.hbm %s6775_s20, 256  ;;  %s5612_s21 = scalar_lea.hbm %s6826_s8, 512 }
 0xef5   : > { %p5609_p2 = scmp.ne.s32.totalorder %s6775_s20, %s5608_s23  ;;  %p5613_p7 = scmp.lt.s32.totalorder %s6775_s20, %s6826_s8 }
 0xef6   : > { %p5614_p8 = scmp.lt.s32.totalorder %s5612_s21, %s5608_s23 }
 0xef7   : > { %p5610_p3 = pnand %p5609_p2, %p6832_p6 }
 0xef8   : > { %p5615_p5 = por %p5614_p8, %p5613_p7 }
 0xef9   : > { %p5611_p4 = pneg %p5610_p3 }
 0xefb   : > { %p5616_p10 = pnand %p5615_p5, %p5611_p4 }
 0xefd   : > { %5619 = shalt.err (!%p5616_p10)
}
 0xefe   : > { %s5667_s19 = smov 128   ;;  %s5668_s9 = smov 8  }
 0xeff   : > { %5269 = dma.vmem_to_hbm [thread:$0]  (%p6832_p6), %s6770_s26, 256, %s6775_s20, %s3938_s13, %s5667_s19, %s5667_s19, %s5668_s9  }
 0xf00 PF: > { %s3966_s18 = sand.u32 1, %s5646_s27   ;;  %p6833_p11 = scmp.ne.s32.totalorder %s6830_s17, 0 }
 0xf01   : > { %s3967_s22 = scalar_lea.sflag [#allocation7], %s3966_s18 }
 0xf02   : > { %p5276_p12 = pnand %p4052_p9, %p6833_p11 }
 0xf04   : > { %p5277_p13 = pneg %p5276_p12 }
 0xf06   : > { %5641 = dma.done.wait (%p5277_p13), %s3967_s22, 256  }
 0xf07   : > { %5643 = vsyncadd (%p5277_p13), %s3967_s22, 4294967040  ;;  %p19_p0 = scmp.ge.s32.totalorder %s5739_s11, 4   ;;  %s6834_s27 = smov %s5650_s28 }
 0xf08   : > { %s6835_s28 = smov %s5654_s29  ;;  %s6836_s29 = smov %s5751_s14 }
 0xf09   : > { %s6837_s30 = smov %s5739_s11  ;;  %21 = sbr.rel (!%p19_p0) target bundleno = 4 (0x4), region = 229 }
 0xf0e   :  { %3972 = vsyncpa [#allocation6], 1 }
 0xf0f   :  { %3974 = vsyncpa [#allocation6 + $0x1], 1 }
 0xf10   :  { %3975 = vsyncpa [#allocation7], 1 }
 0xf11   :  { %3977 = vsyncpa [#allocation7 + $0x1], 1 }

</bundles_post_ra>
